<compile_context>
chip_gen: v7x
topology: tpu7x:2x2x1
jax: 0.10.0
libtpu: 0.0.40
codegen_flags: <defaults>
</compile_context>

<pallas_src>
from functools import partial

import jax
import jax.numpy as jnp
from jax.experimental import pallas as pl
from jax.experimental.pallas import tpu as pltpu


# -----------------------------------------------------------------------------
# helpers: tiling / padding / vmem sizing
# -----------------------------------------------------------------------------
def _round_up(x, m):
    return ((x + m - 1) // m) * m


def _tiles_for(n, block_m=256, block_k=256):
    """Pick (padded_n, row_tile, k_tile) obeying the (8, 128) layout rules."""
    n_pad = _round_up(n, 128)
    tm = min(block_m, n_pad)
    tk = min(block_k, n_pad)
    n_pad = _round_up(n_pad, tm)
    n_pad = _round_up(n_pad, tk)
    assert tm % 8 == 0 and tk % 128 == 0
    assert n_pad % tm == 0 and n_pad % tk == 0
    return n_pad, tm, tk


def _vmem_limit_bytes(tm, tk, hidden, itemsize):
    """Scoped-VMEM request sized from the actual tiles (double-buffered)."""
    four_h = 4 * hidden
    need = (2 * tm * tk * itemsize            # adj tiles
            + 2 * tk * four_h * itemsize      # xw tiles
            + 2 * tm * hidden * 4             # c tiles
            + 2 * tm * 2 * hidden * 4         # packed (h, c) output tiles
            + 2 * four_h * 4                  # bias
            + tm * four_h * 4)                # f32 accumulator scratch
    # stay <= 64 MiB so the same config also fits a v7x TensorCore
    return int(min(64 * 1024 * 1024, max(4 * need, 16 * 1024 * 1024)))


# -----------------------------------------------------------------------------
# Pallas kernel 1: feature linear   xw = x @ Wx + h @ Wh       (no concat!)
# -----------------------------------------------------------------------------
def _feature_linear_kernel(x_ref, h_ref, wx_ref, wh_ref, xw_ref):
    xw = jnp.dot(x_ref[...], wx_ref[...], preferred_element_type=jnp.float32)
    xw = xw + jnp.dot(h_ref[...], wh_ref[...],
                      preferred_element_type=jnp.float32)
    xw_ref[...] = xw.astype(xw_ref.dtype)


# -----------------------------------------------------------------------------
# Pallas kernel 2: aggregation + LSTM gates
#   grid = (row tiles [parallel], K tiles [arbitrary])
#   acc_ref (f32 VMEM scratch) accumulates A_hat[i, k] @ xw[k]; gates and the
#   elementwise LSTM update run once per row tile in the finalize phase.
# -----------------------------------------------------------------------------
def _gconv_lstm_agg_kernel(adj_ref, xw_ref, c_ref, b_ref, hc_ref, acc_ref):
    k = pl.program_id(1)

    @pl.when(k == 0)
    def _init():
        acc_ref[...] = jnp.zeros_like(acc_ref)

    acc_ref[...] += jnp.dot(adj_ref[...], xw_ref[...],
                            preferred_element_type=jnp.float32)

    @pl.when(k == pl.num_programs(1) - 1)
    def _finalize():
        hidden = c_ref.shape[-1]
        conv = acc_ref[...] + b_ref[...]          # bias added once, post-reduction

        f = jax.nn.sigmoid(conv[:, 0 * hidden:1 * hidden])
        i = jax.nn.sigmoid(conv[:, 1 * hidden:2 * hidden])
        o = jax.nn.sigmoid(conv[:, 2 * hidden:3 * hidden])
        g = jnp.tanh(conv[:, 3 * hidden:4 * hidden])

        c_next = f * c_ref[...] + i * g
        h_next = o * jnp.tanh(c_next)

        # packed, lane-denser output slab: [h_next | c_next]
        hc_ref[...] = jnp.concatenate([h_next, c_next],
                                      axis=1).astype(hc_ref.dtype)


# -----------------------------------------------------------------------------
# Glue: dense GCN-normalized adjacency (built once per graph, outside the
# per-timestep hot path) and the jitted per-timestep cell.
# -----------------------------------------------------------------------------
def gcn_norm_dense(edge_index, num_nodes, edge_weight=None, dtype=jnp.float32):
    src = edge_index[0]
    dst = edge_index[1]
    if edge_weight is None:
        edge_weight = jnp.ones((src.shape[0],), dtype=dtype)

    loop = jnp.arange(num_nodes, dtype=src.dtype)
    src = jnp.concatenate([src, loop])
    dst = jnp.concatenate([dst, loop])
    w = jnp.concatenate([edge_weight.astype(dtype),
                         jnp.ones((num_nodes,), dtype=dtype)])

    deg = jnp.zeros((num_nodes,), dtype=dtype).at[dst].add(w)
    deg_inv_sqrt = jnp.where(deg > 0, 1.0 / jnp.sqrt(deg), 0.0)
    norm = deg_inv_sqrt[src] * w * deg_inv_sqrt[dst]

    adj = jnp.zeros((num_nodes, num_nodes), dtype=dtype).at[dst, src].add(norm)
    return adj


def prepare_adjacency(edge_index, num_nodes, edge_weight=None,
                      dtype=jnp.bfloat16, block_m=256, block_k=256):
    """Build + normalize + zero-pad + cast the dense adjacency ONCE per graph."""
    adj = gcn_norm_dense(edge_index, num_nodes, edge_weight, dtype=jnp.float32)
    n_pad, _, _ = _tiles_for(num_nodes, block_m, block_k)
    if n_pad != num_nodes:
        pad = n_pad - num_nodes
        adj = jnp.pad(adj, ((0, pad), (0, pad)))
    return adj.astype(dtype)


@partial(jax.jit, static_argnames=("block_m", "block_k"))
def gconv_lstm_cell_from_adj(adj, x, h_cur, c_cur, weight, bias, *,
                             block_m=256, block_k=256):
    """Per-timestep GConvLSTM cell given a prebuilt (padded) adjacency.

    adj:    [Np, Np]  normalized adjacency (bf16 or f32), zero padded
    x:      [N, Cin], h_cur/c_cur: [N, H], weight: [Cin+H, 4H], bias: [4H]
    returns (h_next, c_next), each [N, H] float32.
    """
    n, cin = x.shape
    _, hidden = h_cur.shape
    four_h = 4 * hidden

    n_pad, tm, tk = _tiles_for(adj.shape[0], block_m, block_k)
    if adj.shape[0] != n_pad:
        pad = n_pad - adj.shape[0]
        adj = jnp.pad(adj, ((0, pad), (0, pad)))
    compute_dtype = adj.dtype
    itemsize = jnp.dtype(compute_dtype).itemsize

    def pad_rows(a):
        if a.shape[0] == n_pad:
            return a
        return jnp.pad(a, ((0, n_pad - a.shape[0]), (0, 0)))

    x_p = pad_rows(x.astype(jnp.float32))
    h_p = pad_rows(h_cur.astype(jnp.float32))
    c_p = pad_rows(c_cur.astype(jnp.float32))

    # pre-split weight: no in-kernel concat
    w_x = weight[:cin].astype(jnp.float32)
    w_h = weight[cin:cin + hidden].astype(jnp.float32)
    bias2d = bias.reshape(1, four_h).astype(jnp.float32)

    # ---------------- stage 1: xw = x @ Wx + h @ Wh  (row-tiled) -------------
    xw = pl.pallas_call(
        _feature_linear_kernel,
        out_shape=jax.ShapeDtypeStruct((n_pad, four_h), compute_dtype),
        grid_spec=pltpu.PrefetchScalarGridSpec(
            num_scalar_prefetch=0,
            grid=(n_pad // tm,),
            in_specs=[
                pl.BlockSpec((tm, cin), lambda i: (i, 0)),
                pl.BlockSpec((tm, hidden), lambda i: (i, 0)),
                pl.BlockSpec((cin, four_h), lambda i: (0, 0)),
                pl.BlockSpec((hidden, four_h), lambda i: (0, 0)),
            ],
            out_specs=pl.BlockSpec((tm, four_h), lambda i: (i, 0)),
        ),
        compiler_params=pltpu.CompilerParams(
            dimension_semantics=("parallel",)),
        cost_estimate=pl.CostEstimate(
            flops=int(2 * n_pad * (cin + hidden) * four_h),
            transcendentals=0,
            bytes_accessed=int(4 * (n_pad * cin + n_pad * hidden
                                    + (cin + hidden) * four_h)
                               + itemsize * n_pad * four_h),
        ),
    )(x_p, h_p, w_x, w_h)

    # ---------------- stage 2: A_hat @ xw + bias -> LSTM gates ---------------
    hc = pl.pallas_call(
        _gconv_lstm_agg_kernel,
        out_shape=jax.ShapeDtypeStruct((n_pad, 2 * hidden), jnp.float32),
        grid_spec=pltpu.PrefetchScalarGridSpec(
            num_scalar_prefetch=0,
            grid=(n_pad // tm, n_pad // tk),
            in_specs=[
                pl.BlockSpec((tm, tk), lambda i, k: (i, k)),       # adjacency
                pl.BlockSpec((tk, four_h), lambda i, k: (k, 0)),   # xw
                pl.BlockSpec((tm, hidden), lambda i, k: (i, 0)),   # c_cur
                pl.BlockSpec((1, four_h), lambda i, k: (0, 0)),    # bias
            ],
            out_specs=pl.BlockSpec((tm, 2 * hidden), lambda i, k: (i, 0)),
            scratch_shapes=[pltpu.VMEM((tm, four_h), jnp.float32)],
        ),
        compiler_params=pltpu.CompilerParams(
            dimension_semantics=("parallel", "arbitrary"),
            vmem_limit_bytes=_vmem_limit_bytes(tm, tk, hidden, itemsize),
        ),
        cost_estimate=pl.CostEstimate(
            flops=int(2 * n_pad * n_pad * four_h),
            transcendentals=int(5 * n_pad * hidden),
            bytes_accessed=int(itemsize * (n_pad * n_pad + n_pad * four_h)
                               + 4 * (n_pad * hidden
                                      + n_pad * 2 * hidden + four_h)),
        ),
    )(adj, xw, c_p, bias2d)

    h_next = hc[:n, :hidden]
    c_next = hc[:n, hidden:2 * hidden]
    return h_next, c_next


def gconv_lstm_cell(x, edge_index, h_cur, c_cur, weight, bias,
                    edge_weight=None, *, compute_dtype=jnp.bfloat16,
                    block_m=256, block_k=256):
    """Convenience wrapper matching the original module signature.

    For a recurrent rollout, call prepare_adjacency() once and reuse it with
    gconv_lstm_cell_from_adj() every timestep instead.
    """
    adj = prepare_adjacency(edge_index, h_cur.shape[0], edge_weight,
                            dtype=compute_dtype,
                            block_m=block_m, block_k=block_k)
    return gconv_lstm_cell_from_adj(adj, x, h_cur, c_cur, weight, bias,
                                    block_m=block_m, block_k=block_k)


# -----------------------------------------------------------------------------
# Pure-JAX reference (mirrors the PyTorch/PyG semantics) for verification.
# -----------------------------------------------------------------------------
def gconv_lstm_cell_ref(x, edge_index, h_cur, c_cur, weight, bias,
                        edge_weight=None):
    n_nodes, hidden = h_cur.shape
    adj = gcn_norm_dense(edge_index, n_nodes, edge_weight)
    combined = jnp.concatenate([x, h_cur], axis=1)
    conv = adj @ (combined @ weight) + bias[None, :]
    cc_f = conv[:, 0 * hidden:1 * hidden]
    cc_i = conv[:, 1 * hidden:2 * hidden]
    cc_o = conv[:, 2 * hidden:3 * hidden]
    cc_g = conv[:, 3 * hidden:4 * hidden]
    f = jax.nn.sigmoid(cc_f)
    i = jax.nn.sigmoid(cc_i)
    o = jax.nn.sigmoid(cc_o)
    g = jnp.tanh(cc_g)
    c_next = f * c_cur + i * g
    h_next = o * jnp.tanh(c_next)
    return h_next, c_next


if __name__ == "__main__":
    # Small, deterministic example (non-tile-multiple N exercises padding,
    # and the 512x512 padded adjacency with 256x256 tiles exercises the grid).
    num_nodes = 300
    input_channel = 8
    hidden_channel = 32
    num_edges = 1024

    key = jax.random.PRNGKey(0)
    k_x, k_h, k_c, k_src, k_dst, k_w, k_b = jax.random.split(key, 7)

    x = jax.random.normal(k_x, (num_nodes, input_channel), dtype=jnp.float32)
    h_cur = jax.random.normal(k_h, (num_nodes, hidden_channel),
                              dtype=jnp.float32)
    c_cur = jax.random.normal(k_c, (num_nodes, hidden_channel),
                              dtype=jnp.float32)

    edge_index = jnp.stack([
        jax.random.randint(k_src, (num_edges,), 0, num_nodes, dtype=jnp.int32),
        jax.random.randint(k_dst, (num_edges,), 0, num_nodes, dtype=jnp.int32),
    ], axis=0)

    in_dim = input_channel + hidden_channel
    out_dim = 4 * hidden_channel
    scale = jnp.sqrt(6.0 / (in_dim + out_dim))
    weight = scale * jax.random.uniform(
        k_w, (in_dim, out_dim), minval=-1.0, maxval=1.0, dtype=jnp.float32)
    bias = 0.1 * jax.random.normal(k_b, (out_dim,), dtype=jnp.float32)

    h_ref, c_ref = gconv_lstm_cell_ref(x, edge_index, h_cur, c_cur, weight,
                                       bias)

    # --- f32 path (tight numerical check) ------------------------------------
    adj_f32 = prepare_adjacency(edge_index, num_nodes, dtype=jnp.float32)
    h32, c32 = gconv_lstm_cell_from_adj(adj_f32, x, h_cur, c_cur, weight, bias)
    jax.block_until_ready((h32, c32))
    assert jnp.allclose(h32, h_ref, atol=1e-4, rtol=1e-4)
    assert jnp.allclose(c32, c_ref, atol=1e-4, rtol=1e-4)

    # --- bf16 aggregation path (default, perf config; loose check) -----------
    h16, c16 = gconv_lstm_cell(x, edge_index, h_cur, c_cur, weight, bias)
    jax.block_until_ready((h16, c16))
    assert jnp.allclose(h16, h_ref, atol=5e-2, rtol=5e-2)
    assert jnp.allclose(c16, c_ref, atol=5e-2, rtol=5e-2)

    print("KERNEL_OK")
</pallas_src>

<mosaic_0001>
module attributes {stable_mosaic.version = 11 : i64} {
  func.func @_feature_linear_kernel(%arg0: i32, %arg1: memref<256x8xf32, #tpu.memory_space<vmem>>, %arg2: memref<256x32xf32, #tpu.memory_space<vmem>>, %arg3: memref<8x128xf32, #tpu.memory_space<vmem>>, %arg4: memref<32x128xf32, #tpu.memory_space<vmem>>, %arg5: memref<256x128xf32, #tpu.memory_space<vmem>>) attributes {dimension_semantics = [#tpu.dimension_semantics<parallel>], iteration_bounds = array<i64: 2>, scalar_prefetch = 0 : i64, scratch_operands = 0 : i64, tpu.core_type = #tpu.core_type<tc>, window_params = [{transform_indices = @transform_0, window_bounds = array<i64: 256, 8>}, {transform_indices = @transform_1, window_bounds = array<i64: 256, 32>}, {pipeline_mode = #tpu.pipeline_mode<synchronous>, transform_indices = @transform_2, window_bounds = array<i64: 8, 128>}, {pipeline_mode = #tpu.pipeline_mode<synchronous>, transform_indices = @transform_3, window_bounds = array<i64: 32, 128>}, {transform_indices = @transform_4, window_bounds = array<i64: 256, 128>}]} {
    %c0 = arith.constant 0 : index
    %c0_0 = arith.constant 0 : index
    %0 = vector.load %arg1[%c0, %c0_0] : memref<256x8xf32, #tpu.memory_space<vmem>>, vector<256x8xf32>
    %c0_1 = arith.constant 0 : index
    %c0_2 = arith.constant 0 : index
    %1 = vector.load %arg3[%c0_1, %c0_2] : memref<8x128xf32, #tpu.memory_space<vmem>>, vector<8x128xf32>
    %cst = arith.constant dense<0.000000e+00> : vector<256x128xf32>
    %2 = tpu.matmul %0, %1, %cst {dimension_numbers = #tpu.dot_dimension_numbers<[1], [0], [0], [1], [0, 0, 1, 1], [], []>} : vector<256x8xf32>, vector<8x128xf32>, vector<256x128xf32> -> vector<256x128xf32>
    %c0_3 = arith.constant 0 : index
    %c0_4 = arith.constant 0 : index
    %3 = vector.load %arg2[%c0_3, %c0_4] : memref<256x32xf32, #tpu.memory_space<vmem>>, vector<256x32xf32>
    %c0_5 = arith.constant 0 : index
    %c0_6 = arith.constant 0 : index
    %4 = vector.load %arg4[%c0_5, %c0_6] : memref<32x128xf32, #tpu.memory_space<vmem>>, vector<32x128xf32>
    %cst_7 = arith.constant dense<0.000000e+00> : vector<256x128xf32>
    %5 = tpu.matmul %3, %4, %cst_7 {dimension_numbers = #tpu.dot_dimension_numbers<[1], [0], [0], [1], [0, 0, 1, 1], [], []>} : vector<256x32xf32>, vector<32x128xf32>, vector<256x128xf32> -> vector<256x128xf32>
    %6 = arith.addf %2, %5 : vector<256x128xf32>
    %c0_8 = arith.constant 0 : index
    %c0_9 = arith.constant 0 : index
    %7 = vector.load %arg5[%c0_8, %c0_9] : memref<256x128xf32, #tpu.memory_space<vmem>>, vector<256x128xf32>
    tpu.vector_store %arg5[%c0_8, %c0_9], %6 {strides = array<i32>} : memref<256x128xf32, #tpu.memory_space<vmem>>, vector<256x128xf32>,
    return
  }
  func.func @transform_0(%arg0: i32) -> (i32, i32) {
    %c0_i32 = arith.constant 0 : i32
    %c0_i32_0 = arith.constant 0 : i32
    return %arg0, %c0_i32 : i32, i32
  }
  func.func @transform_1(%arg0: i32) -> (i32, i32) {
    %c0_i32 = arith.constant 0 : i32
    %c0_i32_0 = arith.constant 0 : i32
    return %arg0, %c0_i32 : i32, i32
  }
  func.func @transform_2(%arg0: i32) -> (i32, i32) {
    %c0_i32 = arith.constant 0 : i32
    %c0_i32_0 = arith.constant 0 : i32
    %c0_i32_1 = arith.constant 0 : i32
    return %c0_i32, %c0_i32_0 : i32, i32
  }
  func.func @transform_3(%arg0: i32) -> (i32, i32) {
    %c0_i32 = arith.constant 0 : i32
    %c0_i32_0 = arith.constant 0 : i32
    %c0_i32_1 = arith.constant 0 : i32
    return %c0_i32, %c0_i32_0 : i32, i32
  }
  func.func @transform_4(%arg0: i32) -> (i32, i32) {
    %c0_i32 = arith.constant 0 : i32
    %c0_i32_0 = arith.constant 0 : i32
    return %arg0, %c0_i32 : i32, i32
  }
}

module attributes {stable_mosaic.version = 11 : i64} {
  func.func @_gconv_lstm_agg_kernel(%arg0: i32, %arg1: i32, %arg2: memref<256x256xf32, #tpu.memory_space<vmem>>, %arg3: memref<256x128xf32, #tpu.memory_space<vmem>>, %arg4: memref<256x32xf32, #tpu.memory_space<vmem>>, %arg5: memref<1x128xf32, #tpu.memory_space<vmem>>, %arg6: memref<256x64xf32, #tpu.memory_space<vmem>>, %arg7: memref<256x128xf32, #tpu.memory_space<vmem>>) attributes {dimension_semantics = [#tpu.dimension_semantics<parallel>, #tpu.dimension_semantics<arbitrary>], iteration_bounds = array<i64: 2, 2>, scalar_prefetch = 0 : i64, scratch_operands = 1 : i64, tpu.core_type = #tpu.core_type<tc>, window_params = [{transform_indices = @transform_0, window_bounds = array<i64: 256, 256>}, {transform_indices = @transform_1, window_bounds = array<i64: 256, 128>}, {transform_indices = @transform_2, window_bounds = array<i64: 256, 32>}, {pipeline_mode = #tpu.pipeline_mode<synchronous>, transform_indices = @transform_3, window_bounds = array<i64: 1, 128>}, {transform_indices = @transform_4, window_bounds = array<i64: 256, 64>}]} {
    %c0_i32 = arith.constant 0 : i32
    %0 = arith.cmpi eq, %arg1, %c0_i32 : i32
    %1 = arith.extui %0 : i1 to i32
    %c0_i32_0 = arith.constant 0 : i32
    %2 = arith.cmpi ne, %1, %c0_i32_0 : i32
    scf.if %2 {
      %cst_9 = arith.constant 0.000000e+00 : f32
      %12 = vector.broadcast %cst_9 : f32 to vector<256x128xf32>
      %c0_10 = arith.constant 0 : index
      %c0_11 = arith.constant 0 : index
      %13 = vector.load %arg7[%c0_10, %c0_11] : memref<256x128xf32, #tpu.memory_space<vmem>>, vector<256x128xf32>
      tpu.vector_store %arg7[%c0_10, %c0_11], %12 {strides = array<i32>} : memref<256x128xf32, #tpu.memory_space<vmem>>, vector<256x128xf32>,
    } else {
    }
    %c0 = arith.constant 0 : index
    %c0_1 = arith.constant 0 : index
    %3 = vector.load %arg7[%c0, %c0_1] : memref<256x128xf32, #tpu.memory_space<vmem>>, vector<256x128xf32>
    %c0_2 = arith.constant 0 : index
    %c0_3 = arith.constant 0 : index
    %4 = vector.load %arg2[%c0_2, %c0_3] : memref<256x256xf32, #tpu.memory_space<vmem>>, vector<256x256xf32>
    %c0_4 = arith.constant 0 : index
    %c0_5 = arith.constant 0 : index
    %5 = vector.load %arg3[%c0_4, %c0_5] : memref<256x128xf32, #tpu.memory_space<vmem>>, vector<256x128xf32>
    %cst = arith.constant dense<0.000000e+00> : vector<256x128xf32>
    %6 = tpu.matmul %4, %5, %cst {dimension_numbers = #tpu.dot_dimension_numbers<[1], [0], [0], [1], [0, 0, 1, 1], [], []>} : vector<256x256xf32>, vector<256x128xf32>, vector<256x128xf32> -> vector<256x128xf32>
    %7 = arith.addf %3, %6 : vector<256x128xf32>
    %c0_6 = arith.constant 0 : index
    %c0_7 = arith.constant 0 : index
    %8 = vector.load %arg7[%c0_6, %c0_7] : memref<256x128xf32, #tpu.memory_space<vmem>>, vector<256x128xf32>
    tpu.vector_store %arg7[%c0_6, %c0_7], %7 {strides = array<i32>} : memref<256x128xf32, #tpu.memory_space<vmem>>, vector<256x128xf32>,
    %c1_i32 = arith.constant 1 : i32
    %9 = arith.cmpi eq, %arg1, %c1_i32 : i32
    %10 = arith.extui %9 : i1 to i32
    %c0_i32_8 = arith.constant 0 : i32
    %11 = arith.cmpi ne, %10, %c0_i32_8 : i32
    scf.if %11 {
      %c0_9 = arith.constant 0 : index
      %c0_10 = arith.constant 0 : index
      %12 = vector.load %arg7[%c0_9, %c0_10] : memref<256x128xf32, #tpu.memory_space<vmem>>, vector<256x128xf32>
      %c0_11 = arith.constant 0 : index
      %c0_12 = arith.constant 0 : index
      %13 = vector.load %arg5[%c0_11, %c0_12] : memref<1x128xf32, #tpu.memory_space<vmem>>, vector<1x128xf32>
      %14 = vector.broadcast %13 : vector<1x128xf32> to vector<256x128xf32>
      %15 = arith.addf %12, %14 : vector<256x128xf32>
      %16 = vector.extract_strided_slice %15 {offsets = [0, 0], sizes = [256, 32], strides = [1, 1]} : vector<256x128xf32> to vector<256x32xf32>
      %17 = arith.negf %16 : vector<256x32xf32>
      %18 = math.exp %17 : vector<256x32xf32>
      %cst_13 = arith.constant 1.000000e+00 : f32
      %19 = vector.broadcast %cst_13 : f32 to vector<256x32xf32>
      %20 = arith.addf %19, %18 : vector<256x32xf32>
      %21 = arith.divf %19, %20 : vector<256x32xf32>
      %22 = vector.extract_strided_slice %15 {offsets = [0, 32], sizes = [256, 32], strides = [1, 1]} : vector<256x128xf32> to vector<256x32xf32>
      %23 = arith.negf %22 : vector<256x32xf32>
      %24 = math.exp %23 : vector<256x32xf32>
      %cst_14 = arith.constant 1.000000e+00 : f32
      %25 = vector.broadcast %cst_14 : f32 to vector<256x32xf32>
      %26 = arith.addf %25, %24 : vector<256x32xf32>
      %27 = arith.divf %25, %26 : vector<256x32xf32>
      %28 = vector.extract_strided_slice %15 {offsets = [0, 64], sizes = [256, 32], strides = [1, 1]} : vector<256x128xf32> to vector<256x32xf32>
      %29 = arith.negf %28 : vector<256x32xf32>
      %30 = math.exp %29 : vector<256x32xf32>
      %cst_15 = arith.constant 1.000000e+00 : f32
      %31 = vector.broadcast %cst_15 : f32 to vector<256x32xf32>
      %32 = arith.addf %31, %30 : vector<256x32xf32>
      %33 = arith.divf %31, %32 : vector<256x32xf32>
      %34 = vector.extract_strided_slice %15 {offsets = [0, 96], sizes = [256, 32], strides = [1, 1]} : vector<256x128xf32> to vector<256x32xf32>
      %35 = math.tanh %34 : vector<256x32xf32>
      %c0_16 = arith.constant 0 : index
      %c0_17 = arith.constant 0 : index
      %36 = vector.load %arg4[%c0_16, %c0_17] : memref<256x32xf32, #tpu.memory_space<vmem>>, vector<256x32xf32>
      %37 = arith.mulf %21, %36 : vector<256x32xf32>
      %38 = arith.mulf %27, %35 : vector<256x32xf32>
      %39 = arith.addf %37, %38 : vector<256x32xf32>
      %40 = math.tanh %39 : vector<256x32xf32>
      %41 = arith.mulf %33, %40 : vector<256x32xf32>
      %42 = tpu.concatenate %41, %39 in 1 : vector<256x32xf32>, vector<256x32xf32> -> vector<256x64xf32>
      %c0_18 = arith.constant 0 : index
      %c0_19 = arith.constant 0 : index
      %43 = vector.load %arg6[%c0_18, %c0_19] : memref<256x64xf32, #tpu.memory_space<vmem>>, vector<256x64xf32>
      tpu.vector_store %arg6[%c0_18, %c0_19], %42 {strides = array<i32>} : memref<256x64xf32, #tpu.memory_space<vmem>>, vector<256x64xf32>,
    } else {
    }
    return
  }
  func.func @transform_0(%arg0: i32, %arg1: i32) -> (i32, i32) {
    %c0_i32 = arith.constant 0 : i32
    return %arg0, %arg1 : i32, i32
  }
  func.func @transform_1(%arg0: i32, %arg1: i32) -> (i32, i32) {
    %c0_i32 = arith.constant 0 : i32
    %c0_i32_0 = arith.constant 0 : i32
    return %arg1, %c0_i32 : i32, i32
  }
  func.func @transform_2(%arg0: i32, %arg1: i32) -> (i32, i32) {
    %c0_i32 = arith.constant 0 : i32
    %c0_i32_0 = arith.constant 0 : i32
    return %arg0, %c0_i32 : i32, i32
  }
  func.func @transform_3(%arg0: i32, %arg1: i32) -> (i32, i32) {
    %c0_i32 = arith.constant 0 : i32
    %c0_i32_0 = arith.constant 0 : i32
    %c0_i32_1 = arith.constant 0 : i32
    return %c0_i32, %c0_i32_0 : i32, i32
  }
  func.func @transform_4(%arg0: i32, %arg1: i32) -> (i32, i32) {
    %c0_i32 = arith.constant 0 : i32
    %c0_i32_0 = arith.constant 0 : i32
    return %arg0, %c0_i32 : i32, i32
  }
}

</mosaic_0001>

<bundles_post_ra>
// kernel: gconv_lstm_cell_from_adj.2
= control target key start
LH: loop header
LB: loop body
LE: loop exit
PB: predicated region body
PF: predicated region fallthrough
CT: control target
= control target key end

     0   :  { %s1369_s15 = smov 0   ;;  %s1575_s0 = inlined_call_operand.vmem [shape: f32[512,8], index: 0, kind: input, shape index: {}]   ;;  %s1576_s1 = inlined_call_operand.vmem [shape: f32[512,32], index: 1, kind: input, shape index: {}]   ;;  %s1577_s2 = inlined_call_operand.vmem [shape: f32[8,128], index: 2, kind: input, shape index: {}]   ;;  %s1578_s3 = inlined_call_operand.vmem [shape: f32[32,128], index: 3, kind: input, shape index: {}]   ;;  %s1579_s4 = inlined_call_operand.vmem [shape: f32[512,128], index: 4, kind: output, shape index: {}]  }
   0x1 LB: > { %s1036_s16 = sadd.s32 4294967295, %s1342_s15   ;;  %p1040_p0 = scmp.ge.s32.totalorder %s1342_s15, 1  ;;  %s1342_s15 = sphi %s1369_s15, %s14_s15  }
   0x2   : > { %p174_p1 = scmp.lt.s32.totalorder %s1342_s15, 3 }
   0x4   : > { %p175_p2 = pnand %p1040_p0, %p174_p1 }
   0x5   : > { %v288_v0 = vld [vmem:[%s1578_s3] sm:$0xff] (!%p175_p2)  ;;  %v289_v1 = vld [vmem:[%s1578_s3 + $0x8] sm:$0xff] (!%p175_p2)  ;;  %v290_v2 = vld [vmem:[%s1578_s3 + $0x10] sm:$0xff] (!%p175_p2)  ;;  %s1041_s23 = sshll.u32 (!%p175_p2), %s1036_s16, 5  ;;  %vm614_vm0 = vcmask (!%p175_p2), 64512   ;;  %vm292_vm1 = vcmask (!%p175_p2), 261120  }
   0x6   : > { %178 = sbr.rel (%p175_p2) target bundleno = 295 (0x127), region = 36  ;;  %v1288_v3 = vpack.c.bf16 (!%p175_p2), %v289_v1, %v288_v0  ;;  %v291_v4 = vld [vmem:[%s1578_s3 + $0x18] sm:$0xff] (!%p175_p2)  ;;  %v255_v5 = vld [vmem:[%s1577_s2] sm:$0xff] (!%p175_p2)  ;;  %p206_p3 = scmp.lt.s32.totalorder (!%p175_p2), %s1041_s23, 63 }
   0x7   : > { %v1292_v6 = vpack.c.bf16 (!%p175_p2), %v291_v4, %v290_v2  ;;  %1238 = vmatprep.subr.mxu0 (!%p175_p2), %v255_v5 }
   0x8   : > { %1289 = vmatprep.subr.bf16.mxu1 (!%p175_p2), %v1288_v3  ;;  %1239 = vmatpush3.msra.mxu0 (!%p175_p2), %v255_v5 }
   0x9   : > { %1291 = vmatpush3.bf16.msra.mxu1 (!%p175_p2), %v1288_v3 }
   0xa   : > { %1293 = vmatprep.subr.bf16.mxu1 (!%p175_p2), %v1292_v6 }
   0xd   : > { %s1581_s23 = smov (!%p206_p3, %s1041_s23), 63  ;;  %1295 = vmatpush3.bf16.msra.mxu1 %v1292_v6 }
   0xe   : > { %s1392_s28 = sshll.u32 %s1581_s23, 3 }
   0xf   : > { %s1398_s5 = scalar_lea.vmem %s1575_s0, %s1392_s28  ;;  %s1404_s8 = scalar_lea.vmem %s1576_s1, %s1392_s28 }
  0x10   : > { %v223_v7 = vld [vmem:[%s1398_s5] sm:$0xff]  ;;  %v224_v9 = vld [vmem:[%s1398_s5 + $0x8] sm:$0xff]  ;;  %v225_v11 = vld [vmem:[%s1398_s5 + $0x10] sm:$0xff]  ;;  %s1538_s11 = scalar_lea.vmem %s1579_s4, %s1392_s28 }
  0x11   : > { %v256_v8 = vld [vmem:[%s1404_s8] sm:$0xff]  ;;  %1240 = vmatprep.mubr.msk.f32.mxu0 %vm614_vm0, %v223_v7  ;;  %v257_v10 = vld [vmem:[%s1404_s8 + $0x8] sm:$0xff]  ;;  %v258_v12 = vld [vmem:[%s1404_s8 + $0x10] sm:$0xff] }
  0x12   : > { %1190 = vmatprep.mubr.msk.f32.mxu1 %vm292_vm1, %v256_v8  ;;  %1241 = vmatmul.mubr.msk.f32.vlgmr.msra.gmra.mrb[0].mxu0 %vm614_vm0, %v224_v9  ;;  %v226_v13 = vld [vmem:[%s1398_s5 + $0x18] sm:$0xff]  ;;  %v227_v14 = vld [vmem:[%s1398_s5 + $0x20] sm:$0xff]  ;;  %v228_v17 = vld [vmem:[%s1398_s5 + $0x28] sm:$0xff] }
  0x13   : > { %1243 = vmatprep.mubr.msk.f32.mxu0 %vm614_vm0, %v225_v11  ;;  %1191 = vmatmul.mubr.msk.f32.vlgmr.msra.gmra.mrb[0].mxu1 %vm292_vm1, %v257_v10  ;;  %v259_v15 = vld [vmem:[%s1404_s8 + $0x18] sm:$0xff]  ;;  %v260_v16 = vld [vmem:[%s1404_s8 + $0x20] sm:$0xff]  ;;  %v229_v18 = vld [vmem:[%s1398_s5 + $0x30] sm:$0xff] }
  0x14   : > { %1193 = vmatprep.mubr.msk.f32.mxu1 %vm292_vm1, %v258_v12  ;;  %v261_v19 = vld [vmem:[%s1404_s8 + $0x28] sm:$0xff]  ;;  %v262_v20 = vld [vmem:[%s1404_s8 + $0x30] sm:$0xff]  ;;  %v230_v21 = vld [vmem:[%s1398_s5 + $0x38] sm:$0xff] }
  0x15   : > { %v231_v22 = vld [vmem:[%s1398_s5 + $0x40] sm:$0xff]  ;;  %v263_v23 = vld [vmem:[%s1404_s8 + $0x38] sm:$0xff]  ;;  %v232_v25 = vld [vmem:[%s1398_s5 + $0x48] sm:$0xff] }
  0x16   : > { %1244 = vmatmul.mubr.msk.f32.gmra.mrb[2].mxu0 %vm614_vm0, %v226_v13  ;;  %v264_v24 = vld [vmem:[%s1404_s8 + $0x40] sm:$0xff]  ;;  %v233_v26 = vld [vmem:[%s1398_s5 + $0x50] sm:$0xff]  ;;  %v265_v27 = vld [vmem:[%s1404_s8 + $0x48] sm:$0xff] }
  0x17   : > { %1246 = vmatprep.mubr.msk.f32.mxu0 %vm614_vm0, %v227_v14  ;;  %1194 = vmatmul.mubr.msk.f32.gmra.mrb[2].mxu1 %vm292_vm1, %v259_v15  ;;  %v266_v28 = vld [vmem:[%s1404_s8 + $0x50] sm:$0xff]  ;;  %v234_v29 = vld [vmem:[%s1398_s5 + $0x58] sm:$0xff]  ;;  %v235_v30 = vld [vmem:[%s1398_s5 + $0x60] sm:$0xff] }
  0x18   : > { %1196 = vmatprep.mubr.msk.f32.mxu1 %vm292_vm1, %v260_v16  ;;  %v267_v31 = vld [vmem:[%s1404_s8 + $0x58] sm:$0xff]  ;;  %v268_v32 = vld [vmem:[%s1404_s8 + $0x60] sm:$0xff]  ;;  %v236_v33 = vld [vmem:[%s1398_s5 + $0x68] sm:$0xff] }
  0x19   : > { %v237_v34 = vld [vmem:[%s1398_s5 + $0x70] sm:$0xff]  ;;  %v269_v35 = vld [vmem:[%s1404_s8 + $0x68] sm:$0xff]  ;;  %v238_v37 = vld [vmem:[%s1398_s5 + $0x78] sm:$0xff] }
  0x1a   : > { %1247 = vmatmul.mubr.msk.f32.gmra.mrb[4].mxu0 %vm614_vm0, %v228_v17  ;;  %v270_v36 = vld [vmem:[%s1404_s8 + $0x70] sm:$0xff]  ;;  %v239_v38 = vld [vmem:[%s1398_s5 + $0x80] sm:$0xff]  ;;  %v271_v39 = vld [vmem:[%s1404_s8 + $0x78] sm:$0xff] }
  0x1b   : > { %1249 = vmatprep.mubr.msk.f32.mxu0 %vm614_vm0, %v229_v18  ;;  %1197 = vmatmul.mubr.msk.f32.gmra.mrb[4].mxu1 %vm292_vm1, %v261_v19  ;;  %v272_v40 = vld [vmem:[%s1404_s8 + $0x80] sm:$0xff]  ;;  %v240_v41 = vld [vmem:[%s1398_s5 + $0x88] sm:$0xff]  ;;  %v241_v42 = vld [vmem:[%s1398_s5 + $0x90] sm:$0xff] }
  0x1c   : > { %1199 = vmatprep.mubr.msk.f32.mxu1 %vm292_vm1, %v262_v20  ;;  %v273_v43 = vld [vmem:[%s1404_s8 + $0x88] sm:$0xff]  ;;  %v274_v44 = vld [vmem:[%s1404_s8 + $0x90] sm:$0xff]  ;;  %v242_v45 = vld [vmem:[%s1398_s5 + $0x98] sm:$0xff] }
  0x1d   : > { %v243_v46 = vld [vmem:[%s1398_s5 + $0xa0] sm:$0xff]  ;;  %v275_v47 = vld [vmem:[%s1404_s8 + $0x98] sm:$0xff]  ;;  %v244_v49 = vld [vmem:[%s1398_s5 + $0xa8] sm:$0xff] }
  0x1e   : > { %1250 = vmatmul.mubr.msk.f32.gmra.mrb[6].mxu0 %vm614_vm0, %v230_v21  ;;  %v276_v48 = vld [vmem:[%s1404_s8 + $0xa0] sm:$0xff]  ;;  %v245_v50 = vld [vmem:[%s1398_s5 + $0xb0] sm:$0xff]  ;;  %v277_v51 = vld [vmem:[%s1404_s8 + $0xa8] sm:$0xff] }
  0x1f   : > { %1252 = vmatprep.mubr.msk.f32.mxu0 %vm614_vm0, %v231_v22  ;;  %1200 = vmatmul.mubr.msk.f32.gmra.mrb[6].mxu1 %vm292_vm1, %v263_v23  ;;  %v278_v52 = vld [vmem:[%s1404_s8 + $0xb0] sm:$0xff]  ;;  %v246_v53 = vld [vmem:[%s1398_s5 + $0xb8] sm:$0xff]  ;;  %v247_v54 = vld [vmem:[%s1398_s5 + $0xc0] sm:$0xff] }
  0x20   : > { %1202 = vmatprep.mubr.msk.f32.mxu1 %vm292_vm1, %v264_v24  ;;  %v279_v55 = vld [vmem:[%s1404_s8 + $0xb8] sm:$0xff]  ;;  %v280_v56 = vld [vmem:[%s1404_s8 + $0xc0] sm:$0xff]  ;;  %v248_v57 = vld [vmem:[%s1398_s5 + $0xc8] sm:$0xff] }
  0x21   : > { %v249_v58 = vld [vmem:[%s1398_s5 + $0xd0] sm:$0xff]  ;;  %v281_v59 = vld [vmem:[%s1404_s8 + $0xc8] sm:$0xff]  ;;  %v250_v61 = vld [vmem:[%s1398_s5 + $0xd8] sm:$0xff] }
  0x22   : > { %1253 = vmatmul.mubr.msk.f32.gmra.mrb[8].mxu0 %vm614_vm0, %v232_v25  ;;  %v282_v60 = vld [vmem:[%s1404_s8 + $0xd0] sm:$0xff]  ;;  %v251_v62 = vld [vmem:[%s1398_s5 + $0xe0] sm:$0xff]  ;;  %v283_v63 = vld [vmem:[%s1404_s8 + $0xd8] sm:$0xff] }
  0x23   : > { %1255 = vmatprep.mubr.msk.f32.mxu0 %vm614_vm0, %v233_v26  ;;  %1203 = vmatmul.mubr.msk.f32.gmra.mrb[8].mxu1 %vm292_vm1, %v265_v27  ;;  %v284_v0 = vld [vmem:[%s1404_s8 + $0xe0] sm:$0xff]  ;;  %v252_v1 = vld [vmem:[%s1398_s5 + $0xe8] sm:$0xff]  ;;  %v253_v2 = vld [vmem:[%s1398_s5 + $0xf0] sm:$0xff] }
  0x24   : > { %1205 = vmatprep.mubr.msk.f32.mxu1 %vm292_vm1, %v266_v28  ;;  %v285_v3 = vld [vmem:[%s1404_s8 + $0xe8] sm:$0xff]  ;;  %v286_v4 = vld [vmem:[%s1404_s8 + $0xf0] sm:$0xff]  ;;  %v254_v5 = vld [vmem:[%s1398_s5 + $0xf8] sm:$0xff] }
  0x25   : > { %v287_v6 = vld [vmem:[%s1404_s8 + $0xf8] sm:$0xff] }
  0x26   : > { %1256 = vmatmul.mubr.msk.f32.gmra.mrb[10].mxu0 %vm614_vm0, %v234_v29 }
  0x27   : > { %1258 = vmatprep.mubr.msk.f32.mxu0 %vm614_vm0, %v235_v30  ;;  %1206 = vmatmul.mubr.msk.f32.gmra.mrb[10].mxu1 %vm292_vm1, %v267_v31 }
  0x28   : > { %1208 = vmatprep.mubr.msk.f32.mxu1 %vm292_vm1, %v268_v32 }
  0x2a   : > { %1259 = vmatmul.mubr.msk.f32.gmra.mrb[12].mxu0 %vm614_vm0, %v236_v33 }
  0x2b   : > { %1261 = vmatprep.mubr.msk.f32.mxu0 %vm614_vm0, %v237_v34  ;;  %1209 = vmatmul.mubr.msk.f32.gmra.mrb[12].mxu1 %vm292_vm1, %v269_v35 }
  0x2c   : > { %1211 = vmatprep.mubr.msk.f32.mxu1 %vm292_vm1, %v270_v36 }
  0x2e   : > { %1262 = vmatmul.mubr.msk.f32.gmra.mrb[14].mxu0 %vm614_vm0, %v238_v37 }
  0x2f   : > { %1264 = vmatprep.mubr.msk.f32.mxu0 %vm614_vm0, %v239_v38  ;;  %1212 = vmatmul.mubr.msk.f32.gmra.mrb[14].mxu1 %vm292_vm1, %v271_v39 }
  0x30   : > { %1214 = vmatprep.mubr.msk.f32.mxu1 %vm292_vm1, %v272_v40 }
  0x32   : > { %1265 = vmatmul.mubr.msk.f32.gmra.mrb[16].mxu0 %vm614_vm0, %v240_v41 }
  0x33   : > { %1267 = vmatprep.mubr.msk.f32.mxu0 %vm614_vm0, %v241_v42  ;;  %1215 = vmatmul.mubr.msk.f32.gmra.mrb[16].mxu1 %vm292_vm1, %v273_v43 }
  0x34   : > { %1217 = vmatprep.mubr.msk.f32.mxu1 %vm292_vm1, %v274_v44 }
  0x36   : > { %1268 = vmatmul.mubr.msk.f32.gmra.mrb[18].mxu0 %vm614_vm0, %v242_v45 }
  0x37   : > { %1270 = vmatprep.mubr.msk.f32.mxu0 %vm614_vm0, %v243_v46  ;;  %1218 = vmatmul.mubr.msk.f32.gmra.mrb[18].mxu1 %vm292_vm1, %v275_v47 }
  0x38   : > { %1220 = vmatprep.mubr.msk.f32.mxu1 %vm292_vm1, %v276_v48 }
  0x3a   : > { %1271 = vmatmul.mubr.msk.f32.gmra.mrb[20].mxu0 %vm614_vm0, %v244_v49 }
  0x3b   : > { %1273 = vmatprep.mubr.msk.f32.mxu0 %vm614_vm0, %v245_v50  ;;  %1221 = vmatmul.mubr.msk.f32.gmra.mrb[20].mxu1 %vm292_vm1, %v277_v51 }
  0x3c   : > { %1223 = vmatprep.mubr.msk.f32.mxu1 %vm292_vm1, %v278_v52 }
  0x3e   : > { %1274 = vmatmul.mubr.msk.f32.gmra.mrb[22].mxu0 %vm614_vm0, %v246_v53 }
  0x3f   : > { %1276 = vmatprep.mubr.msk.f32.mxu0 %vm614_vm0, %v247_v54  ;;  %1224 = vmatmul.mubr.msk.f32.gmra.mrb[22].mxu1 %vm292_vm1, %v279_v55 }
  0x40   : > { %1226 = vmatprep.mubr.msk.f32.mxu1 %vm292_vm1, %v280_v56 }
  0x42   : > { %1277 = vmatmul.mubr.msk.f32.gmra.mrb[24].mxu0 %vm614_vm0, %v248_v57 }
  0x43   : > { %1279 = vmatprep.mubr.msk.f32.mxu0 %vm614_vm0, %v249_v58  ;;  %1227 = vmatmul.mubr.msk.f32.gmra.mrb[24].mxu1 %vm292_vm1, %v281_v59 }
  0x44   : > { %1229 = vmatprep.mubr.msk.f32.mxu1 %vm292_vm1, %v282_v60 }
  0x46   : > { %1280 = vmatmul.mubr.msk.f32.gmra.mrb[26].mxu0 %vm614_vm0, %v250_v61 }
  0x47   : > { %1282 = vmatprep.mubr.msk.f32.mxu0 %vm614_vm0, %v251_v62  ;;  %1230 = vmatmul.mubr.msk.f32.gmra.mrb[26].mxu1 %vm292_vm1, %v283_v63 }
  0x48   : > { %1232 = vmatprep.mubr.msk.f32.mxu1 %vm292_vm1, %v284_v0 }
  0x4a   : > { %1283 = vmatmul.mubr.msk.f32.gmra.mrb[28].mxu0 %vm614_vm0, %v252_v1 }
  0x4b   : > { %1285 = vmatprep.mubr.msk.f32.mxu0 %vm614_vm0, %v253_v2  ;;  %1233 = vmatmul.mubr.msk.f32.gmra.mrb[28].mxu1 %vm292_vm1, %v285_v3 }
  0x4c   : > { %1235 = vmatprep.mubr.msk.f32.mxu1 %vm292_vm1, %v286_v4 }
  0x4e   : > { %1286 = vmatmul.mubr.msk.f32.gmra.mrb[30].mxu0 %vm614_vm0, %v254_v5 }
  0x4f   : > { %1236 = vmatmul.mubr.msk.f32.gmra.mrb[30].mxu1 %vm292_vm1, %v287_v6 }
  0xe5   : > { %v1242_v7 = vpop.f32.mrb[0].mxu0 }
  0xe6   : > { %v777_v8 = vpop.f32.mrb[1].mxu0  ;;  %v1192_v9 = vpop.f32.mrb[0].mxu1 }
  0xe7   : > { %v783_v10 = vadd.f32 %v1242_v7, %v1192_v9  ;;  %v455_v11 = vpop.f32.mrb[1].mxu1 }
  0xe8   : > { %v778_v12 = vadd.f32 %v777_v8, %v455_v11 }
  0xe9   : > { %v1245_v13 = vpop.f32.mrb[2].mxu0  ;;  %937 = vst [vmem:[%s1538_s11 + $0x8] sm:$0xff] %v783_v10 }
  0xea   : > { %v787_v14 = vpop.f32.mrb[3].mxu0  ;;  %936 = vst [vmem:[%s1538_s11] sm:$0xff] %v778_v12  ;;  %v1195_v15 = vpop.f32.mrb[2].mxu1 }
  0xeb   : > { %v793_v16 = vadd.f32 %v1245_v13, %v1195_v15  ;;  %v465_v17 = vpop.f32.mrb[3].mxu1 }
  0xec   : > { %v788_v18 = vadd.f32 %v787_v14, %v465_v17 }
  0xed   : > { %v1248_v19 = vpop.f32.mrb[4].mxu0  ;;  %939 = vst [vmem:[%s1538_s11 + $0x18] sm:$0xff] %v793_v16 }
  0xee   : > { %v797_v20 = vpop.f32.mrb[5].mxu0  ;;  %938 = vst [vmem:[%s1538_s11 + $0x10] sm:$0xff] %v788_v18  ;;  %v1198_v21 = vpop.f32.mrb[4].mxu1 }
  0xef   : > { %v803_v22 = vadd.f32 %v1248_v19, %v1198_v21  ;;  %v475_v23 = vpop.f32.mrb[5].mxu1 }
  0xf0   : > { %v798_v24 = vadd.f32 %v797_v20, %v475_v23 }
  0xf1   : > { %v1251_v25 = vpop.f32.mrb[6].mxu0  ;;  %941 = vst [vmem:[%s1538_s11 + $0x28] sm:$0xff] %v803_v22 }
  0xf2   : > { %v807_v26 = vpop.f32.mrb[7].mxu0  ;;  %940 = vst [vmem:[%s1538_s11 + $0x20] sm:$0xff] %v798_v24  ;;  %v1201_v27 = vpop.f32.mrb[6].mxu1 }
  0xf3   : > { %v813_v28 = vadd.f32 %v1251_v25, %v1201_v27  ;;  %v485_v29 = vpop.f32.mrb[7].mxu1 }
  0xf4   : > { %v808_v30 = vadd.f32 %v807_v26, %v485_v29 }
  0xf5   : > { %v1254_v31 = vpop.f32.mrb[8].mxu0  ;;  %943 = vst [vmem:[%s1538_s11 + $0x38] sm:$0xff] %v813_v28 }
  0xf6   : > { %v817_v32 = vpop.f32.mrb[9].mxu0  ;;  %942 = vst [vmem:[%s1538_s11 + $0x30] sm:$0xff] %v808_v30  ;;  %v1204_v33 = vpop.f32.mrb[8].mxu1 }
  0xf7   : > { %v823_v34 = vadd.f32 %v1254_v31, %v1204_v33  ;;  %v495_v35 = vpop.f32.mrb[9].mxu1 }
  0xf8   : > { %v818_v36 = vadd.f32 %v817_v32, %v495_v35 }
  0xf9   : > { %v1257_v37 = vpop.f32.mrb[10].mxu0  ;;  %945 = vst [vmem:[%s1538_s11 + $0x48] sm:$0xff] %v823_v34 }
  0xfa   : > { %v827_v38 = vpop.f32.mrb[11].mxu0  ;;  %944 = vst [vmem:[%s1538_s11 + $0x40] sm:$0xff] %v818_v36  ;;  %v1207_v39 = vpop.f32.mrb[10].mxu1 }
  0xfb   : > { %v833_v40 = vadd.f32 %v1257_v37, %v1207_v39  ;;  %v505_v41 = vpop.f32.mrb[11].mxu1 }
  0xfc   : > { %v828_v42 = vadd.f32 %v827_v38, %v505_v41 }
  0xfd   : > { %v1260_v43 = vpop.f32.mrb[12].mxu0  ;;  %947 = vst [vmem:[%s1538_s11 + $0x58] sm:$0xff] %v833_v40 }
  0xfe   : > { %v837_v44 = vpop.f32.mrb[13].mxu0  ;;  %946 = vst [vmem:[%s1538_s11 + $0x50] sm:$0xff] %v828_v42  ;;  %v1210_v45 = vpop.f32.mrb[12].mxu1 }
  0xff   : > { %v843_v46 = vadd.f32 %v1260_v43, %v1210_v45  ;;  %v515_v47 = vpop.f32.mrb[13].mxu1 }
 0x100   : > { %v838_v48 = vadd.f32 %v837_v44, %v515_v47 }
 0x101   : > { %v1263_v49 = vpop.f32.mrb[14].mxu0  ;;  %949 = vst [vmem:[%s1538_s11 + $0x68] sm:$0xff] %v843_v46 }
 0x102   : > { %v847_v50 = vpop.f32.mrb[15].mxu0  ;;  %948 = vst [vmem:[%s1538_s11 + $0x60] sm:$0xff] %v838_v48  ;;  %v1213_v51 = vpop.f32.mrb[14].mxu1 }
 0x103   : > { %v853_v52 = vadd.f32 %v1263_v49, %v1213_v51  ;;  %v525_v53 = vpop.f32.mrb[15].mxu1 }
 0x104   : > { %v848_v54 = vadd.f32 %v847_v50, %v525_v53 }
 0x105   : > { %v1266_v55 = vpop.f32.mrb[16].mxu0  ;;  %951 = vst [vmem:[%s1538_s11 + $0x78] sm:$0xff] %v853_v52 }
 0x106   : > { %v857_v56 = vpop.f32.mrb[17].mxu0  ;;  %950 = vst [vmem:[%s1538_s11 + $0x70] sm:$0xff] %v848_v54  ;;  %v1216_v57 = vpop.f32.mrb[16].mxu1 }
 0x107   : > { %v863_v58 = vadd.f32 %v1266_v55, %v1216_v57  ;;  %v535_v59 = vpop.f32.mrb[17].mxu1 }
 0x108   : > { %v858_v60 = vadd.f32 %v857_v56, %v535_v59 }
 0x109   : > { %v1269_v61 = vpop.f32.mrb[18].mxu0  ;;  %953 = vst [vmem:[%s1538_s11 + $0x88] sm:$0xff] %v863_v58 }
 0x10a   : > { %v867_v62 = vpop.f32.mrb[19].mxu0  ;;  %952 = vst [vmem:[%s1538_s11 + $0x80] sm:$0xff] %v858_v60  ;;  %v1219_v63 = vpop.f32.mrb[18].mxu1 }
 0x10b   : > { %v873_v0 = vadd.f32 %v1269_v61, %v1219_v63  ;;  %v545_v1 = vpop.f32.mrb[19].mxu1 }
 0x10c   : > { %v868_v2 = vadd.f32 %v867_v62, %v545_v1 }
 0x10d   : > { %v1272_v3 = vpop.f32.mrb[20].mxu0  ;;  %955 = vst [vmem:[%s1538_s11 + $0x98] sm:$0xff] %v873_v0 }
 0x10e   : > { %v877_v4 = vpop.f32.mrb[21].mxu0  ;;  %954 = vst [vmem:[%s1538_s11 + $0x90] sm:$0xff] %v868_v2  ;;  %v1222_v5 = vpop.f32.mrb[20].mxu1 }
 0x10f   : > { %v883_v6 = vadd.f32 %v1272_v3, %v1222_v5  ;;  %v555_v7 = vpop.f32.mrb[21].mxu1 }
 0x110   : > { %v878_v8 = vadd.f32 %v877_v4, %v555_v7 }
 0x111   : > { %v1275_v9 = vpop.f32.mrb[22].mxu0  ;;  %957 = vst [vmem:[%s1538_s11 + $0xa8] sm:$0xff] %v883_v6 }
 0x112   : > { %v887_v10 = vpop.f32.mrb[23].mxu0  ;;  %956 = vst [vmem:[%s1538_s11 + $0xa0] sm:$0xff] %v878_v8  ;;  %v1225_v11 = vpop.f32.mrb[22].mxu1 }
 0x113   : > { %v893_v12 = vadd.f32 %v1275_v9, %v1225_v11  ;;  %v565_v13 = vpop.f32.mrb[23].mxu1 }
 0x114   : > { %v888_v14 = vadd.f32 %v887_v10, %v565_v13 }
 0x115   : > { %v1278_v15 = vpop.f32.mrb[24].mxu0  ;;  %959 = vst [vmem:[%s1538_s11 + $0xb8] sm:$0xff] %v893_v12 }
 0x116   : > { %v897_v16 = vpop.f32.mrb[25].mxu0  ;;  %958 = vst [vmem:[%s1538_s11 + $0xb0] sm:$0xff] %v888_v14  ;;  %v1228_v17 = vpop.f32.mrb[24].mxu1 }
 0x117   : > { %v903_v18 = vadd.f32 %v1278_v15, %v1228_v17  ;;  %v575_v19 = vpop.f32.mrb[25].mxu1 }
 0x118   : > { %v898_v20 = vadd.f32 %v897_v16, %v575_v19 }
 0x119   : > { %v1281_v21 = vpop.f32.mrb[26].mxu0  ;;  %961 = vst [vmem:[%s1538_s11 + $0xc8] sm:$0xff] %v903_v18 }
 0x11a   : > { %v907_v22 = vpop.f32.mrb[27].mxu0  ;;  %960 = vst [vmem:[%s1538_s11 + $0xc0] sm:$0xff] %v898_v20  ;;  %v1231_v23 = vpop.f32.mrb[26].mxu1 }
 0x11b   : > { %v913_v24 = vadd.f32 %v1281_v21, %v1231_v23  ;;  %v585_v25 = vpop.f32.mrb[27].mxu1 }
 0x11c   : > { %v908_v26 = vadd.f32 %v907_v22, %v585_v25 }
 0x11d   : > { %v1284_v27 = vpop.f32.mrb[28].mxu0  ;;  %963 = vst [vmem:[%s1538_s11 + $0xd8] sm:$0xff] %v913_v24 }
 0x11e   : > { %v917_v28 = vpop.f32.mrb[29].mxu0  ;;  %962 = vst [vmem:[%s1538_s11 + $0xd0] sm:$0xff] %v908_v26  ;;  %v1234_v29 = vpop.f32.mrb[28].mxu1 }
 0x11f   : > { %v923_v30 = vadd.f32 %v1284_v27, %v1234_v29  ;;  %v595_v31 = vpop.f32.mrb[29].mxu1 }
 0x120   : > { %v918_v32 = vadd.f32 %v917_v28, %v595_v31 }
 0x121   : > { %v1287_v33 = vpop.f32.mrb[30].mxu0  ;;  %965 = vst [vmem:[%s1538_s11 + $0xe8] sm:$0xff] %v923_v30 }
 0x122   : > { %v927_v34 = vpop.f32.mrb[31].mxu0  ;;  %964 = vst [vmem:[%s1538_s11 + $0xe0] sm:$0xff] %v918_v32  ;;  %v1237_v35 = vpop.f32.mrb[30].mxu1 }
 0x123   : > { %v933_v36 = vadd.f32 %v1287_v33, %v1237_v35  ;;  %v605_v37 = vpop.f32.mrb[31].mxu1 }
 0x124   : > { %v928_v38 = vadd.f32 %v927_v34, %v605_v37 }
 0x125   : > { %967 = vst [vmem:[%s1538_s11 + $0xf8] sm:$0xff] %v933_v36 }
 0x126   : > { %966 = vst [vmem:[%s1538_s11 + $0xf0] sm:$0xff] %v928_v38 }
 0x127 PF: > { %s14_s15 = sadd.s32 1, %s1342_s15  }
 0x128   : > { %p11_p4 = scmp.ge.s32.totalorder %s14_s15, 4  }
 0x12a   :  { %13 = sbr.rel (!%p11_p4) target bundleno = 1 (0x1), region = 69 }

// kernel: gconv_lstm_cell_from_adj.3
= control target key start
LH: loop header
LB: loop body
LE: loop exit
PB: predicated region body
PF: predicated region fallthrough
CT: control target
= control target key end

     0   :  { %s2697_s15 = smov 0   ;;  %s2699_s16 = smov 0   ;;  %s3893_s0 = inlined_call_operand.vmem [shape: f32[512,512], index: 0, kind: input, shape index: {}]   ;;  %s3894_s1 = inlined_call_operand.vmem [shape: f32[512,128], index: 1, kind: input, shape index: {}]   ;;  %s3895_s2 = inlined_call_operand.vmem [shape: f32[512,32], index: 2, kind: input, shape index: {}]   ;;  %s3896_s3 = inlined_call_operand.vmem [shape: f32[1,128], index: 3, kind: input, shape index: {}]   ;;  %s3897_s4 = inlined_call_operand.vmem [shape: f32[512,64], index: 4, kind: output, shape index: {}]  }
   0x1   :  { %s2701_s17 = smov 0   ;;  %s2703_s18 = smov 0  }
   0x2   :  { %s2705_s19 = smov 0   ;;  %s2707_s20 = smov 0  }
   0x3   :  { %s2709_s21 = smov 0  }
   0x4 LB: > { %s23_s22 = sadd.s32 1, %s2657_s19  ;;  %s26_s23 = sadd.s32 1, %s2661_s20  ;;  %s2665_s21 = sphi %s2709_s21, %s14_s21   ;;  %s2661_s20 = sphi %s2707_s20, %s3928_s20   ;;  %s2657_s19 = sphi %s2705_s19, %s3927_s19   ;;  %s2653_s18 = sphi %s2703_s18, %s3926_s18   ;;  %s2649_s17 = sphi %s2701_s17, %s3925_s17   ;;  %s2645_s16 = sphi %s2699_s16, %s3924_s16   ;;  %s2641_s15 = sphi %s2697_s15, %s3923_s15  }
   0x5   : > { %p24_p0 = scmp.ge.s32.totalorder %s23_s22, 2  ;;  %p42_p1 = scmp.ne.s32.totalorder %s2645_s16, %s2641_s15 }
   0x6   : > { %p43_p2 = scmp.eq.s32.totalorder %s2665_s21, 0  ;;  %s35_s27 = sadd.s32 1, %s2645_s16 }
   0x7   : > { %s3930_s22 = smov (%p24_p0, %s23_s22), 0  ;;  %s3932_s23 = smov (!%p24_p0, %s26_s23), %s2661_s20 }
   0x8   : > { %p44_p3 = por %p43_p2, %p42_p1  ;;  %p28_p4 = scmp.ge.s32.totalorder %s3932_s23, 2 }
   0x9   : > { %s31_s24 = ssub.s32 %s2657_s19, %s3930_s22  ;;  %p2162_p6 = scmp.ge.s32.totalorder %s2665_s21, 4 }
   0xa   : > { %s3934_s23 = smov (%p28_p4, %s3932_s23), 0 }
   0xb   : > { %s30_s25 = ssub.s32 %s2661_s20, %s3934_s23  ;;  %170 = sbr.rel (%p2162_p6) target bundleno = 57 (0x39), region = 20 }
   0xc   : > { %s32_s26 = sor.u32 %s31_s24, %s30_s25 }
   0xd   : > { %p33_p5 = scmp.eq.s32.totalorder %s32_s26, 0 }
   0xf   : > { %s2748_s28 = scalar_select %p33_p5, %s2645_s16, %s35_s27  }
  0x12   : > { %173 = sbr.rel (!%p44_p3) target bundleno = 57 (0x39), region = 24  ;;  %s175_s29 = sand.u32 (%p44_p3), 1, %s2645_s16  }
  0x13   : > { %s2165_s30 = sshll.u32 (%p44_p3), %s2657_s19, 1  ;;  %s2163_s5 = sshll.u32 (%p44_p3), %s175_s29, 9 }
  0x14   : > { %s2213_s6 = sshll.u32 (%p44_p3), %s2661_s20, 7  ;;  %s2762_s12 = scalar_lea.vmem (%p44_p3), [#allocation3], %s2163_s5 }
  0x15   : > { %s181_s7 = sadd.s32 (%p44_p3), %s2213_s6, %s2165_s30 }
  0x16   : > { %s2167_s8 = sshll.u32 (%p44_p3), %s181_s7, 3 }
  0x17   : > { %s2757_s11 = scalar_lea.vmem (%p44_p3), %s3893_s0, %s2167_s8 }
  0x18   : > { %v196_v0 = vld [vmem:[%s2757_s11] sm:$0xff] (%p44_p3)  ;;  %v198_v1 = vld [vmem:[%s2757_s11 + $0x8] sm:$0xff] (%p44_p3) }
  0x19   : > { %v200_v2 = vld [vmem:[%s2757_s11 + $0x20] sm:$0xff]  ;;  %197 = vst [vmem:[%s2762_s12] sm:$0xff] %v196_v0  ;;  %199 = vst [vmem:[%s2762_s12 + $0x8] sm:$0xff] %v198_v1  ;;  %v202_v3 = vld [vmem:[%s2757_s11 + $0x28] sm:$0xff] }
  0x1a   : > { %201 = vst [vmem:[%s2762_s12 + $0x10] sm:$0xff] %v200_v2  ;;  %v204_v4 = vld [vmem:[%s2757_s11 + $0x40] sm:$0xff]  ;;  %v206_v5 = vld [vmem:[%s2757_s11 + $0x48] sm:$0xff]  ;;  %203 = vst [vmem:[%s2762_s12 + $0x18] sm:$0xff] %v202_v3 }
  0x1b   : > { %205 = vst [vmem:[%s2762_s12 + $0x20] sm:$0xff] %v204_v4  ;;  %207 = vst [vmem:[%s2762_s12 + $0x28] sm:$0xff] %v206_v5  ;;  %v208_v6 = vld [vmem:[%s2757_s11 + $0x60] sm:$0xff]  ;;  %v210_v7 = vld [vmem:[%s2757_s11 + $0x68] sm:$0xff] }
  0x1c   : > { %v212_v8 = vld [vmem:[%s2757_s11 + $0x80] sm:$0xff]  ;;  %209 = vst [vmem:[%s2762_s12 + $0x30] sm:$0xff] %v208_v6  ;;  %211 = vst [vmem:[%s2762_s12 + $0x38] sm:$0xff] %v210_v7  ;;  %v214_v9 = vld [vmem:[%s2757_s11 + $0x88] sm:$0xff] }
  0x1d   : > { %213 = vst [vmem:[%s2762_s12 + $0x40] sm:$0xff] %v212_v8  ;;  %v216_v10 = vld [vmem:[%s2757_s11 + $0xa0] sm:$0xff]  ;;  %v218_v11 = vld [vmem:[%s2757_s11 + $0xa8] sm:$0xff]  ;;  %215 = vst [vmem:[%s2762_s12 + $0x48] sm:$0xff] %v214_v9 }
  0x1e   : > { %217 = vst [vmem:[%s2762_s12 + $0x50] sm:$0xff] %v216_v10  ;;  %219 = vst [vmem:[%s2762_s12 + $0x58] sm:$0xff] %v218_v11  ;;  %v220_v12 = vld [vmem:[%s2757_s11 + $0xc0] sm:$0xff]  ;;  %v222_v13 = vld [vmem:[%s2757_s11 + $0xc8] sm:$0xff] }
  0x1f   : > { %v224_v14 = vld [vmem:[%s2757_s11 + $0xe0] sm:$0xff]  ;;  %221 = vst [vmem:[%s2762_s12 + $0x60] sm:$0xff] %v220_v12  ;;  %223 = vst [vmem:[%s2762_s12 + $0x68] sm:$0xff] %v222_v13  ;;  %v226_v15 = vld [vmem:[%s2757_s11 + $0xe8] sm:$0xff] }
  0x20   : > { %225 = vst [vmem:[%s2762_s12 + $0x70] sm:$0xff] %v224_v14  ;;  %v228_v16 = vld [vmem:[%s2757_s11 + $0x100] sm:$0xff]  ;;  %v230_v17 = vld [vmem:[%s2757_s11 + $0x108] sm:$0xff]  ;;  %227 = vst [vmem:[%s2762_s12 + $0x78] sm:$0xff] %v226_v15 }
  0x21   : > { %229 = vst [vmem:[%s2762_s12 + $0x80] sm:$0xff] %v228_v16  ;;  %231 = vst [vmem:[%s2762_s12 + $0x88] sm:$0xff] %v230_v17  ;;  %v232_v18 = vld [vmem:[%s2757_s11 + $0x120] sm:$0xff]  ;;  %v234_v19 = vld [vmem:[%s2757_s11 + $0x128] sm:$0xff] }
  0x22   : > { %v236_v20 = vld [vmem:[%s2757_s11 + $0x140] sm:$0xff]  ;;  %233 = vst [vmem:[%s2762_s12 + $0x90] sm:$0xff] %v232_v18  ;;  %235 = vst [vmem:[%s2762_s12 + $0x98] sm:$0xff] %v234_v19  ;;  %v238_v21 = vld [vmem:[%s2757_s11 + $0x148] sm:$0xff] }
  0x23   : > { %237 = vst [vmem:[%s2762_s12 + $0xa0] sm:$0xff] %v236_v20  ;;  %v240_v22 = vld [vmem:[%s2757_s11 + $0x160] sm:$0xff]  ;;  %v242_v23 = vld [vmem:[%s2757_s11 + $0x168] sm:$0xff]  ;;  %239 = vst [vmem:[%s2762_s12 + $0xa8] sm:$0xff] %v238_v21 }
  0x24   : > { %241 = vst [vmem:[%s2762_s12 + $0xb0] sm:$0xff] %v240_v22  ;;  %243 = vst [vmem:[%s2762_s12 + $0xb8] sm:$0xff] %v242_v23  ;;  %v244_v24 = vld [vmem:[%s2757_s11 + $0x180] sm:$0xff]  ;;  %v246_v25 = vld [vmem:[%s2757_s11 + $0x188] sm:$0xff] }
  0x25   : > { %v248_v26 = vld [vmem:[%s2757_s11 + $0x1a0] sm:$0xff]  ;;  %245 = vst [vmem:[%s2762_s12 + $0xc0] sm:$0xff] %v244_v24  ;;  %247 = vst [vmem:[%s2762_s12 + $0xc8] sm:$0xff] %v246_v25  ;;  %v250_v27 = vld [vmem:[%s2757_s11 + $0x1a8] sm:$0xff] }
  0x26   : > { %249 = vst [vmem:[%s2762_s12 + $0xd0] sm:$0xff] %v248_v26  ;;  %v252_v28 = vld [vmem:[%s2757_s11 + $0x1c0] sm:$0xff]  ;;  %v254_v29 = vld [vmem:[%s2757_s11 + $0x1c8] sm:$0xff]  ;;  %251 = vst [vmem:[%s2762_s12 + $0xd8] sm:$0xff] %v250_v27 }
  0x27   : > { %253 = vst [vmem:[%s2762_s12 + $0xe0] sm:$0xff] %v252_v28  ;;  %255 = vst [vmem:[%s2762_s12 + $0xe8] sm:$0xff] %v254_v29  ;;  %v256_v30 = vld [vmem:[%s2757_s11 + $0x1e0] sm:$0xff]  ;;  %v258_v31 = vld [vmem:[%s2757_s11 + $0x1e8] sm:$0xff] }
  0x28   : > { %v260_v32 = vld [vmem:[%s2757_s11 + $0x200] sm:$0xff]  ;;  %257 = vst [vmem:[%s2762_s12 + $0xf0] sm:$0xff] %v256_v30  ;;  %259 = vst [vmem:[%s2762_s12 + $0xf8] sm:$0xff] %v258_v31  ;;  %v262_v33 = vld [vmem:[%s2757_s11 + $0x208] sm:$0xff] }
  0x29   : > { %261 = vst [vmem:[%s2762_s12 + $0x100] sm:$0xff] %v260_v32  ;;  %v264_v34 = vld [vmem:[%s2757_s11 + $0x220] sm:$0xff]  ;;  %v266_v35 = vld [vmem:[%s2757_s11 + $0x228] sm:$0xff]  ;;  %263 = vst [vmem:[%s2762_s12 + $0x108] sm:$0xff] %v262_v33 }
  0x2a   : > { %265 = vst [vmem:[%s2762_s12 + $0x110] sm:$0xff] %v264_v34  ;;  %267 = vst [vmem:[%s2762_s12 + $0x118] sm:$0xff] %v266_v35  ;;  %v268_v36 = vld [vmem:[%s2757_s11 + $0x240] sm:$0xff]  ;;  %v270_v37 = vld [vmem:[%s2757_s11 + $0x248] sm:$0xff] }
  0x2b   : > { %v272_v38 = vld [vmem:[%s2757_s11 + $0x260] sm:$0xff]  ;;  %269 = vst [vmem:[%s2762_s12 + $0x120] sm:$0xff] %v268_v36  ;;  %271 = vst [vmem:[%s2762_s12 + $0x128] sm:$0xff] %v270_v37  ;;  %v274_v39 = vld [vmem:[%s2757_s11 + $0x268] sm:$0xff] }
  0x2c   : > { %273 = vst [vmem:[%s2762_s12 + $0x130] sm:$0xff] %v272_v38  ;;  %v276_v40 = vld [vmem:[%s2757_s11 + $0x280] sm:$0xff]  ;;  %v278_v41 = vld [vmem:[%s2757_s11 + $0x288] sm:$0xff]  ;;  %275 = vst [vmem:[%s2762_s12 + $0x138] sm:$0xff] %v274_v39 }
  0x2d   : > { %277 = vst [vmem:[%s2762_s12 + $0x140] sm:$0xff] %v276_v40  ;;  %279 = vst [vmem:[%s2762_s12 + $0x148] sm:$0xff] %v278_v41  ;;  %v280_v42 = vld [vmem:[%s2757_s11 + $0x2a0] sm:$0xff]  ;;  %v282_v43 = vld [vmem:[%s2757_s11 + $0x2a8] sm:$0xff] }
  0x2e   : > { %v284_v44 = vld [vmem:[%s2757_s11 + $0x2c0] sm:$0xff]  ;;  %281 = vst [vmem:[%s2762_s12 + $0x150] sm:$0xff] %v280_v42  ;;  %283 = vst [vmem:[%s2762_s12 + $0x158] sm:$0xff] %v282_v43  ;;  %v286_v45 = vld [vmem:[%s2757_s11 + $0x2c8] sm:$0xff] }
  0x2f   : > { %285 = vst [vmem:[%s2762_s12 + $0x160] sm:$0xff] %v284_v44  ;;  %v288_v46 = vld [vmem:[%s2757_s11 + $0x2e0] sm:$0xff]  ;;  %v290_v47 = vld [vmem:[%s2757_s11 + $0x2e8] sm:$0xff]  ;;  %287 = vst [vmem:[%s2762_s12 + $0x168] sm:$0xff] %v286_v45 }
  0x30   : > { %289 = vst [vmem:[%s2762_s12 + $0x170] sm:$0xff] %v288_v46  ;;  %291 = vst [vmem:[%s2762_s12 + $0x178] sm:$0xff] %v290_v47  ;;  %v292_v48 = vld [vmem:[%s2757_s11 + $0x300] sm:$0xff]  ;;  %v294_v49 = vld [vmem:[%s2757_s11 + $0x308] sm:$0xff] }
  0x31   : > { %v296_v50 = vld [vmem:[%s2757_s11 + $0x320] sm:$0xff]  ;;  %293 = vst [vmem:[%s2762_s12 + $0x180] sm:$0xff] %v292_v48  ;;  %295 = vst [vmem:[%s2762_s12 + $0x188] sm:$0xff] %v294_v49  ;;  %v298_v51 = vld [vmem:[%s2757_s11 + $0x328] sm:$0xff] }
  0x32   : > { %297 = vst [vmem:[%s2762_s12 + $0x190] sm:$0xff] %v296_v50  ;;  %v300_v52 = vld [vmem:[%s2757_s11 + $0x340] sm:$0xff]  ;;  %v302_v53 = vld [vmem:[%s2757_s11 + $0x348] sm:$0xff]  ;;  %299 = vst [vmem:[%s2762_s12 + $0x198] sm:$0xff] %v298_v51 }
  0x33   : > { %301 = vst [vmem:[%s2762_s12 + $0x1a0] sm:$0xff] %v300_v52  ;;  %303 = vst [vmem:[%s2762_s12 + $0x1a8] sm:$0xff] %v302_v53  ;;  %v304_v54 = vld [vmem:[%s2757_s11 + $0x360] sm:$0xff]  ;;  %v306_v55 = vld [vmem:[%s2757_s11 + $0x368] sm:$0xff] }
  0x34   : > { %v308_v56 = vld [vmem:[%s2757_s11 + $0x380] sm:$0xff]  ;;  %305 = vst [vmem:[%s2762_s12 + $0x1b0] sm:$0xff] %v304_v54  ;;  %307 = vst [vmem:[%s2762_s12 + $0x1b8] sm:$0xff] %v306_v55  ;;  %v310_v57 = vld [vmem:[%s2757_s11 + $0x388] sm:$0xff] }
  0x35   : > { %309 = vst [vmem:[%s2762_s12 + $0x1c0] sm:$0xff] %v308_v56  ;;  %v312_v58 = vld [vmem:[%s2757_s11 + $0x3a0] sm:$0xff]  ;;  %v314_v59 = vld [vmem:[%s2757_s11 + $0x3a8] sm:$0xff]  ;;  %311 = vst [vmem:[%s2762_s12 + $0x1c8] sm:$0xff] %v310_v57 }
  0x36   : > { %313 = vst [vmem:[%s2762_s12 + $0x1d0] sm:$0xff] %v312_v58  ;;  %315 = vst [vmem:[%s2762_s12 + $0x1d8] sm:$0xff] %v314_v59  ;;  %v316_v60 = vld [vmem:[%s2757_s11 + $0x3c0] sm:$0xff]  ;;  %v318_v61 = vld [vmem:[%s2757_s11 + $0x3c8] sm:$0xff] }
  0x37   : > { %v320_v62 = vld [vmem:[%s2757_s11 + $0x3e0] sm:$0xff]  ;;  %317 = vst [vmem:[%s2762_s12 + $0x1e0] sm:$0xff] %v316_v60  ;;  %319 = vst [vmem:[%s2762_s12 + $0x1e8] sm:$0xff] %v318_v61  ;;  %v322_v63 = vld [vmem:[%s2757_s11 + $0x3e8] sm:$0xff] }
  0x38   : > { %321 = vst [vmem:[%s2762_s12 + $0x1f0] sm:$0xff] %v320_v62  ;;  %323 = vst [vmem:[%s2762_s12 + $0x1f8] sm:$0xff] %v322_v63 }
  0x39 PF: > { %p2168_p7 = scmp.ge.s32.totalorder %s2665_s21, 1  ;;  %p346_p8 = scmp.lt.s32.totalorder %s2665_s21, 5 }
  0x3b   : > { %p347_p9 = pnand %p2168_p7, %p346_p8 }
  0x3c   : > { %s353_s13 = sand.u32 (!%p347_p9), 1, %s2641_s15   ;;  %s2170_s14 = sshll.u32 (!%p347_p9), %s2649_s17, 5 }
  0x3d   : > { %350 = sbr.rel (%p347_p9) target bundleno = 1038 (0x40e), region = 55  ;;  %s2169_s24 = sshll.u32 (!%p347_p9), %s353_s13, 9 }
  0x3e   : > { %p391_p10 = scmp.lt.s32.totalorder (!%p347_p9), %s2170_s14, 63  ;;  %s2172_s25 = sshll.u32 (!%p347_p9), %s2653_s18, 5 }
  0x3f   : > { %p397_p11 = scmp.lt.s32.totalorder (!%p347_p9), %s2172_s25, 63  ;;  %s2909_s18 = scalar_lea.vmem (!%p347_p9), [#allocation3], %s2169_s24 }
  0x40   : > { %p2176_p12 = scmp.ne.s32.totalorder (!%p347_p9), %s2649_s17, 0 }
  0x44   : > { %s3936_s14 = smov (!%p391_p10, %s2170_s14), 63  ;;  %s3938_s25 = smov (!%p397_p11, %s2172_s25), 63 }
  0x45   : > { %s2171_s26 = sshll.u32 %s3936_s14, 3  ;;  %s2173_s5 = sshll.u32 %s3938_s25, 3  ;;  %v2667_v0 = vmov (!%p2176_p12), 0.0  }
  0x46   : > { %s2897_s30 = scalar_lea.vmem %s3894_s1, %s2171_s26  ;;  %s2902_s8 = scalar_lea.vmem %s3895_s2, %s2173_s5  ;;  %412 = vst [vmem:[#allocation2] sm:$0xff] (!%p2176_p12), %v2667_v0  ;;  %413 = vst [vmem:[#allocation2 + $0x8] sm:$0xff] (!%p2176_p12), %v2667_v0 }
  0x47   : > { %s2907_s10 = scalar_lea.vmem %s3897_s4, %s2173_s5  ;;  %411 = sbr.rel (%p2176_p12) target bundleno = 86 (0x56), region = 63  ;;  %414 = vst [vmem:[#allocation2 + $0x10] sm:$0xff] (!%p2176_p12), %v2667_v0  ;;  %415 = vst [vmem:[#allocation2 + $0x18] sm:$0xff] (!%p2176_p12), %v2667_v0 }
  0x48   : > { %416 = vst [vmem:[#allocation2 + $0x20] sm:$0xff] (!%p2176_p12), %v2667_v0  ;;  %417 = vst [vmem:[#allocation2 + $0x28] sm:$0xff] (!%p2176_p12), %v2667_v0 }
  0x49   : > { %418 = vst [vmem:[#allocation2 + $0x30] sm:$0xff] (!%p2176_p12), %v2667_v0  ;;  %419 = vst [vmem:[#allocation2 + $0x38] sm:$0xff] (!%p2176_p12), %v2667_v0 }
  0x4a   : > { %420 = vst [vmem:[#allocation2 + $0x40] sm:$0xff] (!%p2176_p12), %v2667_v0  ;;  %421 = vst [vmem:[#allocation2 + $0x48] sm:$0xff] (!%p2176_p12), %v2667_v0 }
  0x4b   : > { %422 = vst [vmem:[#allocation2 + $0x50] sm:$0xff] (!%p2176_p12), %v2667_v0  ;;  %423 = vst [vmem:[#allocation2 + $0x58] sm:$0xff] (!%p2176_p12), %v2667_v0 }
  0x4c   : > { %424 = vst [vmem:[#allocation2 + $0x60] sm:$0xff] (!%p2176_p12), %v2667_v0  ;;  %425 = vst [vmem:[#allocation2 + $0x68] sm:$0xff] (!%p2176_p12), %v2667_v0 }
  0x4d   : > { %426 = vst [vmem:[#allocation2 + $0x70] sm:$0xff] (!%p2176_p12), %v2667_v0  ;;  %427 = vst [vmem:[#allocation2 + $0x78] sm:$0xff] (!%p2176_p12), %v2667_v0 }
  0x4e   : > { %428 = vst [vmem:[#allocation2 + $0x80] sm:$0xff] %v2667_v0  ;;  %429 = vst [vmem:[#allocation2 + $0x88] sm:$0xff] %v2667_v0 }
  0x4f   : > { %430 = vst [vmem:[#allocation2 + $0x90] sm:$0xff] %v2667_v0  ;;  %431 = vst [vmem:[#allocation2 + $0x98] sm:$0xff] %v2667_v0 }
  0x50   : > { %432 = vst [vmem:[#allocation2 + $0xa0] sm:$0xff] %v2667_v0  ;;  %433 = vst [vmem:[#allocation2 + $0xa8] sm:$0xff] %v2667_v0 }
  0x51   : > { %434 = vst [vmem:[#allocation2 + $0xb0] sm:$0xff] %v2667_v0  ;;  %435 = vst [vmem:[#allocation2 + $0xb8] sm:$0xff] %v2667_v0 }
  0x52   : > { %436 = vst [vmem:[#allocation2 + $0xc0] sm:$0xff] %v2667_v0  ;;  %437 = vst [vmem:[#allocation2 + $0xc8] sm:$0xff] %v2667_v0 }
  0x53   : > { %438 = vst [vmem:[#allocation2 + $0xd0] sm:$0xff] %v2667_v0  ;;  %439 = vst [vmem:[#allocation2 + $0xd8] sm:$0xff] %v2667_v0 }
  0x54   : > { %440 = vst [vmem:[#allocation2 + $0xe0] sm:$0xff] %v2667_v0  ;;  %441 = vst [vmem:[#allocation2 + $0xe8] sm:$0xff] %v2667_v0 }
  0x55   : > { %442 = vst [vmem:[#allocation2 + $0xf0] sm:$0xff] %v2667_v0  ;;  %443 = vst [vmem:[#allocation2 + $0xf8] sm:$0xff] %v2667_v0 }
  0x56 PF: > { %v540_v1 = vld [vmem:[%s2897_s30] sm:$0xff]  ;;  %v541_v2 = vld [vmem:[%s2897_s30 + $0x8] sm:$0xff]  ;;  %v542_v3 = vld [vmem:[%s2897_s30 + $0x10] sm:$0xff]  ;;  %v2668_v4 = vmov 0.0|0.0   ;;  %p2177_p13 = scmp.ne.s32.totalorder %s2649_s17, 1 }
  0x57   : > { %2214 = vmatprep.subr.bf16.mxu0 %v2668_v4  ;;  %2262 = vmatprep.subr.bf16.mxu1 %v2668_v4  ;;  %v2215_v5 = vpack.c.bf16 %v541_v2, %v540_v1  ;;  %v543_v6 = vld [vmem:[%s2897_s30 + $0x18] sm:$0xff]  ;;  %v544_v8 = vld [vmem:[%s2897_s30 + $0x20] sm:$0xff]  ;;  %v545_v9 = vld [vmem:[%s2897_s30 + $0x28] sm:$0xff] }
  0x58   : > { %v2218_v7 = vpack.c.bf16 %v543_v6, %v542_v3  ;;  %v2221_v10 = vpack.c.bf16 %v545_v9, %v544_v8  ;;  %v546_v11 = vld [vmem:[%s2897_s30 + $0x30] sm:$0xff]  ;;  %v547_v12 = vld [vmem:[%s2897_s30 + $0x38] sm:$0xff]  ;;  %v477_v13 = vld [vmem:[%s2909_s18 + $0x8] sm:$0xff] }
  0x59   : > { %2216 = vmatpush1.bf16.msra.mxu0 %v2215_v5  ;;  %2278 = vmatpush1.bf16.msra.mxu1 %v2215_v5  ;;  %v2224_v14 = vpack.c.bf16 %v547_v12, %v546_v11  ;;  %v509_v15 = vld [vmem:[%s2909_s18 + $0x108] sm:$0xff]  ;;  %v548_v16 = vld [vmem:[%s2897_s30 + $0x40] sm:$0xff]  ;;  %v550_v19 = vld [vmem:[%s2897_s30 + $0x50] sm:$0xff] }
  0x5a   : > { %2217 = vmatprep.subr.bf16.mxu0 %v2668_v4  ;;  %2263 = vmatprep.subr.bf16.mxu1 %v2668_v4  ;;  %v549_v17 = vld [vmem:[%s2897_s30 + $0x48] sm:$0xff]  ;;  %v551_v20 = vld [vmem:[%s2897_s30 + $0x58] sm:$0xff]  ;;  %v552_v22 = vld [vmem:[%s2897_s30 + $0x60] sm:$0xff] }
  0x5b   : > { %636 = vmatprep.mubr.f32.mxu0 %v477_v13  ;;  %716 = vmatprep.mubr.f32.mxu1 %v509_v15  ;;  %v2227_v18 = vpack.c.bf16 %v549_v17, %v548_v16  ;;  %v2230_v21 = vpack.c.bf16 %v551_v20, %v550_v19  ;;  %v553_v23 = vld [vmem:[%s2897_s30 + $0x68] sm:$0xff]  ;;  %v554_v25 = vld [vmem:[%s2897_s30 + $0x70] sm:$0xff]  ;;  %v555_v26 = vld [vmem:[%s2897_s30 + $0x78] sm:$0xff] }
  0x5c   : > { %v2233_v24 = vpack.c.bf16 %v553_v23, %v552_v22  ;;  %v2236_v27 = vpack.c.bf16 %v555_v26, %v554_v25  ;;  %v556_v28 = vld [vmem:[%s2897_s30 + $0x80] sm:$0xff]  ;;  %v557_v29 = vld [vmem:[%s2897_s30 + $0x88] sm:$0xff]  ;;  %v558_v31 = vld [vmem:[%s2897_s30 + $0x90] sm:$0xff] }
  0x5d   : > { %2219 = vmatpush1.bf16.msra.mxu0 %v2218_v7  ;;  %2279 = vmatpush1.bf16.msra.mxu1 %v2218_v7  ;;  %v2239_v30 = vpack.c.bf16 %v557_v29, %v556_v28  ;;  %v559_v32 = vld [vmem:[%s2897_s30 + $0x98] sm:$0xff]  ;;  %v560_v34 = vld [vmem:[%s2897_s30 + $0xa0] sm:$0xff]  ;;  %v561_v35 = vld [vmem:[%s2897_s30 + $0xa8] sm:$0xff] }
  0x5e   : > { %2220 = vmatprep.subr.bf16.mxu0 %v2668_v4  ;;  %2264 = vmatprep.subr.bf16.mxu1 %v2668_v4  ;;  %v2242_v33 = vpack.c.bf16 %v559_v32, %v558_v31  ;;  %v2245_v36 = vpack.c.bf16 %v561_v35, %v560_v34  ;;  %v562_v37 = vld [vmem:[%s2897_s30 + $0xb0] sm:$0xff]  ;;  %v563_v38 = vld [vmem:[%s2897_s30 + $0xb8] sm:$0xff]  ;;  %v564_v40 = vld [vmem:[%s2897_s30 + $0xc0] sm:$0xff] }
  0x5f   : > { %v2248_v39 = vpack.c.bf16 %v563_v38, %v562_v37  ;;  %v565_v41 = vld [vmem:[%s2897_s30 + $0xc8] sm:$0xff]  ;;  %v566_v43 = vld [vmem:[%s2897_s30 + $0xd0] sm:$0xff]  ;;  %v567_v44 = vld [vmem:[%s2897_s30 + $0xd8] sm:$0xff] }
  0x60   : > { %v2251_v42 = vpack.c.bf16 %v565_v41, %v564_v40  ;;  %v2254_v45 = vpack.c.bf16 %v567_v44, %v566_v43  ;;  %v568_v46 = vld [vmem:[%s2897_s30 + $0xe0] sm:$0xff]  ;;  %v569_v47 = vld [vmem:[%s2897_s30 + $0xe8] sm:$0xff]  ;;  %v570_v49 = vld [vmem:[%s2897_s30 + $0xf0] sm:$0xff] }
  0x61   : > { %2222 = vmatpush1.bf16.msra.mxu0 %v2221_v10  ;;  %2280 = vmatpush1.bf16.msra.mxu1 %v2221_v10  ;;  %v2257_v48 = vpack.c.bf16 %v569_v47, %v568_v46  ;;  %v571_v50 = vld [vmem:[%s2897_s30 + $0xf8] sm:$0xff]  ;;  %v476_v52 = vld [vmem:[%s2909_s18] sm:$0xff]  ;;  %v478_v56 = vld [vmem:[%s2909_s18 + $0x10] sm:$0xff] }
  0x62   : > { %2223 = vmatprep.subr.bf16.mxu0 %v2668_v4  ;;  %2265 = vmatprep.subr.bf16.mxu1 %v2668_v4  ;;  %v2260_v51 = vpack.c.bf16 %v571_v50, %v570_v49  ;;  %v508_v53 = vld [vmem:[%s2909_s18 + $0x100] sm:$0xff]  ;;  %v479_v54 = vld [vmem:[%s2909_s18 + $0x18] sm:$0xff]  ;;  %v510_v57 = vld [vmem:[%s2909_s18 + $0x110] sm:$0xff] }
  0x63   : > { %v511_v55 = vld [vmem:[%s2909_s18 + $0x118] sm:$0xff]  ;;  %v481_v58 = vld [vmem:[%s2909_s18 + $0x28] sm:$0xff]  ;;  %v480_v60 = vld [vmem:[%s2909_s18 + $0x20] sm:$0xff] }
  0x64   : > { %v513_v59 = vld [vmem:[%s2909_s18 + $0x128] sm:$0xff]  ;;  %v512_v61 = vld [vmem:[%s2909_s18 + $0x120] sm:$0xff]  ;;  %v483_v62 = vld [vmem:[%s2909_s18 + $0x38] sm:$0xff] }
  0x65   : > { %2225 = vmatpush1.bf16.msra.mxu0 %v2224_v14  ;;  %2281 = vmatpush1.bf16.msra.mxu1 %v2224_v14  ;;  %v515_v63 = vld [vmem:[%s2909_s18 + $0x138] sm:$0xff]  ;;  %v482_v0 = vld [vmem:[%s2909_s18 + $0x30] sm:$0xff]  ;;  %v485_v2 = vld [vmem:[%s2909_s18 + $0x48] sm:$0xff] }
  0x66   : > { %2226 = vmatprep.subr.bf16.mxu0 %v2668_v4  ;;  %2266 = vmatprep.subr.bf16.mxu1 %v2668_v4  ;;  %v514_v1 = vld [vmem:[%s2909_s18 + $0x130] sm:$0xff]  ;;  %v517_v3 = vld [vmem:[%s2909_s18 + $0x148] sm:$0xff]  ;;  %v516_v5 = vld [vmem:[%s2909_s18 + $0x140] sm:$0xff] }
  0x67   : > { %v487_v6 = vld [vmem:[%s2909_s18 + $0x58] sm:$0xff]  ;;  %v486_v8 = vld [vmem:[%s2909_s18 + $0x50] sm:$0xff]  ;;  %v489_v10 = vld [vmem:[%s2909_s18 + $0x68] sm:$0xff] }
  0x68   : > { %v519_v7 = vld [vmem:[%s2909_s18 + $0x158] sm:$0xff]  ;;  %v518_v9 = vld [vmem:[%s2909_s18 + $0x150] sm:$0xff]  ;;  %v521_v11 = vld [vmem:[%s2909_s18 + $0x168] sm:$0xff] }
  0x69   : > { %2228 = vmatpush1.bf16.msra.mxu0 %v2227_v18  ;;  %2282 = vmatpush1.bf16.msra.mxu1 %v2227_v18  ;;  %v488_v12 = vld [vmem:[%s2909_s18 + $0x60] sm:$0xff]  ;;  %v491_v14 = vld [vmem:[%s2909_s18 + $0x78] sm:$0xff]  ;;  %v490_v16 = vld [vmem:[%s2909_s18 + $0x70] sm:$0xff] }
  0x6a   : > { %2229 = vmatprep.subr.bf16.mxu0 %v2668_v4  ;;  %2267 = vmatprep.subr.bf16.mxu1 %v2668_v4  ;;  %v520_v13 = vld [vmem:[%s2909_s18 + $0x160] sm:$0xff]  ;;  %v523_v15 = vld [vmem:[%s2909_s18 + $0x178] sm:$0xff]  ;;  %v522_v17 = vld [vmem:[%s2909_s18 + $0x170] sm:$0xff] }
  0x6b   : > { %v493_v18 = vld [vmem:[%s2909_s18 + $0x88] sm:$0xff]  ;;  %v492_v20 = vld [vmem:[%s2909_s18 + $0x80] sm:$0xff]  ;;  %v495_v22 = vld [vmem:[%s2909_s18 + $0x98] sm:$0xff] }
  0x6c   : > { %v525_v19 = vld [vmem:[%s2909_s18 + $0x188] sm:$0xff]  ;;  %v527_v23 = vld [vmem:[%s2909_s18 + $0x198] sm:$0xff]  ;;  %v526_v25 = vld [vmem:[%s2909_s18 + $0x190] sm:$0xff] }
  0x6d   : > { %2231 = vmatpush1.bf16.msra.mxu0 %v2230_v21  ;;  %2283 = vmatpush1.bf16.msra.mxu1 %v2230_v21  ;;  %v524_v21 = vld [vmem:[%s2909_s18 + $0x180] sm:$0xff]  ;;  %v497_v26 = vld [vmem:[%s2909_s18 + $0xa8] sm:$0xff]  ;;  %v531_v31 = vld [vmem:[%s2909_s18 + $0x1b8] sm:$0xff] }
  0x6e   : > { %2232 = vmatprep.subr.bf16.mxu0 %v2668_v4  ;;  %2268 = vmatprep.subr.bf16.mxu1 %v2668_v4  ;;  %v496_v28 = vld [vmem:[%s2909_s18 + $0xa0] sm:$0xff]  ;;  %v498_v32 = vld [vmem:[%s2909_s18 + $0xb0] sm:$0xff]  ;;  %v501_v34 = vld [vmem:[%s2909_s18 + $0xc8] sm:$0xff] }
  0x6f   : > { %v528_v29 = vld [vmem:[%s2909_s18 + $0x1a0] sm:$0xff]  ;;  %v533_v35 = vld [vmem:[%s2909_s18 + $0x1c8] sm:$0xff]  ;;  %v503_v38 = vld [vmem:[%s2909_s18 + $0xd8] sm:$0xff] }
  0x70   : > { %v532_v37 = vld [vmem:[%s2909_s18 + $0x1c0] sm:$0xff]  ;;  %v502_v40 = vld [vmem:[%s2909_s18 + $0xd0] sm:$0xff]  ;;  %v537_v43 = vld [vmem:[%s2909_s18 + $0x1e8] sm:$0xff] }
  0x71   : > { %2234 = vmatpush1.bf16.msra.mxu0 %v2233_v24  ;;  %2284 = vmatpush1.bf16.msra.mxu1 %v2233_v24  ;;  %v494_v24 = vld [vmem:[%s2909_s18 + $0x90] sm:$0xff]  ;;  %v504_v44 = vld [vmem:[%s2909_s18 + $0xe0] sm:$0xff]  ;;  %v507_v46 = vld [vmem:[%s2909_s18 + $0xf8] sm:$0xff] }
  0x72   : > { %2235 = vmatprep.subr.bf16.mxu0 %v2668_v4  ;;  %2269 = vmatprep.subr.bf16.mxu1 %v2668_v4  ;;  %v534_v41 = vld [vmem:[%s2909_s18 + $0x1d0] sm:$0xff]  ;;  %v539_v47 = vld [vmem:[%s2909_s18 + $0x1f8] sm:$0xff]  ;;  %v444_v50 = vld [vmem:[#allocation2] sm:$0xff] }
  0x73   : > { %v538_v49 = vld [vmem:[%s2909_s18 + $0x1f0] sm:$0xff] }
  0x75   : > { %2237 = vmatpush1.bf16.msra.mxu0 %v2236_v27  ;;  %2285 = vmatpush1.bf16.msra.mxu1 %v2236_v27  ;;  %v529_v27 = vld [vmem:[%s2909_s18 + $0x1a8] sm:$0xff] }
  0x76   : > { %2238 = vmatprep.subr.bf16.mxu0 %v2668_v4  ;;  %2270 = vmatprep.subr.bf16.mxu1 %v2668_v4 }
  0x79   : > { %2240 = vmatpush1.bf16.msra.mxu0 %v2239_v30  ;;  %2286 = vmatpush1.bf16.msra.mxu1 %v2239_v30  ;;  %v499_v30 = vld [vmem:[%s2909_s18 + $0xb8] sm:$0xff] }
  0x7a   : > { %2241 = vmatprep.subr.bf16.mxu0 %v2668_v4  ;;  %2271 = vmatprep.subr.bf16.mxu1 %v2668_v4 }
  0x7d   : > { %2243 = vmatpush1.bf16.msra.mxu0 %v2242_v33  ;;  %2287 = vmatpush1.bf16.msra.mxu1 %v2242_v33  ;;  %v530_v33 = vld [vmem:[%s2909_s18 + $0x1b0] sm:$0xff] }
  0x7e   : > { %2244 = vmatprep.subr.bf16.mxu0 %v2668_v4  ;;  %2272 = vmatprep.subr.bf16.mxu1 %v2668_v4 }
  0x81   : > { %2246 = vmatpush1.bf16.msra.mxu0 %v2245_v36  ;;  %2288 = vmatpush1.bf16.msra.mxu1 %v2245_v36  ;;  %v500_v36 = vld [vmem:[%s2909_s18 + $0xc0] sm:$0xff] }
  0x82   : > { %2247 = vmatprep.subr.bf16.mxu0 %v2668_v4  ;;  %2273 = vmatprep.subr.bf16.mxu1 %v2668_v4 }
  0x85   : > { %2249 = vmatpush1.bf16.msra.mxu0 %v2248_v39  ;;  %2289 = vmatpush1.bf16.msra.mxu1 %v2248_v39  ;;  %v535_v39 = vld [vmem:[%s2909_s18 + $0x1d8] sm:$0xff] }
  0x86   : > { %2250 = vmatprep.subr.bf16.mxu0 %v2668_v4  ;;  %2274 = vmatprep.subr.bf16.mxu1 %v2668_v4 }
  0x89   : > { %2252 = vmatpush1.bf16.msra.mxu0 %v2251_v42  ;;  %2290 = vmatpush1.bf16.msra.mxu1 %v2251_v42  ;;  %v505_v42 = vld [vmem:[%s2909_s18 + $0xe8] sm:$0xff] }
  0x8a   : > { %2253 = vmatprep.subr.bf16.mxu0 %v2668_v4  ;;  %2275 = vmatprep.subr.bf16.mxu1 %v2668_v4 }
  0x8d   : > { %2255 = vmatpush1.bf16.msra.mxu0 %v2254_v45  ;;  %2291 = vmatpush1.bf16.msra.mxu1 %v2254_v45  ;;  %v536_v45 = vld [vmem:[%s2909_s18 + $0x1e0] sm:$0xff] }
  0x8e   : > { %2256 = vmatprep.subr.bf16.mxu0 %v2668_v4  ;;  %2276 = vmatprep.subr.bf16.mxu1 %v2668_v4 }
  0x91   : > { %2258 = vmatpush1.bf16.msra.mxu0 %v2257_v48  ;;  %2292 = vmatpush1.bf16.msra.mxu1 %v2257_v48  ;;  %v506_v48 = vld [vmem:[%s2909_s18 + $0xf0] sm:$0xff] }
  0x92   : > { %2259 = vmatprep.subr.bf16.mxu0 %v2668_v4  ;;  %2277 = vmatprep.subr.bf16.mxu1 %v2668_v4  ;;  %v484_v4 = vld [vmem:[%s2909_s18 + $0x40] sm:$0xff] }
  0x95   : > { %2261 = vmatpush1.bf16.msra.mxu0 %v2260_v51  ;;  %2293 = vmatpush1.bf16.msra.mxu1 %v2260_v51  ;;  %v460_v51 = vld [vmem:[#allocation2 + $0x80] sm:$0xff] }
  0x98   : > { %637 = vmatmul.mubr.f32.vlgmr.msra.gmra.mrb[0].mxu0 %v476_v52  ;;  %717 = vmatmul.mubr.f32.vlgmr.msra.gmra.mrb[0].mxu1 %v508_v53 }
  0x99   : > { %641 = vmatprep.mubr.f32.mxu0 %v479_v54  ;;  %721 = vmatprep.mubr.f32.mxu1 %v511_v55 }
  0x9c   : > { %642 = vmatmul.mubr.f32.gmra.mrb[2].mxu0 %v478_v56  ;;  %722 = vmatmul.mubr.f32.gmra.mrb[2].mxu1 %v510_v57 }
  0x9d   : > { %646 = vmatprep.mubr.f32.mxu0 %v481_v58  ;;  %726 = vmatprep.mubr.f32.mxu1 %v513_v59  ;;  %v445_v58 = vld [vmem:[#allocation2 + $0x8] sm:$0xff] }
  0x9e   : > { %v461_v59 = vld [vmem:[#allocation2 + $0x88] sm:$0xff] }
  0xa0   : > { %647 = vmatmul.mubr.f32.gmra.mrb[4].mxu0 %v480_v60  ;;  %727 = vmatmul.mubr.f32.gmra.mrb[4].mxu1 %v512_v61 }
  0xa1   : > { %651 = vmatprep.mubr.f32.mxu0 %v483_v62  ;;  %731 = vmatprep.mubr.f32.mxu1 %v515_v63 }
  0xa4   : > { %652 = vmatmul.mubr.f32.gmra.mrb[6].mxu0 %v482_v0  ;;  %732 = vmatmul.mubr.f32.gmra.mrb[6].mxu1 %v514_v1 }
  0xa5   : > { %656 = vmatprep.mubr.f32.mxu0 %v485_v2  ;;  %736 = vmatprep.mubr.f32.mxu1 %v517_v3  ;;  %v446_v2 = vld [vmem:[#allocation2 + $0x10] sm:$0xff] }
  0xa6   : > { %v462_v3 = vld [vmem:[#allocation2 + $0x90] sm:$0xff] }
  0xa8   : > { %657 = vmatmul.mubr.f32.gmra.mrb[8].mxu0 %v484_v4  ;;  %737 = vmatmul.mubr.f32.gmra.mrb[8].mxu1 %v516_v5 }
  0xa9   : > { %661 = vmatprep.mubr.f32.mxu0 %v487_v6  ;;  %741 = vmatprep.mubr.f32.mxu1 %v519_v7 }
  0xac   : > { %662 = vmatmul.mubr.f32.gmra.mrb[10].mxu0 %v486_v8  ;;  %742 = vmatmul.mubr.f32.gmra.mrb[10].mxu1 %v518_v9 }
  0xad   : > { %666 = vmatprep.mubr.f32.mxu0 %v489_v10  ;;  %746 = vmatprep.mubr.f32.mxu1 %v521_v11  ;;  %v447_v10 = vld [vmem:[#allocation2 + $0x18] sm:$0xff] }
  0xae   : > { %v463_v11 = vld [vmem:[#allocation2 + $0x98] sm:$0xff] }
  0xb0   : > { %667 = vmatmul.mubr.f32.gmra.mrb[12].mxu0 %v488_v12  ;;  %747 = vmatmul.mubr.f32.gmra.mrb[12].mxu1 %v520_v13 }
  0xb1   : > { %671 = vmatprep.mubr.f32.mxu0 %v491_v14  ;;  %751 = vmatprep.mubr.f32.mxu1 %v523_v15 }
  0xb4   : > { %672 = vmatmul.mubr.f32.gmra.mrb[14].mxu0 %v490_v16  ;;  %752 = vmatmul.mubr.f32.gmra.mrb[14].mxu1 %v522_v17 }
  0xb5   : > { %676 = vmatprep.mubr.f32.mxu0 %v493_v18  ;;  %756 = vmatprep.mubr.f32.mxu1 %v525_v19  ;;  %v448_v18 = vld [vmem:[#allocation2 + $0x20] sm:$0xff] }
  0xb6   : > { %v464_v19 = vld [vmem:[#allocation2 + $0xa0] sm:$0xff] }
  0xb8   : > { %677 = vmatmul.mubr.f32.gmra.mrb[16].mxu0 %v492_v20  ;;  %757 = vmatmul.mubr.f32.gmra.mrb[16].mxu1 %v524_v21 }
  0xb9   : > { %681 = vmatprep.mubr.f32.mxu0 %v495_v22  ;;  %761 = vmatprep.mubr.f32.mxu1 %v527_v23 }
  0xbc   : > { %682 = vmatmul.mubr.f32.gmra.mrb[18].mxu0 %v494_v24  ;;  %762 = vmatmul.mubr.f32.gmra.mrb[18].mxu1 %v526_v25 }
  0xbd   : > { %686 = vmatprep.mubr.f32.mxu0 %v497_v26  ;;  %766 = vmatprep.mubr.f32.mxu1 %v529_v27  ;;  %v449_v26 = vld [vmem:[#allocation2 + $0x28] sm:$0xff] }
  0xbe   : > { %v465_v27 = vld [vmem:[#allocation2 + $0xa8] sm:$0xff] }
  0xc0   : > { %687 = vmatmul.mubr.f32.gmra.mrb[20].mxu0 %v496_v28  ;;  %767 = vmatmul.mubr.f32.gmra.mrb[20].mxu1 %v528_v29 }
  0xc1   : > { %691 = vmatprep.mubr.f32.mxu0 %v499_v30  ;;  %771 = vmatprep.mubr.f32.mxu1 %v531_v31 }
  0xc4   : > { %692 = vmatmul.mubr.f32.gmra.mrb[22].mxu0 %v498_v32  ;;  %772 = vmatmul.mubr.f32.gmra.mrb[22].mxu1 %v530_v33 }
  0xc5   : > { %696 = vmatprep.mubr.f32.mxu0 %v501_v34  ;;  %776 = vmatprep.mubr.f32.mxu1 %v533_v35  ;;  %v450_v34 = vld [vmem:[#allocation2 + $0x30] sm:$0xff] }
  0xc6   : > { %v466_v35 = vld [vmem:[#allocation2 + $0xb0] sm:$0xff] }
  0xc8   : > { %697 = vmatmul.mubr.f32.gmra.mrb[24].mxu0 %v500_v36  ;;  %777 = vmatmul.mubr.f32.gmra.mrb[24].mxu1 %v532_v37 }
  0xc9   : > { %701 = vmatprep.mubr.f32.mxu0 %v503_v38  ;;  %781 = vmatprep.mubr.f32.mxu1 %v535_v39 }
  0xcc   : > { %702 = vmatmul.mubr.f32.gmra.mrb[26].mxu0 %v502_v40  ;;  %782 = vmatmul.mubr.f32.gmra.mrb[26].mxu1 %v534_v41 }
  0xcd   : > { %706 = vmatprep.mubr.f32.mxu0 %v505_v42  ;;  %786 = vmatprep.mubr.f32.mxu1 %v537_v43  ;;  %v451_v42 = vld [vmem:[#allocation2 + $0x38] sm:$0xff] }
  0xce   : > { %v467_v43 = vld [vmem:[#allocation2 + $0xb8] sm:$0xff] }
  0xd0   : > { %707 = vmatmul.mubr.f32.gmra.mrb[28].mxu0 %v504_v44  ;;  %787 = vmatmul.mubr.f32.gmra.mrb[28].mxu1 %v536_v45 }
  0xd1   : > { %711 = vmatprep.mubr.f32.mxu0 %v507_v46  ;;  %791 = vmatprep.mubr.f32.mxu1 %v539_v47 }
  0xd4   : > { %712 = vmatmul.mubr.f32.gmra.mrb[30].mxu0 %v506_v48  ;;  %792 = vmatmul.mubr.f32.gmra.mrb[30].mxu1 %v538_v49 }
 0x16b   : > { %v638_v52 = vpop.f32.mrb[0].mxu0  ;;  %v718_v53 = vpop.f32.mrb[0].mxu1 }
 0x16c   : > { %v797_v54 = vadd.f32 %v638_v52, %v444_v50  ;;  %v813_v55 = vadd.f32 %v718_v53, %v460_v51  ;;  %v640_v56 = vpop.f32.mrb[1].mxu0  ;;  %v720_v57 = vpop.f32.mrb[1].mxu1  ;;  %v452_v50 = vld [vmem:[#allocation2 + $0x40] sm:$0xff] }
 0x16d   : > { %v468_v51 = vld [vmem:[#allocation2 + $0xc0] sm:$0xff] }
 0x16e   : > { %829 = vst [vmem:[#allocation2] sm:$0xff] %v797_v54  ;;  %845 = vst [vmem:[#allocation2 + $0x80] sm:$0xff] %v813_v55 }
 0x16f   : > { %v643_v60 = vpop.f32.mrb[2].mxu0  ;;  %v723_v61 = vpop.f32.mrb[2].mxu1 }
 0x170   : > { %v798_v62 = vadd.f32 %v643_v60, %v445_v58  ;;  %v814_v63 = vadd.f32 %v723_v61, %v461_v59  ;;  %v645_v0 = vpop.f32.mrb[3].mxu0  ;;  %v725_v1 = vpop.f32.mrb[3].mxu1  ;;  %v453_v58 = vld [vmem:[#allocation2 + $0x48] sm:$0xff] }
 0x171   : > { %v469_v59 = vld [vmem:[#allocation2 + $0xc8] sm:$0xff] }
 0x172   : > { %830 = vst [vmem:[#allocation2 + $0x8] sm:$0xff] %v798_v62  ;;  %846 = vst [vmem:[#allocation2 + $0x88] sm:$0xff] %v814_v63 }
 0x173   : > { %v648_v4 = vpop.f32.mrb[4].mxu0  ;;  %v728_v5 = vpop.f32.mrb[4].mxu1 }
 0x174   : > { %v799_v6 = vadd.f32 %v648_v4, %v446_v2  ;;  %v815_v7 = vadd.f32 %v728_v5, %v462_v3  ;;  %v650_v8 = vpop.f32.mrb[5].mxu0  ;;  %v730_v9 = vpop.f32.mrb[5].mxu1  ;;  %v454_v2 = vld [vmem:[#allocation2 + $0x50] sm:$0xff] }
 0x175   : > { %v470_v3 = vld [vmem:[#allocation2 + $0xd0] sm:$0xff] }
 0x176   : > { %831 = vst [vmem:[#allocation2 + $0x10] sm:$0xff] %v799_v6  ;;  %847 = vst [vmem:[#allocation2 + $0x90] sm:$0xff] %v815_v7 }
 0x177   : > { %v653_v12 = vpop.f32.mrb[6].mxu0  ;;  %v733_v13 = vpop.f32.mrb[6].mxu1 }
 0x178   : > { %v800_v14 = vadd.f32 %v653_v12, %v447_v10  ;;  %v816_v15 = vadd.f32 %v733_v13, %v463_v11  ;;  %v655_v16 = vpop.f32.mrb[7].mxu0  ;;  %v735_v17 = vpop.f32.mrb[7].mxu1  ;;  %v455_v10 = vld [vmem:[#allocation2 + $0x58] sm:$0xff] }
 0x179   : > { %v471_v11 = vld [vmem:[#allocation2 + $0xd8] sm:$0xff] }
 0x17a   : > { %832 = vst [vmem:[#allocation2 + $0x18] sm:$0xff] %v800_v14  ;;  %848 = vst [vmem:[#allocation2 + $0x98] sm:$0xff] %v816_v15 }
 0x17b   : > { %v658_v20 = vpop.f32.mrb[8].mxu0  ;;  %v738_v21 = vpop.f32.mrb[8].mxu1 }
 0x17c   : > { %v801_v22 = vadd.f32 %v658_v20, %v448_v18  ;;  %v817_v23 = vadd.f32 %v738_v21, %v464_v19  ;;  %v660_v24 = vpop.f32.mrb[9].mxu0  ;;  %v740_v25 = vpop.f32.mrb[9].mxu1  ;;  %v456_v18 = vld [vmem:[#allocation2 + $0x60] sm:$0xff] }
 0x17d   : > { %v472_v19 = vld [vmem:[#allocation2 + $0xe0] sm:$0xff] }
 0x17e   : > { %833 = vst [vmem:[#allocation2 + $0x20] sm:$0xff] %v801_v22  ;;  %849 = vst [vmem:[#allocation2 + $0xa0] sm:$0xff] %v817_v23 }
 0x17f   : > { %v663_v28 = vpop.f32.mrb[10].mxu0  ;;  %v743_v29 = vpop.f32.mrb[10].mxu1 }
 0x180   : > { %v802_v30 = vadd.f32 %v663_v28, %v449_v26  ;;  %v818_v31 = vadd.f32 %v743_v29, %v465_v27  ;;  %v665_v32 = vpop.f32.mrb[11].mxu0  ;;  %v745_v33 = vpop.f32.mrb[11].mxu1  ;;  %v457_v26 = vld [vmem:[#allocation2 + $0x68] sm:$0xff] }
 0x181   : > { %v473_v27 = vld [vmem:[#allocation2 + $0xe8] sm:$0xff] }
 0x182   : > { %834 = vst [vmem:[#allocation2 + $0x28] sm:$0xff] %v802_v30  ;;  %850 = vst [vmem:[#allocation2 + $0xa8] sm:$0xff] %v818_v31 }
 0x183   : > { %v668_v36 = vpop.f32.mrb[12].mxu0  ;;  %v748_v37 = vpop.f32.mrb[12].mxu1 }
 0x184   : > { %v803_v38 = vadd.f32 %v668_v36, %v450_v34  ;;  %v819_v39 = vadd.f32 %v748_v37, %v466_v35  ;;  %v670_v40 = vpop.f32.mrb[13].mxu0  ;;  %v750_v41 = vpop.f32.mrb[13].mxu1  ;;  %v458_v34 = vld [vmem:[#allocation2 + $0x70] sm:$0xff] }
 0x185   : > { %v474_v35 = vld [vmem:[#allocation2 + $0xf0] sm:$0xff] }
 0x186   : > { %835 = vst [vmem:[#allocation2 + $0x30] sm:$0xff] %v803_v38  ;;  %851 = vst [vmem:[#allocation2 + $0xb0] sm:$0xff] %v819_v39 }
 0x187   : > { %v673_v44 = vpop.f32.mrb[14].mxu0  ;;  %v753_v45 = vpop.f32.mrb[14].mxu1 }
 0x188   : > { %v804_v46 = vadd.f32 %v673_v44, %v451_v42  ;;  %v820_v47 = vadd.f32 %v753_v45, %v467_v43  ;;  %v675_v48 = vpop.f32.mrb[15].mxu0  ;;  %v755_v49 = vpop.f32.mrb[15].mxu1  ;;  %v459_v42 = vld [vmem:[#allocation2 + $0x78] sm:$0xff] }
 0x189   : > { %v475_v43 = vld [vmem:[#allocation2 + $0xf8] sm:$0xff] }
 0x18a   : > { %836 = vst [vmem:[#allocation2 + $0x38] sm:$0xff] %v804_v46  ;;  %852 = vst [vmem:[#allocation2 + $0xb8] sm:$0xff] %v820_v47 }
 0x18b   : > { %v678_v52 = vpop.f32.mrb[16].mxu0  ;;  %v758_v53 = vpop.f32.mrb[16].mxu1 }
 0x18c   : > { %v805_v54 = vadd.f32 %v678_v52, %v452_v50  ;;  %v821_v55 = vadd.f32 %v758_v53, %v468_v51  ;;  %v680_v56 = vpop.f32.mrb[17].mxu0  ;;  %v760_v57 = vpop.f32.mrb[17].mxu1 }
 0x18e   : > { %837 = vst [vmem:[#allocation2 + $0x40] sm:$0xff] %v805_v54  ;;  %853 = vst [vmem:[#allocation2 + $0xc0] sm:$0xff] %v821_v55 }
 0x18f   : > { %v683_v60 = vpop.f32.mrb[18].mxu0  ;;  %v763_v61 = vpop.f32.mrb[18].mxu1 }
 0x190   : > { %v806_v62 = vadd.f32 %v683_v60, %v453_v58  ;;  %v822_v63 = vadd.f32 %v763_v61, %v469_v59  ;;  %v685_v0 = vpop.f32.mrb[19].mxu0  ;;  %v765_v1 = vpop.f32.mrb[19].mxu1 }
 0x192   : > { %838 = vst [vmem:[#allocation2 + $0x48] sm:$0xff] %v806_v62  ;;  %854 = vst [vmem:[#allocation2 + $0xc8] sm:$0xff] %v822_v63 }
 0x193   : > { %v688_v4 = vpop.f32.mrb[20].mxu0  ;;  %v768_v5 = vpop.f32.mrb[20].mxu1 }
 0x194   : > { %v807_v6 = vadd.f32 %v688_v4, %v454_v2  ;;  %v823_v7 = vadd.f32 %v768_v5, %v470_v3  ;;  %v690_v8 = vpop.f32.mrb[21].mxu0  ;;  %v770_v9 = vpop.f32.mrb[21].mxu1 }
 0x196   : > { %839 = vst [vmem:[#allocation2 + $0x50] sm:$0xff] %v807_v6  ;;  %855 = vst [vmem:[#allocation2 + $0xd0] sm:$0xff] %v823_v7 }
 0x197   : > { %v693_v12 = vpop.f32.mrb[22].mxu0  ;;  %v773_v13 = vpop.f32.mrb[22].mxu1 }
 0x198   : > { %v808_v14 = vadd.f32 %v693_v12, %v455_v10  ;;  %v824_v15 = vadd.f32 %v773_v13, %v471_v11  ;;  %v695_v16 = vpop.f32.mrb[23].mxu0  ;;  %v775_v17 = vpop.f32.mrb[23].mxu1 }
 0x19a   : > { %840 = vst [vmem:[#allocation2 + $0x58] sm:$0xff] %v808_v14  ;;  %856 = vst [vmem:[#allocation2 + $0xd8] sm:$0xff] %v824_v15 }
 0x19b   : > { %v698_v20 = vpop.f32.mrb[24].mxu0  ;;  %v778_v21 = vpop.f32.mrb[24].mxu1 }
 0x19c   : > { %v809_v22 = vadd.f32 %v698_v20, %v456_v18  ;;  %v825_v23 = vadd.f32 %v778_v21, %v472_v19  ;;  %v700_v24 = vpop.f32.mrb[25].mxu0  ;;  %v780_v25 = vpop.f32.mrb[25].mxu1 }
 0x19e   : > { %841 = vst [vmem:[#allocation2 + $0x60] sm:$0xff] %v809_v22  ;;  %857 = vst [vmem:[#allocation2 + $0xe0] sm:$0xff] %v825_v23 }
 0x19f   : > { %v703_v28 = vpop.f32.mrb[26].mxu0  ;;  %v783_v29 = vpop.f32.mrb[26].mxu1 }
 0x1a0   : > { %v810_v30 = vadd.f32 %v703_v28, %v457_v26  ;;  %v826_v31 = vadd.f32 %v783_v29, %v473_v27  ;;  %v705_v32 = vpop.f32.mrb[27].mxu0  ;;  %v785_v33 = vpop.f32.mrb[27].mxu1 }
 0x1a2   : > { %842 = vst [vmem:[#allocation2 + $0x68] sm:$0xff] %v810_v30  ;;  %858 = vst [vmem:[#allocation2 + $0xe8] sm:$0xff] %v826_v31 }
 0x1a3   : > { %v708_v36 = vpop.f32.mrb[28].mxu0  ;;  %v788_v37 = vpop.f32.mrb[28].mxu1 }
 0x1a4   : > { %v811_v38 = vadd.f32 %v708_v36, %v458_v34  ;;  %v827_v39 = vadd.f32 %v788_v37, %v474_v35  ;;  %v710_v40 = vpop.f32.mrb[29].mxu0  ;;  %v790_v41 = vpop.f32.mrb[29].mxu1  ;;  %864 = sbr.rel (%p2177_p13) target bundleno = 1038 (0x40e), region = 67 }
 0x1a6   : > { %843 = vst [vmem:[#allocation2 + $0x70] sm:$0xff] %v811_v38  ;;  %859 = vst [vmem:[#allocation2 + $0xf0] sm:$0xff] %v827_v39 }
 0x1a7   : > { %v713_v44 = vpop.f32.mrb[30].mxu0  ;;  %v793_v45 = vpop.f32.mrb[30].mxu1 }
 0x1a8   : > { %v812_v46 = vadd.f32 %v713_v44, %v459_v42  ;;  %v828_v47 = vadd.f32 %v793_v45, %v475_v43  ;;  %v715_v48 = vpop.f32.mrb[31].mxu0  ;;  %v795_v49 = vpop.f32.mrb[31].mxu1 }
 0x1aa   : > { %844 = vst [vmem:[#allocation2 + $0x78] sm:$0xff] %v812_v46  ;;  %860 = vst [vmem:[#allocation2 + $0xf8] sm:$0xff] %v828_v47 }
 0x1ab   : > { %v865_v50 = vld [vmem:[#allocation2] sm:$0xff]  ;;  %v867_v52 = vld [vmem:[#allocation2 + $0x10] sm:$0xff]  ;;  %v866_v55 = vld [vmem:[#allocation2 + $0x8] sm:$0xff]  ;;  %s2669_s17 = smov 64   ;;  %s2670_s13 = smov 96   ;;  %vm1992_vm0 = vcmask 261120  }
 0x1ac   : > { %v3044_v51 = vld [vmem:[%s3896_s3] ss:$0 sm:$0xff]  ;;  %v868_v56 = vld [vmem:[#allocation2 + $0x18] sm:$0xff]  ;;  %v870_v60 = vld [vmem:[#allocation2 + $0x28] sm:$0xff]  ;;  %s2671_s14 = smov 32   ;;  %vm2025_vm1 = vcmask 523264  }
 0x1ad   : > { %v3047_v53 = vadd.f32 %v3044_v51, %v865_v50  ;;  %v3050_v54 = vadd.f32 %v3044_v51, %v867_v52  ;;  %v3055_v57 = vadd.f32 %v3044_v51, %v866_v55  ;;  %v869_v58 = vld [vmem:[#allocation2 + $0x20] sm:$0xff]  ;;  %v3058_v59 = vadd.f32 %v3044_v51, %v868_v56  ;;  %v871_v62 = vld [vmem:[#allocation2 + $0x30] sm:$0xff]  ;;  %v872_v2 = vld [vmem:[#allocation2 + $0x38] sm:$0xff] }
 0x1ae   : > { %v3062_v61 = vadd.f32 %v3044_v51, %v869_v58  ;;  %v3066_v63 = vadd.f32 %v3044_v51, %v870_v60  ;;  %v3070_v0 = vadd.f32 %v3044_v51, %v871_v62  ;;  %v873_v4 = vld [vmem:[#allocation2 + $0x40] sm:$0xff]  ;;  %v3077_v5 = vadd.f32 %v3044_v51, %v872_v2  ;;  %v874_v6 = vld [vmem:[#allocation2 + $0x48] sm:$0xff]  ;;  %v875_v9 = vld [vmem:[#allocation2 + $0x50] sm:$0xff] }
 0x1af   : > { %2355 = vtanh.f32 %v3047_v53  ;;  %v3080_v8 = vadd.f32 %v3044_v51, %v873_v4  ;;  %v3085_v11 = vadd.f32 %v3044_v51, %v874_v6  ;;  %v876_v12 = vld [vmem:[#allocation2 + $0x58] sm:$0xff]  ;;  %v3090_v14 = vadd.f32 %v3044_v51, %v875_v9  ;;  %v877_v15 = vld [vmem:[#allocation2 + $0x60] sm:$0xff]  ;;  %v878_v18 = vld [vmem:[#allocation2 + $0x68] sm:$0xff] }
 0x1b0   : > { %2357 = vtanh.f32 %v3050_v54  ;;  %v3095_v17 = vadd.f32 %v3044_v51, %v876_v12  ;;  %v3100_v20 = vadd.f32 %v3044_v51, %v877_v15  ;;  %v879_v21 = vld [vmem:[#allocation2 + $0x70] sm:$0xff]  ;;  %v3105_v22 = vadd.f32 %v3044_v51, %v878_v18  ;;  %v881_v26 = vld [vmem:[#allocation2 + $0x80] sm:$0xff]  ;;  %v882_v29 = vld [vmem:[#allocation2 + $0x88] sm:$0xff] }
 0x1b1   : > { %2359 = vtanh.f32 %v3055_v57  ;;  %v880_v23 = vld [vmem:[#allocation2 + $0x78] sm:$0xff]  ;;  %v3109_v25 = vadd.f32 %v3044_v51, %v879_v21  ;;  %v3119_v31 = vadd.f32 %v3044_v51, %v881_v26  ;;  %v883_v32 = vld [vmem:[#allocation2 + $0x90] sm:$0xff]  ;;  %v3124_v34 = vadd.f32 %v3044_v51, %v882_v29  ;;  %v885_v38 = vld [vmem:[#allocation2 + $0xa0] sm:$0xff] }
 0x1b2   : > { %2361 = vtanh.f32 %v3058_v59  ;;  %v3114_v28 = vadd.f32 %v3044_v51, %v880_v23  ;;  %v884_v35 = vld [vmem:[#allocation2 + $0x98] sm:$0xff]  ;;  %v3129_v37 = vadd.f32 %v3044_v51, %v883_v32  ;;  %v886_v41 = vld [vmem:[#allocation2 + $0xa8] sm:$0xff]  ;;  %v3139_v43 = vadd.f32 %v3044_v51, %v885_v38  ;;  %v887_v44 = vld [vmem:[#allocation2 + $0xb0] sm:$0xff] }
 0x1b3   : > { %2363 = vtanh.f32 %v3062_v61  ;;  %v3134_v40 = vadd.f32 %v3044_v51, %v884_v35  ;;  %v3144_v46 = vadd.f32 %v3044_v51, %v886_v41  ;;  %v888_v47 = vld [vmem:[#allocation2 + $0xb8] sm:$0xff]  ;;  %v3149_v49 = vadd.f32 %v3044_v51, %v887_v44  ;;  %v889_v50 = vld [vmem:[#allocation2 + $0xc0] sm:$0xff]  ;;  %v890_v56 = vld [vmem:[#allocation2 + $0xc8] sm:$0xff] }
 0x1b4   : > { %2365 = vtanh.f32 %v3066_v63  ;;  %v3154_v55 = vadd.f32 %v3044_v51, %v888_v47  ;;  %v3159_v60 = vadd.f32 %v3044_v51, %v889_v50  ;;  %v891_v62 = vld [vmem:[#allocation2 + $0xd0] sm:$0xff]  ;;  %v3164_v2 = vadd.f32 %v3044_v51, %v890_v56  ;;  %v894_v12 = vld [vmem:[#allocation2 + $0xe8] sm:$0xff]  ;;  %v896_v21 = vld [vmem:[#allocation2 + $0xf8] sm:$0xff] }
 0x1b5   : > { %2367 = vtanh.f32 %v3070_v0  ;;  %v3169_v6 = vadd.f32 %v3044_v51, %v891_v62  ;;  %v2179_v38 = vmul.f32 -1.442695, %v3047_v53  ;;  %v2180_v41 = vmul.f32 -1.442695, %v3055_v57 }
 0x1b6   : > { %2369 = vtanh.f32 %v3077_v5  ;;  %v2183_v44 = vmul.f32 -1.442695, %v3062_v61  ;;  %v2185_v47 = vmul.f32 -1.442695, %v3070_v0  ;;  %v2186_v53 = vmul.f32 -1.442695, %v3077_v5 }
 0x1b7   : > { %2371 = vtanh.f32 %v3080_v8  ;;  %v2188_v61 = vmul.f32 -1.442695, %v3085_v11  ;;  %v2189_v0 = vmul.f32 -1.442695, %v3090_v14  ;;  %v2190_v5 = vmul.f32 -1.442695, %v3095_v17 }
 0x1b8   : > { %2373 = vtanh.f32 %v3085_v11  ;;  %v2192_v11 = vmul.f32 -1.442695, %v3105_v22 }
 0x1b9   : > { %v2356_v1 = vpop.eup %2355  ;;  %2375 = vtanh.f32 %v3090_v14 }
 0x1ba   : > { %v2358_v3 = vpop.eup %2357  ;;  %1256 = vrot.lane.b32.xlu0 %v2356_v1, %s2669_s17  ;;  %2377 = vtanh.f32 %v3095_v17 }
 0x1bb   : > { %1260 = vrot.lane.b32.xlu1 %v2358_v3, %s2669_s17  ;;  %v2360_v7 = vpop.eup %2359  ;;  %2379 = vtanh.f32 %v3100_v20  ;;  %v892_v3 = vld [vmem:[#allocation2 + $0xd8] sm:$0xff] }
 0x1bc   : > { %v2362_v10 = vpop.eup %2361  ;;  %2381 = vtanh.f32 %v3105_v22 }
 0x1bd   : > { %v2364_v13 = vpop.eup %2363  ;;  %2383 = vtanh.f32 %v3109_v25 }
 0x1be   : > { %1258 = vrot.lane.b32.xlu0 %v2360_v7, %s2669_s17  ;;  %v2366_v16 = vpop.eup %2365  ;;  %2385 = vtanh.f32 %v3114_v28  ;;  %v893_v7 = vld [vmem:[#allocation2 + $0xe0] sm:$0xff] }
 0x1bf   : > { %1262 = vrot.lane.b32.xlu1 %v2362_v10, %s2669_s17  ;;  %v2368_v19 = vpop.eup %2367  ;;  %2387 = vtanh.f32 %v3119_v31  ;;  %v3174_v10 = vadd.f32 %v3044_v51, %v892_v3  ;;  %v3179_v15 = vadd.f32 %v3044_v51, %v893_v7 }
 0x1c0   : > { %v2370_v24 = vpop.eup %2369  ;;  %2389 = vtanh.f32 %v3124_v34 }
 0x1c1   : > { %v2372_v27 = vpop.eup %2371  ;;  %2391 = vtanh.f32 %v3129_v37 }
 0x1c2   : > { %1264 = vrot.lane.b32.xlu0 %v2364_v13, %s2669_s17  ;;  %v2374_v30 = vpop.eup %2373  ;;  %2393 = vtanh.f32 %v3134_v40 }
 0x1c3   : > { %1266 = vrot.lane.b32.xlu1 %v2366_v16, %s2669_s17  ;;  %v2376_v33 = vpop.eup %2375  ;;  %2395 = vtanh.f32 %v3139_v43  ;;  %v895_v16 = vld [vmem:[#allocation2 + $0xf0] sm:$0xff] }
 0x1c4   : > { %v2378_v36 = vpop.eup %2377  ;;  %2397 = vtanh.f32 %v3144_v46 }
 0x1c5   : > { %v2380_v39 = vpop.eup %2379  ;;  %2399 = vtanh.f32 %v3149_v49 }
 0x1c6   : > { %1268 = vrot.lane.b32.xlu0 %v2368_v19, %s2669_s17  ;;  %v2382_v42 = vpop.eup %2381  ;;  %2401 = vtanh.f32 %v3154_v55  ;;  %v3184_v19 = vadd.f32 %v3044_v51, %v894_v12 }
 0x1c7   : > { %1270 = vrot.lane.b32.xlu1 %v2370_v24, %s2669_s17  ;;  %v2384_v45 = vpop.eup %2383  ;;  %2403 = vtanh.f32 %v3159_v60  ;;  %v3189_v24 = vadd.f32 %v3044_v51, %v895_v16 }
 0x1c8   : > { %v2386_v48 = vpop.eup %2385  ;;  %2405 = vtanh.f32 %v3164_v2 }
 0x1c9   : > { %v2388_v52 = vpop.eup %2387  ;;  %2407 = vtanh.f32 %v3169_v6 }
 0x1ca   : > { %1272 = vrot.lane.b32.xlu0 %v2372_v27, %s2669_s17  ;;  %v2390_v58 = vpop.eup %2389  ;;  %2409 = vtanh.f32 %v3174_v10  ;;  %v3194_v27 = vadd.f32 %v3044_v51, %v896_v21 }
 0x1cb   : > { %1274 = vrot.lane.b32.xlu1 %v2374_v30, %s2669_s17  ;;  %v2392_v1 = vpop.eup %2391  ;;  %2411 = vtanh.f32 %v3179_v15 }
 0x1cc   : > { %v2394_v4 = vpop.eup %2393  ;;  %2413 = vtanh.f32 %v3184_v19 }
 0x1cd   : > { %v2396_v9 = vpop.eup %2395  ;;  %2415 = vtanh.f32 %v3189_v24 }
 0x1ce   : > { %1276 = vrot.lane.b32.xlu0 %v2376_v33, %s2669_s17  ;;  %v2398_v13 = vpop.eup %2397  ;;  %2417 = vtanh.f32 %v3194_v27 }
 0x1cf   : > { %1278 = vrot.lane.b32.xlu1 %v2378_v36, %s2669_s17  ;;  %v2400_v18 = vpop.eup %2399  ;;  %2419 = vpow2.f32 %v2179_v38 }
 0x1d0   : > { %v2402_v23 = vpop.eup %2401 }
 0x1d1   : > { %v2404_v26 = vpop.eup %2403 }
 0x1d2   : > { %1280 = vrot.lane.b32.xlu0 %v2380_v39, %s2669_s17  ;;  %v2406_v29 = vpop.eup %2405  ;;  %v2181_v39 = vmul.f32 -1.442695, %v3050_v54 }
 0x1d3   : > { %1282 = vrot.lane.b32.xlu1 %v2382_v42, %s2669_s17  ;;  %v2408_v30 = vpop.eup %2407  ;;  %v2182_v42 = vmul.f32 -1.442695, %v3058_v59  ;;  %v2187_v59 = vmul.f32 -1.442695, %v3080_v8  ;;  %v2191_v8 = vmul.f32 -1.442695, %v3100_v20 }
 0x1d4   : > { %v2410_v32 = vpop.eup %2409  ;;  %2421 = vpow2.f32 %v2181_v39  ;;  %v2194_v20 = vmul.f32 -1.442695, %v3114_v28  ;;  %v2196_v28 = vmul.f32 -1.442695, %v3124_v34  ;;  %v2198_v34 = vmul.f32 -1.442695, %v3134_v40 }
 0x1d5   : > { %v2412_v33 = vpop.eup %2411  ;;  %2423 = vpow2.f32 %v2180_v41 }
 0x1d6   : > { %1284 = vrot.lane.b32.xlu0 %v2384_v45, %s2669_s17  ;;  %v2414_v51 = vpop.eup %2413  ;;  %2425 = vpow2.f32 %v2182_v42  ;;  %v2184_v45 = vmul.f32 -1.442695, %v3066_v63 }
 0x1d7   : > { %1286 = vrot.lane.b32.xlu1 %v2386_v48, %s2669_s17  ;;  %v2416_v35 = vpop.eup %2415  ;;  %2427 = vpow2.f32 %v2183_v44 }
 0x1d8   : > { %v2418_v36 = vpop.eup %2417  ;;  %2429 = vpow2.f32 %v2184_v45 }
 0x1d9   : > { %v2420_v48 = vpop.eup %2419  ;;  %2431 = vpow2.f32 %v2185_v47 }
 0x1da   : > { %1288 = vrot.lane.b32.xlu0 %v2388_v52, %s2669_s17  ;;  %v1032_v54 = vadd.f32 1.0, %v2420_v48  ;;  %2433 = vpow2.f32 %v2186_v53 }
 0x1db   : > { %1290 = vrot.lane.b32.xlu1 %v2390_v58, %s2669_s17 }
 0x1dc   : > { %2435 = vrcp.f32 %v1032_v54  ;;  %v2199_v54 = vmul.f32 -1.442695, %v3139_v43 }
 0x1de   : > { %1292 = vrot.lane.b32.xlu0 %v2392_v1, %s2669_s17  ;;  %v2422_v50 = vpop.eup %2421 }
 0x1df   : > { %1294 = vrot.lane.b32.xlu1 %v2394_v4, %s2669_s17  ;;  %v1034_v52 = vadd.f32 1.0, %v2422_v50  ;;  %v2424_v57 = vpop.eup %2423 }
 0x1e0   : > { %v2426_v56 = vpop.eup %2425  ;;  %v1033_v63 = vadd.f32 1.0, %v2424_v57 }
 0x1e1   : > { %2437 = vrcp.f32 %v1034_v52  ;;  %v2428_v58 = vpop.eup %2427  ;;  %v1035_v62 = vadd.f32 1.0, %v2426_v56 }
 0x1e2   : > { %1296 = vrot.lane.b32.xlu0 %v2396_v9, %s2669_s17  ;;  %2439 = vpow2.f32 %v2187_v59  ;;  %v2430_v1 = vpop.eup %2429  ;;  %v1036_v3 = vadd.f32 1.0, %v2428_v58 }
 0x1e3   : > { %1298 = vrot.lane.b32.xlu1 %v2398_v13, %s2669_s17  ;;  %2441 = vpow2.f32 %v2188_v61  ;;  %v2432_v4 = vpop.eup %2431  ;;  %v1037_v7 = vadd.f32 1.0, %v2430_v1  ;;  %v2193_v13 = vmul.f32 -1.442695, %v3109_v25  ;;  %v2200_v61 = vmul.f32 -1.442695, %v3144_v46 }
 0x1e4   : > { %2443 = vrcp.f32 %v1033_v63  ;;  %v2434_v9 = vpop.eup %2433  ;;  %v1038_v12 = vadd.f32 1.0, %v2432_v4  ;;  %v2202_v4 = vmul.f32 -1.442695, %v3154_v55 }
 0x1e5   : > { %2445 = vpow2.f32 %v2189_v0  ;;  %v1039_v22 = vadd.f32 1.0, %v2434_v9  ;;  %v2203_v9 = vmul.f32 -1.442695, %v3159_v60 }
 0x1e6   : > { %1300 = vrot.lane.b32.xlu0 %v2400_v18, %s2669_s17  ;;  %2447 = vrcp.f32 %v1035_v62  ;;  %v3220_v14 = vpop.eup %2435  ;;  %v2201_v62 = vmul.f32 -1.442695, %v3149_v49 }
 0x1e7   : > { %1302 = vrot.lane.b32.xlu1 %v2402_v23, %s2669_s17  ;;  %2449 = vpow2.f32 %v2190_v5 }
 0x1e8   : > { %2451 = vrcp.f32 %v1036_v3 }
 0x1e9   : > { %2453 = vpow2.f32 %v2191_v8 }
 0x1ea   : > { %1304 = vrot.lane.b32.xlu0 %v2404_v26, %s2669_s17  ;;  %2455 = vrcp.f32 %v1037_v7 }
 0x1eb   : > { %1306 = vrot.lane.b32.xlu1 %v2406_v29, %s2669_s17  ;;  %v3223_v17 = vpop.eup %2437  ;;  %2457 = vpow2.f32 %v2192_v11  ;;  %v2195_v29 = vmul.f32 -1.442695, %v3119_v31  ;;  %v2197_v31 = vmul.f32 -1.442695, %v3129_v37 }
 0x1ec   : > { %v2440_v16 = vpop.eup %2439  ;;  %2459 = vrcp.f32 %v1038_v12 }
 0x1ed   : > { %v2442_v26 = vpop.eup %2441  ;;  %2461 = vpow2.f32 %v2193_v13 }
 0x1ee   : > { %1308 = vrot.lane.b32.xlu0 %v2408_v30, %s2669_s17  ;;  %v3228_v30 = vpop.eup %2443  ;;  %2463 = vpow2.f32 %v2194_v20 }
 0x1ef   : > { %1310 = vrot.lane.b32.xlu1 %v2410_v32, %s2669_s17  ;;  %v1040_v32 = vadd.f32 1.0, %v2440_v16  ;;  %2465 = vrcp.f32 %v1039_v22 }
 0x1f0   : > { %2467 = vpow2.f32 %v2195_v29  ;;  %v2205_v29 = vmul.f32 -1.442695, %v3169_v6 }
 0x1f1   : > { %2469 = vrcp.f32 %v1040_v32 }
 0x1f2   : > { %1312 = vrot.lane.b32.xlu0 %v2412_v33, %s2669_s17  ;;  %v2446_v33 = vpop.eup %2445  ;;  %2471 = vpow2.f32 %v2196_v28 }
 0x1f3   : > { %1314 = vrot.lane.b32.xlu1 %v2414_v51, %s2669_s17  ;;  %v3233_v51 = vpop.eup %2447  ;;  %v1042_v44 = vadd.f32 1.0, %v2446_v33 }
 0x1f4   : > { %v2450_v38 = vpop.eup %2449 }
 0x1f5   : > { %v3237_v41 = vpop.eup %2451  ;;  %v1043_v50 = vadd.f32 1.0, %v2450_v38 }
 0x1f6   : > { %1316 = vrot.lane.b32.xlu0 %v2416_v35, %s2669_s17  ;;  %v2454_v45 = vpop.eup %2453 }
 0x1f7   : > { %1318 = vrot.lane.b32.xlu1 %v2418_v36, %s2669_s17  ;;  %v1041_v36 = vadd.f32 1.0, %v2442_v26  ;;  %v3243_v48 = vpop.eup %2455  ;;  %v1044_v40 = vadd.f32 1.0, %v2454_v45 }
 0x1f8   : > { %v2458_v53 = vpop.eup %2457 }
 0x1f9   : > { %2473 = vrcp.f32 %v1041_v36  ;;  %v3247_v57 = vpop.eup %2459  ;;  %v1045_v43 = vadd.f32 1.0, %v2458_v53 }
 0x1fa   : > { %2475 = vpow2.f32 %v2197_v31  ;;  %v2462_v56 = vpop.eup %2461 }
 0x1fb   : > { %2477 = vrcp.f32 %v1042_v44  ;;  %v2464_v0 = vpop.eup %2463  ;;  %v1046_v3 = vadd.f32 1.0, %v2462_v56 }
 0x1fc   : > { %2479 = vpow2.f32 %v2198_v34  ;;  %v3255_v5 = vpop.eup %2465  ;;  %v1047_v11 = vadd.f32 1.0, %v2464_v0 }
 0x1fd   : > { %2481 = vrcp.f32 %v1043_v50  ;;  %v2468_v46 = vpop.eup %2467 }
 0x1fe   : > { %2483 = vpow2.f32 %v2199_v54  ;;  %v3260_v8 = vpop.eup %2469  ;;  %v1048_v55 = vadd.f32 1.0, %v2468_v46 }
 0x1ff   : > { %2485 = vrcp.f32 %v1044_v40  ;;  %v2472_v49 = vpop.eup %2471 }
 0x200   : > { %2487 = vpow2.f32 %v2200_v61  ;;  %v1049_v60 = vadd.f32 1.0, %v2472_v49 }
 0x201   : > { %2489 = vrcp.f32 %v1045_v43 }
 0x202   : > { %2491 = vpow2.f32 %v2201_v62 }
 0x203   : > { %v3264_v13 = vpop.eup %2473  ;;  %2493 = vrcp.f32 %v1046_v3 }
 0x204   : > { %v2476_v20 = vpop.eup %2475  ;;  %2495 = vpow2.f32 %v2202_v4 }
 0x205   : > { %2497 = vrcp.f32 %v1047_v11  ;;  %v1050_v33 = vadd.f32 1.0, %v2476_v20 }
 0x206   : > { %2499 = vpow2.f32 %v2203_v9 }
 0x207   : > { %2501 = vrcp.f32 %v1048_v55 }
 0x22c   : > { %v1257_v18 = vpop.permute.xlu0 %1256 }
 0x22d   : > { %v1352_v21 = vmul.f32 %v3220_v14, %v1257_v18  ;;  %v1261_v23 = vpop.permute.xlu1 %1260  ;;  %v2204_v18 = vmul.f32 -1.442695, %v3164_v2 }
 0x22e   : > { %v1354_v25 = vmul.f32 %v3223_v17, %v1261_v23  ;;  %v3269_v23 = vpop.eup %2477 }
 0x22f   : > { %1416 = vrot.lane.b32.xlu0 %v1352_v21, %s2670_s13  ;;  %v2480_v26 = vpop.eup %2479  ;;  %2503 = vpow2.f32 %v2204_v18 }
 0x230   : > { %v1259_v35 = vpop.permute.xlu0 %1258  ;;  %v3274_v32 = vpop.eup %2481  ;;  %2505 = vrcp.f32 %v1049_v60  ;;  %v1051_v31 = vadd.f32 1.0, %v2480_v26 }
 0x231   : > { %v1353_v39 = vmul.f32 %v3228_v30, %v1259_v35  ;;  %v1263_v42 = vpop.permute.xlu1 %1262  ;;  %v2484_v28 = vpop.eup %2483  ;;  %v2206_v35 = vmul.f32 -1.442695, %v3174_v10  ;;  %2507 = vpow2.f32 %v2205_v29 }
 0x232   : > { %v1355_v47 = vmul.f32 %v3233_v51, %v1263_v42  ;;  %v3279_v38 = vpop.eup %2485  ;;  %v2207_v42 = vmul.f32 -1.442695, %v3179_v15  ;;  %2509 = vrcp.f32 %v1050_v33  ;;  %v1052_v34 = vadd.f32 1.0, %v2484_v28 }
 0x233   : > { %1420 = vrot.lane.b32.xlu0 %v1354_v25, %s2670_s13  ;;  %1418 = vrot.lane.b32.xlu1 %v1353_v39, %s2670_s13  ;;  %v2488_v39 = vpop.eup %2487  ;;  %2511 = vpow2.f32 %v2206_v35 }
 0x234   : > { %v1265_v37 = vpop.permute.xlu0 %1264  ;;  %v3284_v45 = vpop.eup %2489  ;;  %2513 = vrcp.f32 %v1051_v31  ;;  %v1053_v54 = vadd.f32 1.0, %v2488_v39 }
 0x235   : > { %v1356_v52 = vmul.f32 %v3237_v41, %v1265_v37  ;;  %v1267_v59 = vpop.permute.xlu1 %1266  ;;  %v2208_v37 = vmul.f32 -1.442695, %v3184_v19  ;;  %2515 = vpow2.f32 %v2207_v42 }
 0x236   : > { %v1357_v63 = vmul.f32 %v3243_v48, %v1267_v59  ;;  %v2209_v59 = vmul.f32 -1.442695, %v3189_v24  ;;  %2517 = vrcp.f32 %v1052_v34 }
 0x237   : > { %1422 = vrot.lane.b32.xlu1 %v1355_v47, %s2670_s13  ;;  %1424 = vrot.lane.b32.xlu0 %v1356_v52, %s2670_s13  ;;  %v2492_v47 = vpop.eup %2491  ;;  %2519 = vpow2.f32 %v2208_v37 }
 0x238   : > { %v1269_v58 = vpop.permute.xlu0 %1268  ;;  %v3289_v53 = vpop.eup %2493  ;;  %v1054_v61 = vadd.f32 1.0, %v2492_v47  ;;  %2521 = vrcp.f32 %v1053_v54 }
 0x239   : > { %v1358_v1 = vmul.f32 %v3247_v57, %v1269_v58  ;;  %v1271_v7 = vpop.permute.xlu1 %1270  ;;  %v2496_v52 = vpop.eup %2495  ;;  %v2210_v58 = vmul.f32 -1.442695, %v3194_v27  ;;  %2523 = vpow2.f32 %v2209_v59 }
 0x23a   : > { %v1359_v12 = vmul.f32 %v3255_v5, %v1271_v7  ;;  %v3294_v56 = vpop.eup %2497  ;;  %v1055_v62 = vadd.f32 1.0, %v2496_v52  ;;  %2525 = vrcp.f32 %v1054_v61 }
 0x23b   : > { %1426 = vrot.lane.b32.xlu1 %v1357_v63, %s2670_s13  ;;  %1428 = vrot.lane.b32.xlu0 %v1358_v1, %s2670_s13  ;;  %v2500_v63 = vpop.eup %2499  ;;  %2527 = vpow2.f32 %v2210_v58 }
 0x23c   : > { %v1273_v16 = vpop.permute.xlu0 %1272  ;;  %v3299_v0 = vpop.eup %2501  ;;  %v1056_v27 = vadd.f32 1.0, %v2500_v63  ;;  %2529 = vrcp.f32 %v1055_v62 }
 0x23d   : > { %v1360_v21 = vmul.f32 %v3260_v8, %v1273_v16  ;;  %v1275_v22 = vpop.permute.xlu1 %1274  ;;  %v2504_v1 = vpop.eup %2503 }
 0x23e   : > { %v1361_v25 = vmul.f32 %v3264_v13, %v1275_v22  ;;  %v3303_v46 = vpop.eup %2505  ;;  %2531 = vrcp.f32 %v1056_v27 }
 0x23f   : > { %1430 = vrot.lane.b32.xlu1 %v1359_v12, %s2670_s13  ;;  %1432 = vrot.lane.b32.xlu0 %v1360_v21, %s2670_s13  ;;  %v2508_v7 = vpop.eup %2507  ;;  %v1057_v12 = vadd.f32 1.0, %v2504_v1 }
 0x240   : > { %v1277_v2 = vpop.permute.xlu0 %1276  ;;  %v3307_v49 = vpop.eup %2509  ;;  %v1058_v21 = vadd.f32 1.0, %v2508_v7 }
 0x241   : > { %v1362_v36 = vmul.f32 %v3269_v23, %v1277_v2  ;;  %v1279_v6 = vpop.permute.xlu1 %1278  ;;  %v2512_v16 = vpop.eup %2511  ;;  %2533 = vrcp.f32 %v1057_v12 }
 0x242   : > { %v1363_v44 = vmul.f32 %v3274_v32, %v1279_v6  ;;  %v3311_v20 = vpop.eup %2513  ;;  %2535 = vrcp.f32 %v1058_v21 }
 0x243   : > { %1434 = vrot.lane.b32.xlu1 %v1361_v25, %s2670_s13  ;;  %1436 = vrot.lane.b32.xlu0 %v1362_v36, %s2670_s13  ;;  %v2516_v22 = vpop.eup %2515  ;;  %v1059_v25 = vadd.f32 1.0, %v2512_v16 }
 0x244   : > { %v1281_v10 = vpop.permute.xlu0 %1280  ;;  %v3315_v26 = vpop.eup %2517  ;;  %v1060_v36 = vadd.f32 1.0, %v2516_v22 }
 0x245   : > { %v1364_v50 = vmul.f32 %v3279_v38, %v1281_v10  ;;  %v1283_v15 = vpop.permute.xlu1 %1282  ;;  %3903 = vst [vmem:[#allocation4_spill] sm:$0xff] %v3315_v26  ;;  %v2520_v2 = vpop.eup %2519  ;;  %2537 = vrcp.f32 %v1059_v25 }
 0x246   : > { %v1365_v40 = vmul.f32 %v3284_v45, %v1283_v15  ;;  %v3319_v28 = vpop.eup %2521  ;;  %2539 = vrcp.f32 %v1060_v36  ;;  %v1161_v36 = vld [vmem:[%s2902_s8 + $0x8] sm:$0xff] }
 0x247   : > { %1438 = vrot.lane.b32.xlu1 %v1363_v44, %s2670_s13  ;;  %1440 = vrot.lane.b32.xlu0 %v1364_v50, %s2670_s13  ;;  %3904 = vst [vmem:[#allocation5_spill] sm:$0xff] %v3319_v28  ;;  %v2524_v6 = vpop.eup %2523  ;;  %v1061_v44 = vadd.f32 1.0, %v2520_v2  ;;  %v1160_v2 = vld [vmem:[%s2902_s8] sm:$0xff] }
 0x248   : > { %v1285_v19 = vpop.permute.xlu0 %1284  ;;  %v3323_v39 = vpop.eup %2525  ;;  %v1062_v50 = vadd.f32 1.0, %v2524_v6 }
 0x249   : > { %v1366_v43 = vmul.f32 %v3289_v53, %v1285_v19  ;;  %v1287_v24 = vpop.permute.xlu1 %1286  ;;  %3905 = vst [vmem:[#allocation6_spill] sm:$0xff] %v3323_v39  ;;  %v2528_v10 = vpop.eup %2527  ;;  %2541 = vrcp.f32 %v1061_v44  ;;  %v1193_v44 = vmul.f32 %v3228_v30, %v1161_v36 }
 0x24a   : > { %v1367_v3 = vmul.f32 %v3294_v56, %v1287_v24  ;;  %v3327_v47 = vpop.eup %2529  ;;  %v1063_v59 = vadd.f32 1.0, %v2528_v10  ;;  %2543 = vrcp.f32 %v1062_v50  ;;  %v1163_v10 = vld [vmem:[%s2902_s8 + $0x18] sm:$0xff] }
 0x24b   : > { %1442 = vrot.lane.b32.xlu1 %v1365_v40, %s2670_s13  ;;  %1444 = vrot.lane.b32.xlu0 %v1366_v43, %s2670_s13  ;;  %3906 = vst [vmem:[#allocation7_spill] sm:$0xff] %v3327_v47  ;;  %v3331_v54 = vpop.eup %2531 }
 0x24c   : > { %v1289_v4 = vpop.permute.xlu0 %1288  ;;  %3907 = vst [vmem:[#allocation8_spill] sm:$0xff] %v3331_v54  ;;  %v3335_v19 = vpop.eup %2533  ;;  %2545 = vrcp.f32 %v1063_v59  ;;  %v1195_v59 = vmul.f32 %v3233_v51, %v1163_v10 }
 0x24d   : > { %v1368_v11 = vmul.f32 %v3299_v0, %v1289_v4  ;;  %v1291_v9 = vpop.permute.xlu1 %1290  ;;  %v3339_v58 = vpop.eup %2535 }
 0x24e   : > { %v1369_v55 = vmul.f32 %v3303_v46, %v1291_v9 }
 0x24f   : > { %1446 = vrot.lane.b32.xlu1 %v1367_v3, %s2670_s13  ;;  %1448 = vrot.lane.b32.xlu0 %v1368_v11, %s2670_s13  ;;  %v3343_v62 = vpop.eup %2537 }
 0x250   : > { %v1293_v18 = vpop.permute.xlu0 %1292  ;;  %v3347_v4 = vpop.eup %2539 }
 0x251   : > { %v1370_v60 = vmul.f32 %v3307_v49, %v1293_v18  ;;  %v1295_v29 = vpop.permute.xlu1 %1294 }
 0x252   : > { %v1371_v33 = vmul.f32 %v3311_v20, %v1295_v29 }
 0x253   : > { %1450 = vrot.lane.b32.xlu1 %v1369_v55, %s2670_s13  ;;  %1452 = vrot.lane.b32.xlu0 %v1370_v60, %s2670_s13  ;;  %v3351_v11 = vpop.eup %2541 }
 0x254   : > { %v1297_v35 = vpop.permute.xlu0 %1296  ;;  %v3355_v16 = vpop.eup %2543 }
 0x255   : > { %v1372_v31 = vmul.f32 %v3315_v26, %v1297_v35  ;;  %v1299_v42 = vpop.permute.xlu1 %1298  ;;  %v1162_v35 = vld [vmem:[%s2902_s8 + $0x10] sm:$0xff] }
 0x256   : > { %v1373_v34 = vmul.f32 %v3319_v28, %v1299_v42  ;;  %v3359_v21 = vpop.eup %2545  ;;  %v1194_v42 = vmul.f32 %v3223_v17, %v1162_v35  ;;  %v1170_v35 = vld [vmem:[%s2902_s8 + $0x50] sm:$0xff] }
 0x257   : > { %1454 = vrot.lane.b32.xlu1 %v1371_v33, %s2670_s13  ;;  %1456 = vrot.lane.b32.xlu0 %v1372_v31, %s2670_s13  ;;  %v1192_v33 = vmul.f32 %v3220_v14, %v1160_v2 }
 0x258   : > { %v1301_v37 = vpop.permute.xlu0 %1300 }
 0x259   : > { %v1374_v15 = vmul.f32 %v3323_v39, %v1301_v37  ;;  %v1303_v52 = vpop.permute.xlu1 %1302 }
 0x25a   : > { %v1375_v40 = vmul.f32 %v3327_v47, %v1303_v52 }
 0x25b   : > { %1458 = vrot.lane.b32.xlu1 %v1373_v34, %s2670_s13  ;;  %1460 = vrot.lane.b32.xlu0 %v1374_v15, %s2670_s13  ;;  %v1164_v34 = vld [vmem:[%s2902_s8 + $0x20] sm:$0xff] }
 0x25c   : > { %v1305_v61 = vpop.permute.xlu0 %1304 }
 0x25d   : > { %v1376_v63 = vmul.f32 %v3331_v54, %v1305_v61  ;;  %v1307_v43 = vpop.permute.xlu1 %1306  ;;  %v1165_v61 = vld [vmem:[%s2902_s8 + $0x28] sm:$0xff] }
 0x25e   : > { %v1377_v24 = vmul.f32 %v3335_v19, %v1307_v43 }
 0x25f   : > { %1462 = vrot.lane.b32.xlu1 %v1375_v40, %s2670_s13  ;;  %1464 = vrot.lane.b32.xlu0 %v1376_v63, %s2670_s13  ;;  %v1196_v40 = vmul.f32 %v3237_v41, %v1164_v34  ;;  %v1166_v63 = vld [vmem:[%s2902_s8 + $0x30] sm:$0xff]  ;;  %v1202_v34 = vmul.f32 %v3269_v23, %v1170_v35 }
 0x260   : > { %v1309_v1 = vpop.permute.xlu0 %1308 }
 0x261   : > { %v1378_v3 = vmul.f32 %v3339_v58, %v1309_v1  ;;  %v1311_v27 = vpop.permute.xlu1 %1310 }
 0x262   : > { %v1379_v7 = vmul.f32 %v3343_v62, %v1311_v27  ;;  %v1197_v27 = vmul.f32 %v3243_v48, %v1165_v61 }
 0x263   : > { %1466 = vrot.lane.b32.xlu1 %v1377_v24, %s2670_s13  ;;  %1468 = vrot.lane.b32.xlu0 %v1378_v3, %s2670_s13 }
 0x264   : > { %v1313_v9 = vpop.permute.xlu0 %1312 }
 0x265   : > { %v1380_v12 = vmul.f32 %v3347_v4, %v1313_v9  ;;  %v1315_v55 = vpop.permute.xlu1 %1314  ;;  %v1167_v9 = vld [vmem:[%s2902_s8 + $0x38] sm:$0xff] }
 0x266   : > { %v1381_v18 = vmul.f32 %v3351_v11, %v1315_v55 }
 0x267   : > { %1470 = vrot.lane.b32.xlu1 %v1379_v7, %s2670_s13  ;;  %1472 = vrot.lane.b32.xlu0 %v1380_v12, %s2670_s13  ;;  %v1198_v7 = vmul.f32 %v3247_v57, %v1166_v63  ;;  %v1173_v63 = vld [vmem:[%s2902_s8 + $0x68] sm:$0xff] }
 0x268   : > { %v1317_v22 = vpop.permute.xlu0 %1316 }
 0x269   : > { %v1382_v60 = vmul.f32 %v3355_v16, %v1317_v22  ;;  %v1319_v29 = vpop.permute.xlu1 %1318 }
 0x26a   : > { %v1383_v25 = vmul.f32 %v3359_v21, %v1319_v29  ;;  %v1199_v29 = vmul.f32 %v3255_v5, %v1167_v9 }
 0x26b   : > { %1474 = vrot.lane.b32.xlu1 %v1381_v18, %s2670_s13  ;;  %1476 = vrot.lane.b32.xlu0 %v1382_v60, %s2670_s13  ;;  %v1168_v18 = vld [vmem:[%s2902_s8 + $0x40] sm:$0xff] }
 0x26c   : > { %v1200_v2 = vmul.f32 %v3260_v8, %v1168_v18  ;;  %v1175_v18 = vld [vmem:[%s2902_s8 + $0x78] sm:$0xff] }
 0x26f   : > { %1478 = vrot.lane.b32.xlu1 %v1383_v25, %s2670_s13  ;;  %v1169_v25 = vld [vmem:[%s2902_s8 + $0x48] sm:$0xff] }
 0x2a1   : > { %v1417_v6 = vpop.permute.xlu0 %1416 }
 0x2a2   : > { %v3370_v31 = vadd.f32 %v1417_v6, %v1192_v33  ;;  %v1201_v6 = vmul.f32 %v3264_v13, %v1169_v25 }
 0x2a4   : > { %1896 = vrot.lane.b32.xlu0 %v3370_v31, %s2671_s14  ;;  %2547 = vtanh.f32 %v3370_v31 }
 0x2a5   : > { %v1421_v37 = vpop.permute.xlu0 %1420  ;;  %v1419_v50 = vpop.permute.xlu1 %1418 }
 0x2a6   : > { %v3378_v15 = vadd.f32 %v1421_v37, %v1194_v42  ;;  %v3380_v52 = vadd.f32 %v1419_v50, %v1193_v44  ;;  %v1171_v44 = vld [vmem:[%s2902_s8 + $0x58] sm:$0xff]  ;;  %v1172_v50 = vld [vmem:[%s2902_s8 + $0x60] sm:$0xff] }
 0x2a8   : > { %1900 = vrot.lane.b32.xlu0 %v3378_v15, %s2671_s14  ;;  %1898 = vrot.lane.b32.xlu1 %v3380_v52, %s2671_s14  ;;  %2549 = vtanh.f32 %v3380_v52 }
 0x2a9   : > { %v1423_v43 = vpop.permute.xlu1 %1422  ;;  %v1425_v24 = vpop.permute.xlu0 %1424  ;;  %2551 = vtanh.f32 %v3378_v15 }
 0x2aa   : > { %v3390_v1 = vadd.f32 %v1423_v43, %v1195_v59  ;;  %v3392_v3 = vadd.f32 %v1425_v24, %v1196_v40  ;;  %v1203_v40 = vmul.f32 %v3274_v32, %v1171_v44  ;;  %v1204_v24 = vmul.f32 %v3279_v38, %v1172_v50  ;;  %v1177_v44 = vld [vmem:[%s2902_s8 + $0x88] sm:$0xff] }
 0x2ac   : > { %1902 = vrot.lane.b32.xlu1 %v3390_v1, %s2671_s14  ;;  %1904 = vrot.lane.b32.xlu0 %v3392_v3, %s2671_s14  ;;  %2553 = vtanh.f32 %v3390_v1 }
 0x2ad   : > { %v1427_v12 = vpop.permute.xlu1 %1426  ;;  %v1429_v55 = vpop.permute.xlu0 %1428  ;;  %2555 = vtanh.f32 %v3392_v3 }
 0x2ae   : > { %v3402_v22 = vadd.f32 %v1427_v12, %v1197_v27  ;;  %v3404_v60 = vadd.f32 %v1429_v55, %v1198_v7  ;;  %v1174_v7 = vld [vmem:[%s2902_s8 + $0x70] sm:$0xff]  ;;  %v1205_v12 = vmul.f32 %v3284_v45, %v1173_v63  ;;  %v1209_v63 = vmul.f32 %v3303_v46, %v1177_v44  ;;  %v2548_v15 = vpop.eup %2547 }
 0x2af   : > { %v1206_v25 = vmul.f32 %v3289_v53, %v1174_v7 }
 0x2b0   : > { %1906 = vrot.lane.b32.xlu1 %v3402_v22, %s2671_s14  ;;  %1908 = vrot.lane.b32.xlu0 %v3404_v60, %s2671_s14  ;;  %2557 = vtanh.f32 %v3402_v22 }
 0x2b1   : > { %v1431_v33 = vpop.permute.xlu1 %1430  ;;  %v1433_v42 = vpop.permute.xlu0 %1432  ;;  %2559 = vtanh.f32 %v3404_v60 }
 0x2b2   : > { %v3414_v36 = vadd.f32 %v1431_v33, %v1199_v29  ;;  %v3418_v10 = vadd.f32 %v1433_v42, %v1200_v2  ;;  %v1176_v33 = vld [vmem:[%s2902_s8 + $0x80] sm:$0xff] }
 0x2b4   : > { %1910 = vrot.lane.b32.xlu1 %v3414_v36, %s2671_s14  ;;  %1912 = vrot.lane.b32.xlu0 %v3418_v10, %s2671_s14  ;;  %2561 = vtanh.f32 %v3414_v36 }
 0x2b5   : > { %v1435_v37 = vpop.permute.xlu1 %1434  ;;  %v1437_v61 = vpop.permute.xlu0 %1436  ;;  %2563 = vtanh.f32 %v3418_v10 }
 0x2b6   : > { %v3426_v59 = vadd.f32 %v1435_v37, %v1201_v6  ;;  %v3430_v43 = vadd.f32 %v1437_v61, %v1202_v34  ;;  %v1207_v6 = vmul.f32 %v3294_v56, %v1175_v18  ;;  %v1208_v37 = vmul.f32 %v3299_v0, %v1176_v33  ;;  %v1180_v18 = vld [vmem:[%s2902_s8 + $0xa0] sm:$0xff] }
 0x2b7   : > { %v1212_v44 = vmul.f32 %v3315_v26, %v1180_v18 }
 0x2b8   : > { %1914 = vrot.lane.b32.xlu1 %v3426_v59, %s2671_s14  ;;  %1916 = vrot.lane.b32.xlu0 %v3430_v43, %s2671_s14  ;;  %2565 = vtanh.f32 %v3426_v59 }
 0x2b9   : > { %v1439_v27 = vpop.permute.xlu1 %1438  ;;  %v1441_v55 = vpop.permute.xlu0 %1440  ;;  %2567 = vtanh.f32 %v3430_v43 }
 0x2ba   : > { %v3438_v9 = vadd.f32 %v1439_v27, %v1203_v40  ;;  %v3442_v29 = vadd.f32 %v1441_v55, %v1204_v24  ;;  %v1178_v40 = vld [vmem:[%s2902_s8 + $0x90] sm:$0xff]  ;;  %v1179_v27 = vld [vmem:[%s2902_s8 + $0x98] sm:$0xff] }
 0x2bc   : > { %1918 = vrot.lane.b32.xlu1 %v3438_v9, %s2671_s14  ;;  %1920 = vrot.lane.b32.xlu0 %v3442_v29, %s2671_s14  ;;  %2569 = vtanh.f32 %v3438_v9 }
 0x2bd   : > { %v1443_v2 = vpop.permute.xlu1 %1442  ;;  %v1445_v42 = vpop.permute.xlu0 %1444  ;;  %2571 = vtanh.f32 %v3442_v29 }
 0x2be   : > { %v3450_v35 = vadd.f32 %v1443_v2, %v1205_v12  ;;  %v3454_v34 = vadd.f32 %v1445_v42, %v1206_v25  ;;  %v1210_v12 = vmul.f32 %v3307_v49, %v1178_v40  ;;  %v1211_v2 = vmul.f32 %v3311_v20, %v1179_v27  ;;  %v1183_v27 = vld [vmem:[%s2902_s8 + $0xb8] sm:$0xff] }
 0x2c0   : > { %1922 = vrot.lane.b32.xlu1 %v3450_v35, %s2671_s14  ;;  %1924 = vrot.lane.b32.xlu0 %v3454_v34, %s2671_s14  ;;  %2573 = vtanh.f32 %v3450_v35 }
 0x2c1   : > { %v1447_v50 = vpop.permute.xlu1 %1446  ;;  %v1449_v24 = vpop.permute.xlu0 %1448  ;;  %2575 = vtanh.f32 %v3454_v34 }
 0x2c2   : > { %v3462_v61 = vadd.f32 %v1447_v50, %v1207_v6  ;;  %v3466_v7 = vadd.f32 %v1449_v24, %v1208_v37  ;;  %v1181_v6 = vld [vmem:[%s2902_s8 + $0xa8] sm:$0xff]  ;;  %v1182_v50 = vld [vmem:[%s2902_s8 + $0xb0] sm:$0xff] }
 0x2c4   : > { %1926 = vrot.lane.b32.xlu1 %v3462_v61, %s2671_s14  ;;  %1928 = vrot.lane.b32.xlu0 %v3466_v7, %s2671_s14  ;;  %2577 = vtanh.f32 %v3462_v61 }
 0x2c5   : > { %v1451_v55 = vpop.permute.xlu1 %1450  ;;  %v1453_v33 = vpop.permute.xlu0 %1452  ;;  %2579 = vtanh.f32 %v3466_v7 }
 0x2c6   : > { %v3474_v25 = vadd.f32 %v1451_v55, %v1209_v63  ;;  %v3478_v42 = vadd.f32 %v1453_v33, %v1210_v12  ;;  %v1213_v63 = vmul.f32 %v3319_v28, %v1181_v6  ;;  %v1214_v55 = vmul.f32 %v3323_v39, %v1182_v50  ;;  %v1184_v33 = vld [vmem:[%s2902_s8 + $0xc0] sm:$0xff]  ;;  %v1185_v28 = vld [vmem:[%s2902_s8 + $0xc8] sm:$0xff]  ;;  %v1186_v39 = vld [vmem:[%s2902_s8 + $0xd0] sm:$0xff] }
 0x2c7   : > { %v1215_v6 = vmul.f32 %v3327_v47, %v1183_v27  ;;  %v1216_v50 = vmul.f32 %v3331_v54, %v1184_v33  ;;  %v1217_v27 = vmul.f32 %v3335_v19, %v1185_v28  ;;  %v1187_v47 = vld [vmem:[%s2902_s8 + $0xd8] sm:$0xff] }
 0x2c8   : > { %1930 = vrot.lane.b32.xlu1 %v3474_v25, %s2671_s14  ;;  %1932 = vrot.lane.b32.xlu0 %v3478_v42, %s2671_s14 }
 0x2c9   : > { %v1455_v37 = vpop.permute.xlu1 %1454  ;;  %v1457_v24 = vpop.permute.xlu0 %1456 }
 0x2ca   : > { %v3486_v40 = vadd.f32 %v1455_v37, %v1211_v2  ;;  %v3490_v12 = vadd.f32 %v1457_v24, %v1212_v44 }
 0x2cc   : > { %1934 = vrot.lane.b32.xlu1 %v3486_v40, %s2671_s14  ;;  %1936 = vrot.lane.b32.xlu0 %v3490_v12, %s2671_s14 }
 0x2cd   : > { %v1459_v18 = vpop.permute.xlu1 %1458  ;;  %v1461_v37 = vpop.permute.xlu0 %1460 }
 0x2ce   : > { %v3498_v2 = vadd.f32 %v1459_v18, %v1213_v63  ;;  %v3502_v44 = vadd.f32 %v1461_v37, %v1214_v55  ;;  %v1218_v55 = vmul.f32 %v3339_v58, %v1186_v39  ;;  %v1188_v37 = vld [vmem:[%s2902_s8 + $0xe0] sm:$0xff] }
 0x2cf   : > { %v1220_v39 = vmul.f32 %v3347_v4, %v1188_v37  ;;  %v2550_v37 = vpop.eup %2549  ;;  %2581 = vtanh.f32 %v3474_v25 }
 0x2d0   : > { %1938 = vrot.lane.b32.xlu1 %v3498_v2, %s2671_s14  ;;  %1940 = vrot.lane.b32.xlu0 %v3502_v44, %s2671_s14  ;;  %v2552_v1 = vpop.eup %2551  ;;  %2583 = vtanh.f32 %v3478_v42 }
 0x2d1   : > { %v1463_v24 = vpop.permute.xlu1 %1462  ;;  %v1465_v18 = vpop.permute.xlu0 %1464 }
 0x2d2   : > { %v3510_v63 = vadd.f32 %v1463_v24, %v1215_v6  ;;  %v3514_v26 = vadd.f32 %v1465_v18, %v1216_v50  ;;  %v1219_v6 = vmul.f32 %v3343_v62, %v1187_v47  ;;  %v1189_v24 = vld [vmem:[%s2902_s8 + $0xe8] sm:$0xff] }
 0x2d3   : > { %v1221_v47 = vmul.f32 %v3351_v11, %v1189_v24 }
 0x2d4   : > { %1942 = vrot.lane.b32.xlu1 %v3510_v63, %s2671_s14  ;;  %1944 = vrot.lane.b32.xlu0 %v3514_v26, %s2671_s14 }
 0x2d5   : > { %v1467_v33 = vpop.permute.xlu1 %1466  ;;  %v1469_v28 = vpop.permute.xlu0 %1468 }
 0x2d6   : > { %v3522_v54 = vadd.f32 %v1467_v33, %v1217_v27  ;;  %v3527_v50 = vadd.f32 %v1469_v28, %v1218_v55 }
 0x2d8   : > { %1946 = vrot.lane.b32.xlu1 %v3522_v54, %s2671_s14  ;;  %1948 = vrot.lane.b32.xlu0 %v3527_v50, %s2671_s14 }
 0x2d9   : > { %v1471_v18 = vpop.permute.xlu1 %1470  ;;  %v1473_v31 = vpop.permute.xlu0 %1472 }
 0x2da   : > { %v3535_v27 = vadd.f32 %v1471_v18, %v1219_v6  ;;  %v3539_v55 = vadd.f32 %v1473_v31, %v1220_v39  ;;  %v2554_v6 = vpop.eup %2553  ;;  %2585 = vtanh.f32 %v3486_v40  ;;  %v1190_v40 = vld [vmem:[%s2902_s8 + $0xf0] sm:$0xff] }
 0x2db   : > { %v2556_v3 = vpop.eup %2555  ;;  %2587 = vtanh.f32 %v3490_v12  ;;  %v1191_v12 = vld [vmem:[%s2902_s8 + $0xf8] sm:$0xff]  ;;  %v1222_v24 = vmul.f32 %v3355_v16, %v1190_v40 }
 0x2dc   : > { %1950 = vrot.lane.b32.xlu1 %v3535_v27, %s2671_s14  ;;  %1952 = vrot.lane.b32.xlu0 %v3539_v55, %s2671_s14  ;;  %v2558_v22 = vpop.eup %2557  ;;  %2589 = vtanh.f32 %v3498_v2 }
 0x2dd   : > { %v1475_v33 = vpop.permute.xlu1 %1474  ;;  %v2560_v60 = vpop.eup %2559  ;;  %2591 = vtanh.f32 %v3502_v44 }
 0x2de   : > { %v3546_v52 = vadd.f32 %v1475_v33, %v1221_v47  ;;  %v2562_v36 = vpop.eup %2561  ;;  %2593 = vtanh.f32 %v3510_v63  ;;  %v1477_v44 = vpop.permute.xlu0 %1476  ;;  %v1223_v63 = vmul.f32 %v3359_v21, %v1191_v12 }
 0x2df   : > { %v2564_v10 = vpop.eup %2563  ;;  %2595 = vtanh.f32 %v3514_v26  ;;  %v3600_v47 = vadd.f32 %v1477_v44, %v1222_v24 }
 0x2e0   : > { %1954 = vrot.lane.b32.xlu1 %v3546_v52, %s2671_s14  ;;  %1608 = vrot.lane.b32.xlu0 %v2548_v15, %s2669_s17  ;;  %v2566_v59 = vpop.eup %2565  ;;  %2597 = vtanh.f32 %v3522_v54 }
 0x2e1   : > { %v2568_v43 = vpop.eup %2567  ;;  %2599 = vtanh.f32 %v3527_v50  ;;  %v1479_v18 = vpop.permute.xlu1 %1478 }
 0x2e2   : > { %v2570_v9 = vpop.eup %2569  ;;  %2601 = vtanh.f32 %v3535_v27  ;;  %v3604_v31 = vadd.f32 %v1479_v18, %v1223_v63 }
 0x2e3   : > { %v2572_v29 = vpop.eup %2571  ;;  %2603 = vtanh.f32 %v3539_v55 }
 0x2e4   : > { %1610 = vrot.lane.b32.xlu1 %v2550_v37, %s2669_s17  ;;  %1612 = vrot.lane.b32.xlu0 %v2552_v1, %s2669_s17  ;;  %v2574_v35 = vpop.eup %2573  ;;  %2605 = vtanh.f32 %v3546_v52 }
 0x2e5   : > { %v2576_v34 = vpop.eup %2575  ;;  %2607 = vtanh.f32 %v3600_v47 }
 0x2e6   : > { %v2578_v61 = vpop.eup %2577  ;;  %2609 = vtanh.f32 %v3604_v31 }
 0x2e7   : > { %v2580_v7 = vpop.eup %2579 }
 0x2e8   : > { %1614 = vrot.lane.b32.xlu1 %v2554_v6, %s2669_s17  ;;  %1616 = vrot.lane.b32.xlu0 %v2556_v3, %s2669_s17  ;;  %v2582_v25 = vpop.eup %2581 }
 0x2e9   : > { %v2584_v42 = vpop.eup %2583 }
 0x2ea   : > { %v2586_v28 = vpop.eup %2585 }
 0x2eb   : > { %v2588_v2 = vpop.eup %2587 }
 0x2ec   : > { %1618 = vrot.lane.b32.xlu1 %v2558_v22, %s2669_s17  ;;  %1620 = vrot.lane.b32.xlu0 %v2560_v60, %s2669_s17  ;;  %v2590_v39 = vpop.eup %2589 }
 0x2ed   : > { %v2592_v26 = vpop.eup %2591 }
 0x2ee   : > { %v2594_v54 = vpop.eup %2593 }
 0x2ef   : > { %v2596_v50 = vpop.eup %2595 }
 0x2f0   : > { %1622 = vrot.lane.b32.xlu1 %v2562_v36, %s2669_s17  ;;  %1624 = vrot.lane.b32.xlu0 %v2564_v10, %s2669_s17  ;;  %v2598_v33 = vpop.eup %2597 }
 0x2f1   : > { %v2600_v27 = vpop.eup %2599 }
 0x2f2   : > { %v2602_v55 = vpop.eup %2601 }
 0x2f3   : > { %v2604_v52 = vpop.eup %2603 }
 0x2f4   : > { %1626 = vrot.lane.b32.xlu1 %v2566_v59, %s2669_s17  ;;  %1628 = vrot.lane.b32.xlu0 %v2568_v43, %s2669_s17  ;;  %v2606_v1 = vpop.eup %2605 }
 0x2f5   : > { %v2608_v3 = vpop.eup %2607 }
 0x2f6   : > { %v2610_v22 = vpop.eup %2609 }
 0x2f8   : > { %1630 = vrot.lane.b32.xlu1 %v2570_v9, %s2669_s17  ;;  %1632 = vrot.lane.b32.xlu0 %v2572_v29, %s2669_s17 }
 0x2fc   : > { %1634 = vrot.lane.b32.xlu1 %v2574_v35, %s2669_s17  ;;  %1636 = vrot.lane.b32.xlu0 %v2576_v34, %s2669_s17 }
 0x300   : > { %1638 = vrot.lane.b32.xlu1 %v2578_v61, %s2669_s17  ;;  %1640 = vrot.lane.b32.xlu0 %v2580_v7, %s2669_s17 }
 0x304   : > { %1642 = vrot.lane.b32.xlu1 %v2582_v25, %s2669_s17  ;;  %1644 = vrot.lane.b32.xlu0 %v2584_v42, %s2669_s17 }
 0x308   : > { %1646 = vrot.lane.b32.xlu1 %v2586_v28, %s2669_s17  ;;  %1648 = vrot.lane.b32.xlu0 %v2588_v2, %s2669_s17 }
 0x30c   : > { %1650 = vrot.lane.b32.xlu1 %v2590_v39, %s2669_s17  ;;  %1652 = vrot.lane.b32.xlu0 %v2592_v26, %s2669_s17 }
 0x310   : > { %1654 = vrot.lane.b32.xlu1 %v2594_v54, %s2669_s17  ;;  %1656 = vrot.lane.b32.xlu0 %v2596_v50, %s2669_s17 }
 0x314   : > { %1658 = vrot.lane.b32.xlu1 %v2598_v33, %s2669_s17  ;;  %1660 = vrot.lane.b32.xlu0 %v2600_v27, %s2669_s17 }
 0x316   : > { %v3612_v15 = vpop.permute.xlu0 %1896 }
 0x318   : > { %1662 = vrot.lane.b32.xlu1 %v2602_v55, %s2669_s17  ;;  %1664 = vrot.lane.b32.xlu0 %v2604_v52, %s2669_s17 }
 0x31a   : > { %v3616_v37 = vpop.permute.xlu0 %1900  ;;  %v3619_v6 = vpop.permute.xlu1 %1898 }
 0x31c   : > { %1666 = vrot.lane.b32.xlu1 %v2606_v1, %s2669_s17  ;;  %1668 = vrot.lane.b32.xlu0 %v2608_v3, %s2669_s17 }
 0x31e   : > { %v3623_v60 = vpop.permute.xlu1 %1902  ;;  %v3625_v36 = vpop.permute.xlu0 %1904 }
 0x320   : > { %1670 = vrot.lane.b32.xlu1 %v2610_v22, %s2669_s17 }
 0x322   : > { %v3628_v10 = vpop.permute.xlu1 %1906  ;;  %v3630_v59 = vpop.permute.xlu0 %1908 }
 0x326   : > { %v3632_v43 = vpop.permute.xlu1 %1910  ;;  %v3634_v9 = vpop.permute.xlu0 %1912 }
 0x32a   : > { %v3636_v29 = vpop.permute.xlu1 %1914  ;;  %v3638_v35 = vpop.permute.xlu0 %1916 }
 0x32e   : > { %v3640_v34 = vpop.permute.xlu1 %1918  ;;  %v3642_v61 = vpop.permute.xlu0 %1920 }
 0x332   : > { %v3644_v7 = vpop.permute.xlu1 %1922  ;;  %v3646_v25 = vpop.permute.xlu0 %1924 }
 0x336   : > { %v3648_v42 = vpop.permute.xlu1 %1926  ;;  %v3650_v40 = vpop.permute.xlu0 %1928 }
 0x33a   : > { %v3652_v28 = vpop.permute.xlu1 %1930  ;;  %v3654_v12 = vpop.permute.xlu0 %1932 }
 0x33e   : > { %v3656_v2 = vpop.permute.xlu1 %1934  ;;  %v3658_v24 = vpop.permute.xlu0 %1936 }
 0x342   : > { %v3660_v44 = vpop.permute.xlu1 %1938  ;;  %v3662_v39 = vpop.permute.xlu0 %1940 }
 0x346   : > { %v3664_v63 = vpop.permute.xlu1 %1942  ;;  %v3666_v18 = vpop.permute.xlu0 %1944 }
 0x347   : > { %3908 = vst [vmem:[#allocation9_spill] sm:$0xff] %v3666_v18 }
 0x34a   : > { %v3668_v26 = vpop.permute.xlu1 %1946  ;;  %v3670_v54 = vpop.permute.xlu0 %1948 }
 0x34b   : > { %3909 = vst [vmem:[#allocation10_spill] sm:$0xff] %v3670_v54 }
 0x34e   : > { %v3672_v50 = vpop.permute.xlu1 %1950  ;;  %v3674_v33 = vpop.permute.xlu0 %1952 }
 0x34f   : > { %3910 = vst [vmem:[#allocation11_spill] sm:$0xff] %v3672_v50  ;;  %3911 = vst [vmem:[#allocation12_spill] sm:$0xff] %v3674_v33 }
 0x352   : > { %v3676_v27 = vpop.permute.xlu1 %1954  ;;  %v1609_v55 = vpop.permute.xlu0 %1608 }
 0x353   : > { %3912 = vst [vmem:[#allocation13_spill] sm:$0xff] %v3676_v27  ;;  %v1704_v52 = vmul.f32 %v3220_v14, %v1609_v55 }
 0x355   : > { %1768 = vrot.lane.b32.xlu0 %v1704_v52, %s2669_s17 }
 0x356   : > { %v1611_v1 = vpop.permute.xlu1 %1610  ;;  %v1613_v22 = vpop.permute.xlu0 %1612 }
 0x357   : > { %v1705_v3 = vmul.f32 %v3228_v30, %v1611_v1  ;;  %v1706_v18 = vmul.f32 %v3223_v17, %v1613_v22 }
 0x359   : > { %1770 = vrot.lane.b32.xlu1 %v1705_v3, %s2669_s17  ;;  %1772 = vrot.lane.b32.xlu0 %v1706_v18, %s2669_s17 }
 0x35a   : > { %v1615_v54 = vpop.permute.xlu1 %1614  ;;  %v1617_v50 = vpop.permute.xlu0 %1616 }
 0x35b   : > { %v1707_v33 = vmul.f32 %v3233_v51, %v1615_v54  ;;  %v1708_v27 = vmul.f32 %v3237_v41, %v1617_v50 }
 0x35d   : > { %1774 = vrot.lane.b32.xlu1 %v1707_v33, %s2669_s17  ;;  %1776 = vrot.lane.b32.xlu0 %v1708_v27, %s2669_s17 }
 0x35e   : > { %v1619_v14 = vpop.permute.xlu1 %1618  ;;  %v1621_v55 = vpop.permute.xlu0 %1620 }
 0x35f   : > { %v1709_v30 = vmul.f32 %v3243_v48, %v1619_v14  ;;  %v1710_v17 = vmul.f32 %v3247_v57, %v1621_v55 }
 0x361   : > { %1778 = vrot.lane.b32.xlu1 %v1709_v30, %s2669_s17  ;;  %1780 = vrot.lane.b32.xlu0 %v1710_v17, %s2669_s17 }
 0x362   : > { %v1623_v52 = vpop.permute.xlu1 %1622  ;;  %v1625_v18 = vpop.permute.xlu0 %1624 }
 0x363   : > { %v1711_v51 = vmul.f32 %v3255_v5, %v1623_v52  ;;  %v1712_v41 = vmul.f32 %v3260_v8, %v1625_v18 }
 0x365   : > { %1782 = vrot.lane.b32.xlu1 %v1711_v51, %s2669_s17  ;;  %1784 = vrot.lane.b32.xlu0 %v1712_v41, %s2669_s17  ;;  %v3913_v51 = vld [vmem:[#allocation4_spill] sm:$0xff]  ;;  %v3914_v41 = vld [vmem:[#allocation5_spill] sm:$0xff] }
 0x366   : > { %v1627_v54 = vpop.permute.xlu1 %1626  ;;  %v1629_v50 = vpop.permute.xlu0 %1628 }
 0x367   : > { %v1713_v48 = vmul.f32 %v3264_v13, %v1627_v54  ;;  %v1714_v57 = vmul.f32 %v3269_v23, %v1629_v50 }
 0x369   : > { %1786 = vrot.lane.b32.xlu1 %v1713_v48, %s2669_s17  ;;  %1788 = vrot.lane.b32.xlu0 %v1714_v57, %s2669_s17  ;;  %v3915_v48 = vld [vmem:[#allocation6_spill] sm:$0xff]  ;;  %v3916_v57 = vld [vmem:[#allocation7_spill] sm:$0xff] }
 0x36a   : > { %v1631_v33 = vpop.permute.xlu1 %1630  ;;  %v1633_v27 = vpop.permute.xlu0 %1632 }
 0x36b   : > { %v1715_v5 = vmul.f32 %v3274_v32, %v1631_v33  ;;  %v1716_v8 = vmul.f32 %v3279_v38, %v1633_v27 }
 0x36d   : > { %1790 = vrot.lane.b32.xlu1 %v1715_v5, %s2669_s17  ;;  %1792 = vrot.lane.b32.xlu0 %v1716_v8, %s2669_s17  ;;  %v3917_v5 = vld [vmem:[#allocation8_spill] sm:$0xff] }
 0x36e   : > { %v1635_v1 = vpop.permute.xlu1 %1634  ;;  %v1637_v3 = vpop.permute.xlu0 %1636 }
 0x36f   : > { %v1717_v13 = vmul.f32 %v3284_v45, %v1635_v1  ;;  %v1718_v23 = vmul.f32 %v3289_v53, %v1637_v3 }
 0x371   : > { %1794 = vrot.lane.b32.xlu1 %v1717_v13, %s2669_s17  ;;  %1796 = vrot.lane.b32.xlu0 %v1718_v23, %s2669_s17 }
 0x372   : > { %v1639_v22 = vpop.permute.xlu1 %1638  ;;  %v1641_v14 = vpop.permute.xlu0 %1640 }
 0x373   : > { %v1719_v32 = vmul.f32 %v3294_v56, %v1639_v22  ;;  %v1720_v38 = vmul.f32 %v3299_v0, %v1641_v14 }
 0x375   : > { %1798 = vrot.lane.b32.xlu1 %v1719_v32, %s2669_s17  ;;  %1800 = vrot.lane.b32.xlu0 %v1720_v38, %s2669_s17 }
 0x376   : > { %v1643_v30 = vpop.permute.xlu1 %1642  ;;  %v1645_v55 = vpop.permute.xlu0 %1644 }
 0x377   : > { %v1721_v45 = vmul.f32 %v3303_v46, %v1643_v30  ;;  %v1722_v53 = vmul.f32 %v3307_v49, %v1645_v55 }
 0x379   : > { %1802 = vrot.lane.b32.xlu1 %v1721_v45, %s2669_s17  ;;  %1804 = vrot.lane.b32.xlu0 %v1722_v53, %s2669_s17 }
 0x37a   : > { %v1647_v17 = vpop.permute.xlu1 %1646  ;;  %v1649_v52 = vpop.permute.xlu0 %1648 }
 0x37b   : > { %v1723_v56 = vmul.f32 %v3311_v20, %v1647_v17  ;;  %v1724_v0 = vmul.f32 %v3913_v51, %v1649_v52 }
 0x37d   : > { %1806 = vrot.lane.b32.xlu1 %v1723_v56, %s2669_s17  ;;  %1808 = vrot.lane.b32.xlu0 %v1724_v0, %s2669_s17 }
 0x37e   : > { %v1651_v18 = vpop.permute.xlu1 %1650  ;;  %v1653_v54 = vpop.permute.xlu0 %1652 }
 0x37f   : > { %v1725_v46 = vmul.f32 %v3914_v41, %v1651_v18  ;;  %v1726_v49 = vmul.f32 %v3915_v48, %v1653_v54 }
 0x381   : > { %1810 = vrot.lane.b32.xlu1 %v1725_v46, %s2669_s17  ;;  %1812 = vrot.lane.b32.xlu0 %v1726_v49, %s2669_s17 }
 0x382   : > { %v1655_v50 = vpop.permute.xlu1 %1654  ;;  %v1657_v33 = vpop.permute.xlu0 %1656 }
 0x383   : > { %v1727_v20 = vmul.f32 %v3916_v57, %v1655_v50  ;;  %v1728_v27 = vmul.f32 %v3917_v5, %v1657_v33 }
 0x385   : > { %1814 = vrot.lane.b32.xlu1 %v1727_v20, %s2669_s17  ;;  %1816 = vrot.lane.b32.xlu0 %v1728_v27, %s2669_s17 }
 0x386   : > { %v1659_v8 = vpop.permute.xlu1 %1658  ;;  %v1661_v13 = vpop.permute.xlu0 %1660 }
 0x387   : > { %v1729_v1 = vmul.f32 %v3335_v19, %v1659_v8  ;;  %v1730_v3 = vmul.f32 %v3339_v58, %v1661_v13 }
 0x389   : > { %1818 = vrot.lane.b32.xlu1 %v1729_v1, %s2669_s17  ;;  %1820 = vrot.lane.b32.xlu0 %v1730_v3, %s2669_s17  ;;  %v3918_v3 = vld [vmem:[#allocation9_spill] sm:$0xff] }
 0x38a   : > { %v1663_v23 = vpop.permute.xlu1 %1662  ;;  %v1665_v32 = vpop.permute.xlu0 %1664 }
 0x38b   : > { %v1731_v22 = vmul.f32 %v3343_v62, %v1663_v23  ;;  %v1732_v14 = vmul.f32 %v3347_v4, %v1665_v32  ;;  %v3919_v32 = vld [vmem:[#allocation10_spill] sm:$0xff] }
 0x38d   : > { %1822 = vrot.lane.b32.xlu1 %v1731_v22, %s2669_s17  ;;  %1824 = vrot.lane.b32.xlu0 %v1732_v14, %s2669_s17 }
 0x38e   : > { %v1667_v38 = vpop.permute.xlu1 %1666  ;;  %v1669_v30 = vpop.permute.xlu0 %1668 }
 0x38f   : > { %v1733_v19 = vmul.f32 %v3351_v11, %v1667_v38  ;;  %v1734_v58 = vmul.f32 %v3355_v16, %v1669_v30  ;;  %v3920_v38 = vld [vmem:[#allocation11_spill] sm:$0xff] }
 0x391   : > { %1826 = vrot.lane.b32.xlu1 %v1733_v19, %s2669_s17  ;;  %1828 = vrot.lane.b32.xlu0 %v1734_v58, %s2669_s17  ;;  %v3921_v58 = vld [vmem:[#allocation12_spill] sm:$0xff] }
 0x392   : > { %v1671_v45 = vpop.permute.xlu1 %1670 }
 0x393   : > { %v1735_v62 = vmul.f32 %v3359_v21, %v1671_v45 }
 0x395   : > { %1830 = vrot.lane.b32.xlu1 %v1735_v62, %s2669_s17  ;;  %1956 = vrot.lane.b32.xlu0 %v3600_v47, %s2671_s14  ;;  %v3922_v62 = vld [vmem:[#allocation13_spill] sm:$0xff] }
 0x399   : > { %1958 = vrot.lane.b32.xlu1 %v3604_v31, %s2671_s14 }
 0x3c7   : > { %v1769_v4 = vpop.permute.xlu0 %1768 }
 0x3c8   : > { %v1993_v11 = vsel %vm1992_vm0, %v1769_v4, %v3612_v15 }
 0x3c9   : > { %2026 = vst.msk [vmem:[%s2907_s10] sm:$0xff] %vm2025_vm1, %v1993_v11 }
 0x3cb   : > { %v1771_v16 = vpop.permute.xlu1 %1770  ;;  %v1773_v47 = vpop.permute.xlu0 %1772 }
 0x3cc   : > { %v1994_v21 = vsel %vm1992_vm0, %v1771_v16, %v3619_v6  ;;  %v1995_v31 = vsel %vm1992_vm0, %v1773_v47, %v3616_v37 }
 0x3cd   : > { %2027 = vst.msk [vmem:[%s2907_s10 + $0x8] sm:$0xff] %vm2025_vm1, %v1994_v21  ;;  %2028 = vst.msk [vmem:[%s2907_s10 + $0x10] sm:$0xff] %vm2025_vm1, %v1995_v31 }
 0x3cf   : > { %v1775_v55 = vpop.permute.xlu1 %1774  ;;  %v1777_v53 = vpop.permute.xlu0 %1776 }
 0x3d0   : > { %v1996_v15 = vsel %vm1992_vm0, %v1775_v55, %v3623_v60  ;;  %v1997_v6 = vsel %vm1992_vm0, %v1777_v53, %v3625_v36 }
 0x3d1   : > { %2029 = vst.msk [vmem:[%s2907_s10 + $0x18] sm:$0xff] %vm2025_vm1, %v1996_v15  ;;  %2030 = vst.msk [vmem:[%s2907_s10 + $0x20] sm:$0xff] %vm2025_vm1, %v1997_v6 }
 0x3d3   : > { %v1779_v17 = vpop.permute.xlu1 %1778  ;;  %v1781_v56 = vpop.permute.xlu0 %1780 }
 0x3d4   : > { %v1998_v37 = vsel %vm1992_vm0, %v1779_v17, %v3628_v10  ;;  %v1999_v60 = vsel %vm1992_vm0, %v1781_v56, %v3630_v59 }
 0x3d5   : > { %2031 = vst.msk [vmem:[%s2907_s10 + $0x28] sm:$0xff] %vm2025_vm1, %v1998_v37  ;;  %2032 = vst.msk [vmem:[%s2907_s10 + $0x30] sm:$0xff] %vm2025_vm1, %v1999_v60 }
 0x3d7   : > { %v1783_v52 = vpop.permute.xlu1 %1782  ;;  %v1785_v51 = vpop.permute.xlu0 %1784 }
 0x3d8   : > { %v2000_v36 = vsel %vm1992_vm0, %v1783_v52, %v3632_v43  ;;  %v2001_v10 = vsel %vm1992_vm0, %v1785_v51, %v3634_v9 }
 0x3d9   : > { %2033 = vst.msk [vmem:[%s2907_s10 + $0x38] sm:$0xff] %vm2025_vm1, %v2000_v36  ;;  %2034 = vst.msk [vmem:[%s2907_s10 + $0x40] sm:$0xff] %vm2025_vm1, %v2001_v10 }
 0x3db   : > { %v1787_v0 = vpop.permute.xlu1 %1786  ;;  %v1789_v18 = vpop.permute.xlu0 %1788 }
 0x3dc   : > { %v2002_v59 = vsel %vm1992_vm0, %v1787_v0, %v3636_v29  ;;  %v2003_v43 = vsel %vm1992_vm0, %v1789_v18, %v3638_v35 }
 0x3dd   : > { %2035 = vst.msk [vmem:[%s2907_s10 + $0x48] sm:$0xff] %vm2025_vm1, %v2002_v59  ;;  %2036 = vst.msk [vmem:[%s2907_s10 + $0x50] sm:$0xff] %vm2025_vm1, %v2003_v43 }
 0x3df   : > { %v1791_v41 = vpop.permute.xlu1 %1790  ;;  %v1793_v46 = vpop.permute.xlu0 %1792 }
 0x3e0   : > { %v2004_v9 = vsel %vm1992_vm0, %v1791_v41, %v3640_v34  ;;  %v2005_v29 = vsel %vm1992_vm0, %v1793_v46, %v3642_v61 }
 0x3e1   : > { %2037 = vst.msk [vmem:[%s2907_s10 + $0x58] sm:$0xff] %vm2025_vm1, %v2004_v9  ;;  %2038 = vst.msk [vmem:[%s2907_s10 + $0x60] sm:$0xff] %vm2025_vm1, %v2005_v29 }
 0x3e3   : > { %v1795_v54 = vpop.permute.xlu1 %1794  ;;  %v1797_v48 = vpop.permute.xlu0 %1796 }
 0x3e4   : > { %v2006_v35 = vsel %vm1992_vm0, %v1795_v54, %v3644_v7  ;;  %v2007_v34 = vsel %vm1992_vm0, %v1797_v48, %v3646_v25 }
 0x3e5   : > { %2039 = vst.msk [vmem:[%s2907_s10 + $0x68] sm:$0xff] %vm2025_vm1, %v2006_v35  ;;  %2040 = vst.msk [vmem:[%s2907_s10 + $0x70] sm:$0xff] %vm2025_vm1, %v2007_v34 }
 0x3e7   : > { %v1799_v49 = vpop.permute.xlu1 %1798  ;;  %v1801_v50 = vpop.permute.xlu0 %1800 }
 0x3e8   : > { %v2008_v61 = vsel %vm1992_vm0, %v1799_v49, %v3648_v42  ;;  %v2009_v7 = vsel %vm1992_vm0, %v1801_v50, %v3650_v40 }
 0x3e9   : > { %2041 = vst.msk [vmem:[%s2907_s10 + $0x78] sm:$0xff] %vm2025_vm1, %v2008_v61  ;;  %2042 = vst.msk [vmem:[%s2907_s10 + $0x80] sm:$0xff] %vm2025_vm1, %v2009_v7 }
 0x3eb   : > { %v1803_v57 = vpop.permute.xlu1 %1802  ;;  %v1805_v20 = vpop.permute.xlu0 %1804 }
 0x3ec   : > { %v2010_v25 = vsel %vm1992_vm0, %v1803_v57, %v3652_v28  ;;  %v2011_v42 = vsel %vm1992_vm0, %v1805_v20, %v3654_v12 }
 0x3ed   : > { %2043 = vst.msk [vmem:[%s2907_s10 + $0x88] sm:$0xff] %vm2025_vm1, %v2010_v25  ;;  %2044 = vst.msk [vmem:[%s2907_s10 + $0x90] sm:$0xff] %vm2025_vm1, %v2011_v42 }
 0x3ef   : > { %v1807_v33 = vpop.permute.xlu1 %1806  ;;  %v1809_v5 = vpop.permute.xlu0 %1808 }
 0x3f0   : > { %v2012_v40 = vsel %vm1992_vm0, %v1807_v33, %v3656_v2  ;;  %v2013_v28 = vsel %vm1992_vm0, %v1809_v5, %v3658_v24 }
 0x3f1   : > { %2045 = vst.msk [vmem:[%s2907_s10 + $0x98] sm:$0xff] %vm2025_vm1, %v2012_v40  ;;  %2046 = vst.msk [vmem:[%s2907_s10 + $0xa0] sm:$0xff] %vm2025_vm1, %v2013_v28 }
 0x3f3   : > { %v1811_v27 = vpop.permute.xlu1 %1810  ;;  %v1813_v8 = vpop.permute.xlu0 %1812 }
 0x3f4   : > { %v2014_v12 = vsel %vm1992_vm0, %v1811_v27, %v3660_v44  ;;  %v2015_v2 = vsel %vm1992_vm0, %v1813_v8, %v3662_v39 }
 0x3f5   : > { %2047 = vst.msk [vmem:[%s2907_s10 + $0xa8] sm:$0xff] %vm2025_vm1, %v2014_v12  ;;  %2048 = vst.msk [vmem:[%s2907_s10 + $0xb0] sm:$0xff] %vm2025_vm1, %v2015_v2 }
 0x3f7   : > { %v1815_v1 = vpop.permute.xlu1 %1814  ;;  %v1817_v13 = vpop.permute.xlu0 %1816 }
 0x3f8   : > { %v2016_v24 = vsel %vm1992_vm0, %v1815_v1, %v3664_v63  ;;  %v2017_v44 = vsel %vm1992_vm0, %v1817_v13, %v3918_v3 }
 0x3f9   : > { %2049 = vst.msk [vmem:[%s2907_s10 + $0xb8] sm:$0xff] %vm2025_vm1, %v2016_v24  ;;  %2050 = vst.msk [vmem:[%s2907_s10 + $0xc0] sm:$0xff] %vm2025_vm1, %v2017_v44 }
 0x3fb   : > { %v1819_v23 = vpop.permute.xlu1 %1818  ;;  %v1821_v22 = vpop.permute.xlu0 %1820 }
 0x3fc   : > { %v2018_v39 = vsel %vm1992_vm0, %v1819_v23, %v3668_v26  ;;  %v2019_v63 = vsel %vm1992_vm0, %v1821_v22, %v3919_v32 }
 0x3fd   : > { %2051 = vst.msk [vmem:[%s2907_s10 + $0xc8] sm:$0xff] %vm2025_vm1, %v2018_v39  ;;  %2052 = vst.msk [vmem:[%s2907_s10 + $0xd0] sm:$0xff] %vm2025_vm1, %v2019_v63 }
 0x3ff   : > { %v1823_v14 = vpop.permute.xlu1 %1822  ;;  %v1825_v30 = vpop.permute.xlu0 %1824 }
 0x400   : > { %v2020_v19 = vsel %vm1992_vm0, %v1823_v14, %v3920_v38  ;;  %v2021_v26 = vsel %vm1992_vm0, %v1825_v30, %v3921_v58 }
 0x401   : > { %2053 = vst.msk [vmem:[%s2907_s10 + $0xd8] sm:$0xff] %vm2025_vm1, %v2020_v19  ;;  %2054 = vst.msk [vmem:[%s2907_s10 + $0xe0] sm:$0xff] %vm2025_vm1, %v2021_v26 }
 0x403   : > { %v1827_v45 = vpop.permute.xlu1 %1826  ;;  %v1829_v11 = vpop.permute.xlu0 %1828 }
 0x404   : > { %v2022_v4 = vsel %vm1992_vm0, %v1827_v45, %v3922_v62 }
 0x405   : > { %2055 = vst.msk [vmem:[%s2907_s10 + $0xe8] sm:$0xff] %vm2025_vm1, %v2022_v4 }
 0x407   : > { %v1831_v16 = vpop.permute.xlu1 %1830  ;;  %v1957_v21 = vpop.permute.xlu0 %1956 }
 0x408   : > { %v2023_v47 = vsel %vm1992_vm0, %v1829_v11, %v1957_v21 }
 0x409   : > { %2056 = vst.msk [vmem:[%s2907_s10 + $0xf0] sm:$0xff] %vm2025_vm1, %v2023_v47 }
 0x40b   : > { %v1959_v31 = vpop.permute.xlu1 %1958 }
 0x40c   : > { %v2024_v55 = vsel %vm1992_vm0, %v1831_v16, %v1959_v31 }
 0x40d   : > { %2057 = vst.msk [vmem:[%s2907_s10 + $0xf8] sm:$0xff] %vm2025_vm1, %v2024_v55 }
 0x40e PF: > { %s14_s21 = sadd.s32 1, %s2665_s21   ;;  %s3923_s15 = smov %s2645_s16 }
 0x40f   : > { %p11_p0 = scmp.ge.s32.totalorder %s14_s21, 6   ;;  %s3924_s16 = smov %s2748_s28 }
 0x410   : > { %s3925_s17 = smov %s2657_s19  ;;  %s3926_s18 = smov %s2661_s20 }
 0x411   : > { %s3927_s19 = smov %s3930_s22  ;;  %s3928_s20 = smov %s3934_s23 }
 0x412   :  { %13 = sbr.rel (!%p11_p0) target bundleno = 4 (0x4), region = 108 }

</bundles_post_ra>
